<compile_context>
chip_gen: v6e
topology: v6e:2x2x1
jax: 0.10.0
libtpu: 0.0.40
codegen_flags: <defaults>
</compile_context>

<pallas_src>
import functools
import numpy as np

import jax
import jax.numpy as jnp
from jax import lax
from jax.experimental import pallas as pl
from jax.experimental.pallas import tpu as pltpu


# ----------------------------------------------------------------------------
# helpers (plain numpy / JAX glue)
# ----------------------------------------------------------------------------
def get_1d_sincos_pos_embed_from_grid(embed_dim, pos):
    assert embed_dim % 2 == 0
    omega = np.arange(embed_dim // 2, dtype=np.float64)
    omega /= embed_dim / 2.0
    omega = 1.0 / 10000 ** omega
    pos = np.asarray(pos, dtype=np.float64).reshape(-1)
    out = np.einsum("m,d->md", pos, omega)
    return np.concatenate([np.sin(out), np.cos(out)], axis=1)


def haar3d_matrix():
    """8x8 matrix M s.t. coeffs = M @ block (block flattened as (dt,dh,dw)).

    Row c encodes the (T,H,W) low/high filter choice (bit2=T, bit1=H, bit0=W),
    matching Patcher3D channel order [lll,llh,lhl,lhh,hll,hlh,hhl,hhh].
    Includes the rescale factor a^3 / (2*sqrt(2)) used by Patcher3D._dwt.
    """
    a = 0.7071067811865476
    scale = (a ** 3) / (2.0 * np.sqrt(2.0))
    m = np.zeros((8, 8), np.float32)
    for c in range(8):
        sT, sH, sW = (c >> 2) & 1, (c >> 1) & 1, c & 1
        for j in range(8):
            dt, dh, dw = (j >> 2) & 1, (j >> 1) & 1, j & 1
            m[c, j] = ((-1.0) ** (sT * dt + sH * dh + sW * dw)) * scale
    return m


def make_blocks(x):
    """(B,V,T,H,W) -> (B,V,L,8) 2x2x2 patch blocks (reference path only)."""
    B, V, T, H, W = x.shape
    assert T % 2 == 1 and H % 2 == 0 and W % 2 == 0, "need odd T, even H/W"
    xr = jnp.concatenate([x[:, :, :1], x], axis=2)             # duplicate first frame
    Tp, Hp, Wp = (T + 1) // 2, H // 2, W // 2
    xr = xr.reshape(B, V, Tp, 2, Hp, 2, Wp, 2)
    xr = xr.transpose(0, 1, 2, 4, 6, 3, 5, 7)                  # (B,V,Tp,Hp,Wp,2,2,2)
    return xr.reshape(B, V, Tp * Hp * Wp, 8)


def make_blocks_lanes(x, l_pad):
    """(B,V,T,H,W) -> (B, V*8, L_pad) bf16; rows = v*8 + dt*4 + dh*2 + dw, lanes = token.

    TODO(synk): at production video sizes, fold this gather (first-frame duplication +
    2x2x2 rearrangement) into the kernel via per-frame BlockSpecs to avoid this
    wrapper-side HBM pass over the raw video.
    """
    B, V, T, H, W = x.shape
    assert T % 2 == 1 and H % 2 == 0 and W % 2 == 0, "need odd T, even H/W"
    Tp, Hp, Wp = (T + 1) // 2, H // 2, W // 2
    L = Tp * Hp * Wp
    xr = jnp.concatenate([x[:, :, :1], x], axis=2)             # duplicate first frame
    xr = xr.reshape(B, V, Tp, 2, Hp, 2, Wp, 2).astype(jnp.bfloat16)
    xr = xr.transpose(0, 1, 3, 5, 7, 2, 4, 6).reshape(B, V * 8, L)
    if l_pad > L:
        xr = jnp.pad(xr, ((0, 0), (0, 0), (0, l_pad - L)))
    return xr


def _block_diag(mats):
    n_r, n_c = mats[0].shape
    out = jnp.zeros((len(mats) * n_r, len(mats) * n_c), mats[0].dtype)
    for v, m in enumerate(mats):
        out = out.at[v * n_r:(v + 1) * n_r, v * n_c:(v + 1) * n_c].set(m)
    return out


def _choose_tiling(L, B, max_tile_l=2048, min_parallel_steps=2):
    """Lane-axis tile (multiple of 128, or the full L) and the padded L it divides."""
    max_tile_l = max(128, (max_tile_l // 128) * 128)
    want_l_steps = max(1, -(-min_parallel_steps // max(B, 1)))   # steps wanted along L
    if L <= max_tile_l and want_l_steps <= 1:
        return L, L                                              # one full-L tile
    tile = min(max_tile_l, 128 * max(1, -(-L // (want_l_steps * 128))))
    l_pad = tile * (-(-L // tile))
    return tile, l_pad


# ----------------------------------------------------------------------------
# Pallas kernel: fused (folded) patch-embed + cross-attn over V + Wo + LayerNorm
# Everything lives in "tokens-in-lanes" layout: features/heads in sublanes, L in lanes.
# ----------------------------------------------------------------------------
def _cross_attn_patcher_kernel(
    blocks_ref,   # (1, V*8, TL) bf16   raw 2x2x2 patch blocks, tokens in lanes
    ws_ref,       # (V*H, V*8)   bf16   block-diag folded score weights
    cs_ref,       # (V*H, 1)     f32    folded score constants
    wv_ref,       # (V*D, V*8)   bf16   block-diag folded value weights
    cv_ref,       # (V*D, 1)     f32    folded value constants
    wo_ref,       # (D, D)       bf16   output projection (un-transposed: out = Wo @ ctx)
    lnp_ref,      # (D, 3)       f32    columns: [bo, ln_gamma, ln_beta]
    out_ref,      # (1, D, TL)   f32
    *,
    num_vars,
    num_heads,
    head_dim,
):
    f32 = jnp.float32
    bf16 = jnp.bfloat16
    V, H, dh = num_vars, num_heads, head_dim
    D = H * dh

    blk = blocks_ref[0]                                          # (V*8, TL) bf16

    # ---- scores: ONE small matmul for all variables, then packed softmax over V ----
    s = jnp.dot(ws_ref[...], blk, preferred_element_type=f32) + cs_ref[...]   # (V*H, TL)
    s3 = s.reshape(V, H, -1)                                     # (V, H, TL)
    m = jnp.max(s3, axis=0)                                      # (H, TL)
    e = jnp.exp(s3 - m[None])                                    # single EUP dispatch
    inv = pl.reciprocal(jnp.sum(e, axis=0), approx=True)         # (H, TL)
    attn = e * inv[None]                                         # (V, H, TL) f32

    # ---- values: ONE block-diagonal matmul, then per-head weighting via sublane bcast
    vals = jnp.dot(wv_ref[...], blk, preferred_element_type=f32) + cv_ref[...]  # (V*D, TL)
    vals4 = vals.reshape(V, H, dh, -1)                           # (V, H, dh, TL)
    ctx = jnp.sum(attn[:, :, None, :] * vals4, axis=0)           # (H, dh, TL)
    ctx = ctx.reshape(D, -1)                                     # (D, TL) f32

    # ---- output projection (the only big matmul), bf16 operands, f32 accumulation ----
    out = jnp.dot(wo_ref[...], ctx.astype(bf16), preferred_element_type=f32)
    out = out + lnp_ref[:, 0:1]                                  # + bo

    # ---- LayerNorm over D (sublane axis), eps=1e-5, stats in f32 ----
    mu = jnp.mean(out, axis=0, keepdims=True)
    var = jnp.mean(jnp.square(out - mu), axis=0, keepdims=True)
    y = (out - mu) * lax.rsqrt(var + 1e-5)
    out_ref[0, :, :] = y * lnp_ref[:, 1:2] + lnp_ref[:, 2:3]


# ----------------------------------------------------------------------------
# parameter folding — run ONCE per parameter update, not per forward
# ----------------------------------------------------------------------------
def fold_params(params, *, num_heads):
    V, _, D = params["wlin_t"].shape
    H = num_heads
    dh = D // H

    hmt = jnp.asarray(haar3d_matrix().T)                          # coeff = blk @ hmt
    A = jnp.einsum("cj,vjd->vcd", hmt, params["wlin_t"])          # (V, 8, D): haar+linear
    bce = params["blin"] + params["chan_embed"]                   # (V, D)

    # constant query -> projected, pre-scaled by 1/sqrt(head_dim), per-head mask
    qproj = params["channel_query"] @ params["Wq"].T + params["bq"]       # (D,)
    qscaled = qproj / jnp.sqrt(jnp.float32(dh))
    head_of = np.arange(D) // dh
    qm = jax.nn.one_hot(head_of, H, dtype=jnp.float32) * qscaled[:, None]  # (D, H)

    wkq = params["Wk"].T @ qm                                     # (D, H)
    wscore = jnp.einsum("vcd,dh->vch", A, wkq)                    # (V, 8, H)
    cscore = bce @ wkq + params["bk"] @ qm                        # (V, H)

    wval = jnp.einsum("vcd,de->vce", A, params["Wv"].T)           # (V, 8, D)
    cval = bce @ params["Wv"].T + params["bv"]                    # (V, D)

    # block-stacked, transposed ("tokens-in-lanes") layouts; MXU operands in bf16
    ws_bd = _block_diag([wscore[v].T for v in range(V)]).astype(jnp.bfloat16)  # (V*H, V*8)
    wv_bd = _block_diag([wval[v].T for v in range(V)]).astype(jnp.bfloat16)    # (V*D, V*8)
    cs_col = cscore.reshape(V * H, 1).astype(jnp.float32)
    cv_col = cval.reshape(V * D, 1).astype(jnp.float32)
    wo = params["Wo"].astype(jnp.bfloat16)                        # (D, D), un-transposed
    lnp = jnp.stack([params["bo"], params["gamma"], params["beta"]], axis=1)   # (D, 3)

    return dict(ws_bd=ws_bd, cs_col=cs_col, wv_bd=wv_bd, cv_col=cv_col,
                wo=wo, lnp=lnp, num_vars=V, num_heads=H, head_dim=dh, embed_dim=D)


# ----------------------------------------------------------------------------
# forward wrapper
# ----------------------------------------------------------------------------
def cross_attn_patcher_forward(x, folded, *, patch_size=2, max_tile_l=2048):
    B, V, T, H, W = x.shape
    assert patch_size == 2, "kernel specialized for patch_size=2 (haar)"
    assert V == folded["num_vars"]
    D = folded["embed_dim"]
    Tp, Hp, Wp = 1 + (T - 1) // patch_size, H // patch_size, W // patch_size
    L = Tp * Hp * Wp
    V8 = V * 8

    tile_l, l_pad = _choose_tiling(L, B, max_tile_l)
    blocks = make_blocks_lanes(x, l_pad)                          # (B, V*8, L_pad) bf16

    consts = [folded["ws_bd"], folded["cs_col"], folded["wv_bd"],
              folded["cv_col"], folded["wo"], folded["lnp"]]
    const_specs = [pl.BlockSpec(c.shape, (lambda b, i, _nd=c.ndim: (0,) * _nd))
                   for c in consts]

    # explicit scoped-VMEM budget (double-buffered streams + constants, with headroom)
    bytes_streams = 2 * (V8 * tile_l * 2 + D * tile_l * 4)
    bytes_consts = 2 * sum(int(np.prod(c.shape)) * c.dtype.itemsize for c in consts)
    vmem_limit = int(min(max(4 * (bytes_streams + bytes_consts), 32 * 2 ** 20),
                         60 * 2 ** 20))

    grid = (B, l_pad // tile_l)
    out = pl.pallas_call(
        functools.partial(_cross_attn_patcher_kernel, num_vars=V,
                          num_heads=folded["num_heads"], head_dim=folded["head_dim"]),
        out_shape=jax.ShapeDtypeStruct((B, D, l_pad), jnp.float32),
        grid=grid,
        in_specs=[pl.BlockSpec((1, V8, tile_l), lambda b, i: (b, 0, i))] + const_specs,
        out_specs=pl.BlockSpec((1, D, tile_l), lambda b, i: (b, 0, i)),
        compiler_params=pltpu.CompilerParams(
            dimension_semantics=("parallel", "parallel"),
            vmem_limit_bytes=vmem_limit),
    )(blocks, *consts)

    if l_pad > L:
        out = out[:, :, :L]
    y = out.reshape(B, D, Tp, Hp, Wp)                             # free reshape, no transpose
    var_ids = jnp.arange(V, dtype=jnp.int32)
    return y, var_ids


# ----------------------------------------------------------------------------
# pure-JAX reference (same math, unfolded, f32) for correctness check
# ----------------------------------------------------------------------------
def reference_forward(x, params, *, num_heads):
    B, V, T, H, W = x.shape
    Tp, Hp, Wp = 1 + (T - 1) // 2, H // 2, W // 2
    L = Tp * Hp * Wp
    D = params["Wq"].shape[0]
    dh = D // num_heads

    blocks = make_blocks(x)                                       # (B,V,L,8)
    Hm = jnp.asarray(haar3d_matrix())
    coeff = jnp.einsum("bvlj,cj->bvlc", blocks, Hm)
    emb = jnp.einsum("bvlc,vcd->bvld", coeff, params["wlin_t"])
    emb = emb + params["blin"][None, :, None, :]
    emb = emb + params["chan_embed"][None, :, None, :]

    q = params["channel_query"] @ params["Wq"].T + params["bq"]           # (D,)
    k = jnp.einsum("bvld,ed->bvle", emb, params["Wk"]) + params["bk"]
    v = jnp.einsum("bvld,ed->bvle", emb, params["Wv"]) + params["bv"]
    qh = q.reshape(num_heads, dh) / jnp.sqrt(jnp.float32(dh))
    kh = k.reshape(B, V, L, num_heads, dh)
    vh = v.reshape(B, V, L, num_heads, dh)
    scores = jnp.einsum("bvlhd,hd->bvlh", kh, qh)
    attn = jax.nn.softmax(scores, axis=1)
    ctx = jnp.einsum("bvlh,bvlhd->blhd", attn, vh).reshape(B, L, D)
    out = ctx @ params["Wo"].T + params["bo"]

    mu = out.mean(-1, keepdims=True)
    var = ((out - mu) ** 2).mean(-1, keepdims=True)
    y = (out - mu) / jnp.sqrt(var + 1e-5) * params["gamma"] + params["beta"]
    return y.reshape(B, Tp, Hp, Wp, D).transpose(0, 4, 1, 2, 3)


# ----------------------------------------------------------------------------
# deterministic synthetic parameter init (shapes from the module __init__)
# ----------------------------------------------------------------------------
def init_params(key, num_vars, embed_dim, patch_size=2):
    D = embed_dim
    ks = jax.random.split(key, 6)
    std = 0.02
    p = {}
    p["wlin_t"] = jax.random.normal(ks[0], (num_vars, patch_size ** 3, D), jnp.float32) * std
    p["blin"] = jnp.zeros((num_vars, D), jnp.float32)
    p["chan_embed"] = jnp.asarray(
        get_1d_sincos_pos_embed_from_grid(D, np.arange(num_vars)), jnp.float32)
    # NOTE: PyTorch inits channel_query to zeros (trainable); we use a small
    # deterministic random vector so the attention path is exercised non-trivially.
    p["channel_query"] = jax.random.normal(ks[1], (D,), jnp.float32) * std
    p["Wq"] = jax.random.normal(ks[2], (D, D), jnp.float32) * std
    p["Wk"] = jax.random.normal(ks[3], (D, D), jnp.float32) * std
    p["Wv"] = jax.random.normal(ks[4], (D, D), jnp.float32) * std
    p["bq"] = jnp.zeros((D,), jnp.float32)
    p["bk"] = jnp.zeros((D,), jnp.float32)
    p["bv"] = jnp.zeros((D,), jnp.float32)
    p["Wo"] = jax.random.normal(ks[5], (D, D), jnp.float32) * std
    p["bo"] = jnp.zeros((D,), jnp.float32)
    p["gamma"] = jnp.ones((D,), jnp.float32)   # LayerNorm init per _init_weights
    p["beta"] = jnp.zeros((D,), jnp.float32)
    return p


if __name__ == "__main__":
    key = jax.random.PRNGKey(0)
    kx, kp = jax.random.split(key)

    B = 2
    variables = ("u", "v", "w")          # 3 variables == 3 input channels
    V = len(variables)
    video_size = (9, 16, 16)             # (T, H, W); T odd, H/W even
    embed_dim, num_heads = 128, 8

    x = jax.random.normal(kx, (B, V) + video_size, jnp.float32)
    params = init_params(kp, V, embed_dim)

    folded = fold_params(params, num_heads=num_heads)   # once per parameter update
    y, var_ids = cross_attn_patcher_forward(x, folded)
    y = jax.block_until_ready(y)

    y_ref = reference_forward(x, params, num_heads=num_heads)
    np.testing.assert_allclose(np.asarray(y), np.asarray(y_ref), atol=2e-2, rtol=2e-2)
    assert y.shape == (B, embed_dim, 5, 8, 8)
    assert list(np.asarray(var_ids)) == list(range(V))

    print("KERNEL_OK")
</pallas_src>

<mosaic_0001>
module attributes {stable_mosaic.version = 11 : i64} {
  func.func @_cross_attn_patcher_kernel(%arg0: i32, %arg1: i32, %arg2: memref<1x24x320xbf16, #tpu.memory_space<vmem>>, %arg3: memref<24x24xbf16, #tpu.memory_space<vmem>>, %arg4: memref<24x1xf32, #tpu.memory_space<vmem>>, %arg5: memref<384x24xbf16, #tpu.memory_space<vmem>>, %arg6: memref<384x1xf32, #tpu.memory_space<vmem>>, %arg7: memref<128x128xbf16, #tpu.memory_space<vmem>>, %arg8: memref<128x3xf32, #tpu.memory_space<vmem>>, %arg9: memref<1x128x320xf32, #tpu.memory_space<vmem>>) attributes {dimension_semantics = [#tpu.dimension_semantics<parallel>, #tpu.dimension_semantics<parallel>], iteration_bounds = array<i64: 2, 1>, scalar_prefetch = 0 : i64, scratch_operands = 0 : i64, tpu.core_type = #tpu.core_type<tc>, window_params = [{transform_indices = @transform_0, window_bounds = array<i64: 1, 24, 320>}, {pipeline_mode = #tpu.pipeline_mode<synchronous>, transform_indices = @transform_1, window_bounds = array<i64: 24, 24>}, {pipeline_mode = #tpu.pipeline_mode<synchronous>, transform_indices = @transform_2, window_bounds = array<i64: 24, 1>}, {pipeline_mode = #tpu.pipeline_mode<synchronous>, transform_indices = @transform_3, window_bounds = array<i64: 384, 24>}, {pipeline_mode = #tpu.pipeline_mode<synchronous>, transform_indices = @transform_4, window_bounds = array<i64: 384, 1>}, {pipeline_mode = #tpu.pipeline_mode<synchronous>, transform_indices = @transform_5, window_bounds = array<i64: 128, 128>}, {pipeline_mode = #tpu.pipeline_mode<synchronous>, transform_indices = @transform_6, window_bounds = array<i64: 128, 3>}, {transform_indices = @transform_7, window_bounds = array<i64: 1, 128, 320>}]} {
    %c0 = arith.constant 0 : index
    %c0_0 = arith.constant 0 : index
    %c0_1 = arith.constant 0 : index
    %0 = vector.load %arg2[%c0, %c0_0, %c0_1] : memref<1x24x320xbf16, #tpu.memory_space<vmem>>, vector<1x24x320xbf16>
    %1 = vector.shape_cast %0 : vector<1x24x320xbf16> to vector<24x320xbf16>
    %c0_2 = arith.constant 0 : index
    %c0_3 = arith.constant 0 : index
    %2 = vector.load %arg3[%c0_2, %c0_3] : memref<24x24xbf16, #tpu.memory_space<vmem>>, vector<24x24xbf16>
    %cst = arith.constant dense<0.000000e+00> : vector<24x320xf32>
    %3 = tpu.matmul %2, %1, %cst {dimension_numbers = #tpu.dot_dimension_numbers<[1], [0], [0], [1], [0, 0, 1, 1], [], []>} : vector<24x24xbf16>, vector<24x320xbf16>, vector<24x320xf32> -> vector<24x320xf32>
    %c0_4 = arith.constant 0 : index
    %c0_5 = arith.constant 0 : index
    %4 = vector.load %arg4[%c0_4, %c0_5] : memref<24x1xf32, #tpu.memory_space<vmem>>, vector<24x1xf32>
    %5 = vector.broadcast %4 : vector<24x1xf32> to vector<24x320xf32>
    %6 = arith.addf %3, %5 : vector<24x320xf32>
    %7 = vector.shape_cast %6 : vector<24x320xf32> to vector<3x8x320xf32>
    %cst_6 = arith.constant dense<0xFF800000> : vector<8x320xf32>
    %8 = vector.multi_reduction <maximumf>, %7, %cst_6 [0] : vector<3x8x320xf32> to vector<8x320xf32>
    %9 = vector.shape_cast %8 : vector<8x320xf32> to vector<1x8x320xf32>
    %10 = vector.broadcast %9 : vector<1x8x320xf32> to vector<3x8x320xf32>
    %11 = arith.subf %7, %10 : vector<3x8x320xf32>
    %12 = math.exp %11 : vector<3x8x320xf32>
    %cst_7 = arith.constant dense<0.000000e+00> : vector<8x320xf32>
    %13 = vector.multi_reduction <add>, %12, %cst_7 [0] : vector<3x8x320xf32> to vector<8x320xf32>
    %14 = tpu.reciprocal %13 {approx = true} : vector<8x320xf32> -> vector<8x320xf32>
    %15 = vector.shape_cast %14 : vector<8x320xf32> to vector<1x8x320xf32>
    %16 = vector.broadcast %15 : vector<1x8x320xf32> to vector<3x8x320xf32>
    %17 = arith.mulf %12, %16 : vector<3x8x320xf32>
    %c0_8 = arith.constant 0 : index
    %c0_9 = arith.constant 0 : index
    %18 = vector.load %arg5[%c0_8, %c0_9] : memref<384x24xbf16, #tpu.memory_space<vmem>>, vector<384x24xbf16>
    %cst_10 = arith.constant dense<0.000000e+00> : vector<384x320xf32>
    %19 = tpu.matmul %18, %1, %cst_10 {dimension_numbers = #tpu.dot_dimension_numbers<[1], [0], [0], [1], [0, 0, 1, 1], [], []>} : vector<384x24xbf16>, vector<24x320xbf16>, vector<384x320xf32> -> vector<384x320xf32>
    %c0_11 = arith.constant 0 : index
    %c0_12 = arith.constant 0 : index
    %20 = vector.load %arg6[%c0_11, %c0_12] : memref<384x1xf32, #tpu.memory_space<vmem>>, vector<384x1xf32>
    %21 = vector.broadcast %20 : vector<384x1xf32> to vector<384x320xf32>
    %22 = arith.addf %19, %21 : vector<384x320xf32>
    %23 = vector.shape_cast %22 : vector<384x320xf32> to vector<3x8x16x320xf32>
    %24 = vector.shape_cast %17 : vector<3x8x320xf32> to vector<3x8x1x320xf32>
    %25 = vector.broadcast %24 : vector<3x8x1x320xf32> to vector<3x8x16x320xf32>
    %26 = arith.mulf %25, %23 : vector<3x8x16x320xf32>
    %cst_13 = arith.constant dense<0.000000e+00> : vector<8x16x320xf32>
    %27 = vector.multi_reduction <add>, %26, %cst_13 [0] : vector<3x8x16x320xf32> to vector<8x16x320xf32>
    %28 = vector.shape_cast %27 : vector<8x16x320xf32> to vector<128x320xf32>
    %c0_14 = arith.constant 0 : index
    %c0_15 = arith.constant 0 : index
    %29 = vector.load %arg7[%c0_14, %c0_15] : memref<128x128xbf16, #tpu.memory_space<vmem>>, vector<128x128xbf16>
    %30 = arith.truncf %28 : vector<128x320xf32> to vector<128x320xbf16>
    %cst_16 = arith.constant dense<0.000000e+00> : vector<128x320xf32>
    %31 = tpu.matmul %29, %30, %cst_16 {dimension_numbers = #tpu.dot_dimension_numbers<[1], [0], [0], [1], [0, 0, 1, 1], [], []>} : vector<128x128xbf16>, vector<128x320xbf16>, vector<128x320xf32> -> vector<128x320xf32>
    %c0_17 = arith.constant 0 : index
    %c0_18 = arith.constant 0 : index
    %32 = vector.load %arg8[%c0_17, %c0_18] : memref<128x3xf32, #tpu.memory_space<vmem>>, vector<128x1xf32>
    %33 = vector.broadcast %32 : vector<128x1xf32> to vector<128x320xf32>
    %34 = arith.addf %31, %33 : vector<128x320xf32>
    %cst_19 = arith.constant dense<0.000000e+00> : vector<320xf32>
    %35 = vector.multi_reduction <add>, %34, %cst_19 [0] : vector<128x320xf32> to vector<320xf32>
    %36 = vector.shape_cast %35 : vector<320xf32> to vector<1x320xf32>
    %cst_20 = arith.constant 1.280000e+02 : f32
    %37 = vector.broadcast %cst_20 : f32 to vector<1x320xf32>
    %38 = arith.divf %36, %37 : vector<1x320xf32>
    %39 = vector.broadcast %38 : vector<1x320xf32> to vector<128x320xf32>
    %40 = arith.subf %34, %39 : vector<128x320xf32>
    %41 = arith.mulf %40, %40 : vector<128x320xf32>
    %cst_21 = arith.constant dense<0.000000e+00> : vector<320xf32>
    %42 = vector.multi_reduction <add>, %41, %cst_21 [0] : vector<128x320xf32> to vector<320xf32>
    %43 = vector.shape_cast %42 : vector<320xf32> to vector<1x320xf32>
    %cst_22 = arith.constant 1.280000e+02 : f32
    %44 = vector.broadcast %cst_22 : f32 to vector<1x320xf32>
    %45 = arith.divf %43, %44 : vector<1x320xf32>
    %46 = vector.broadcast %38 : vector<1x320xf32> to vector<128x320xf32>
    %47 = arith.subf %34, %46 : vector<128x320xf32>
    %cst_23 = arith.constant 9.99999974E-6 : f32
    %48 = vector.broadcast %cst_23 : f32 to vector<1x320xf32>
    %49 = arith.addf %45, %48 : vector<1x320xf32>
    %50 = math.rsqrt %49 : vector<1x320xf32>
    %51 = vector.broadcast %50 : vector<1x320xf32> to vector<128x320xf32>
    %52 = arith.mulf %47, %51 : vector<128x320xf32>
    %c0_24 = arith.constant 0 : index
    %c1 = arith.constant 1 : index
    %53 = vector.load %arg8[%c0_24, %c1] : memref<128x3xf32, #tpu.memory_space<vmem>>, vector<128x1xf32>
    %54 = vector.broadcast %53 : vector<128x1xf32> to vector<128x320xf32>
    %55 = arith.mulf %52, %54 : vector<128x320xf32>
    %c0_25 = arith.constant 0 : index
    %c2 = arith.constant 2 : index
    %56 = vector.load %arg8[%c0_25, %c2] : memref<128x3xf32, #tpu.memory_space<vmem>>, vector<128x1xf32>
    %57 = vector.broadcast %56 : vector<128x1xf32> to vector<128x320xf32>
    %58 = arith.addf %55, %57 : vector<128x320xf32>
    %c0_26 = arith.constant 0 : index
    %c0_27 = arith.constant 0 : index
    %c0_28 = arith.constant 0 : index
    %59 = vector.load %arg9[%c0_26, %c0_27, %c0_28] : memref<1x128x320xf32, #tpu.memory_space<vmem>>, vector<1x128x320xf32>
    %60 = vector.shape_cast %59 : vector<1x128x320xf32> to vector<128x320xf32>
    %61 = vector.shape_cast %58 : vector<128x320xf32> to vector<1x128x320xf32>
    tpu.vector_store %arg9[%c0_26, %c0_27, %c0_28], %61 {strides = array<i32>} : memref<1x128x320xf32, #tpu.memory_space<vmem>>, vector<1x128x320xf32>,
    return
  }
  func.func @transform_0(%arg0: i32, %arg1: i32) -> (i32, i32, i32) {
    %c0_i32 = arith.constant 0 : i32
    %c0_i32_0 = arith.constant 0 : i32
    return %arg0, %c0_i32, %arg1 : i32, i32, i32
  }
  func.func @transform_1(%arg0: i32, %arg1: i32) -> (i32, i32) {
    %c0_i32 = arith.constant 0 : i32
    %c0_i32_0 = arith.constant 0 : i32
    %c0_i32_1 = arith.constant 0 : i32
    return %c0_i32, %c0_i32_0 : i32, i32
  }
  func.func @transform_2(%arg0: i32, %arg1: i32) -> (i32, i32) {
    %c0_i32 = arith.constant 0 : i32
    %c0_i32_0 = arith.constant 0 : i32
    %c0_i32_1 = arith.constant 0 : i32
    return %c0_i32, %c0_i32_0 : i32, i32
  }
  func.func @transform_3(%arg0: i32, %arg1: i32) -> (i32, i32) {
    %c0_i32 = arith.constant 0 : i32
    %c0_i32_0 = arith.constant 0 : i32
    %c0_i32_1 = arith.constant 0 : i32
    return %c0_i32, %c0_i32_0 : i32, i32
  }
  func.func @transform_4(%arg0: i32, %arg1: i32) -> (i32, i32) {
    %c0_i32 = arith.constant 0 : i32
    %c0_i32_0 = arith.constant 0 : i32
    %c0_i32_1 = arith.constant 0 : i32
    return %c0_i32, %c0_i32_0 : i32, i32
  }
  func.func @transform_5(%arg0: i32, %arg1: i32) -> (i32, i32) {
    %c0_i32 = arith.constant 0 : i32
    %c0_i32_0 = arith.constant 0 : i32
    %c0_i32_1 = arith.constant 0 : i32
    return %c0_i32, %c0_i32_0 : i32, i32
  }
  func.func @transform_6(%arg0: i32, %arg1: i32) -> (i32, i32) {
    %c0_i32 = arith.constant 0 : i32
    %c0_i32_0 = arith.constant 0 : i32
    %c0_i32_1 = arith.constant 0 : i32
    return %c0_i32, %c0_i32_0 : i32, i32
  }
  func.func @transform_7(%arg0: i32, %arg1: i32) -> (i32, i32, i32) {
    %c0_i32 = arith.constant 0 : i32
    %c0_i32_0 = arith.constant 0 : i32
    return %arg0, %c0_i32, %arg1 : i32, i32, i32
  }
}

</mosaic_0001>

<bundles_post_ra>
// kernel: tpu_custom_call.1
= control target key start
LH: loop header
LB: loop body
LE: loop exit
PB: predicated region body
PF: predicated region fallthrough
CT: control target
= control target key end

     0   :  { %s3938_s24 = smov 0   ;;  %s3940_s25 = smov 0   ;;  %s6787_s0 = inlined_call_operand.vmem [shape: bf16[2,24,320], index: 0, kind: input, shape index: {}]   ;;  %s6788_s1 = inlined_call_operand.vmem [shape: bf16[24,24], index: 1, kind: input, shape index: {}]   ;;  %s6789_s2 = inlined_call_operand.vmem [shape: f32[24,1], index: 2, kind: input, shape index: {}]   ;;  %s6790_s3 = inlined_call_operand.vmem [shape: bf16[384,24], index: 3, kind: input, shape index: {}]   ;;  %s6791_s4 = inlined_call_operand.vmem [shape: f32[384,1], index: 4, kind: input, shape index: {}]   ;;  %s6792_s5 = inlined_call_operand.vmem [shape: bf16[128,128], index: 5, kind: input, shape index: {}]   ;;  %s6793_s6 = inlined_call_operand.vmem [shape: f32[128,3], index: 6, kind: input, shape index: {}]   ;;  %s6794_s7 = inlined_call_operand.vmem [shape: f32[2,128,320], index: 7, kind: output, shape index: {}]  }
   0x1   :  { %s3942_s26 = smov 0  }
   0x2 LB: > { %s29_s27 = sadd.s32 1, %s3888_s25  ;;  %p3508_p0 = scmp.ge.s32.totalorder %s3892_s26, 1  ;;  %s3892_s26 = sphi %s3942_s26, %s17_s26   ;;  %s3888_s25 = sphi %s3940_s25, %s7298_s25   ;;  %s3884_s24 = sphi %s3938_s24, %s7297_s24  }
   0x3   : > { %p31_p1 = scmp.ge.s32.totalorder %s29_s27, 2  ;;  %p258_p2 = scmp.lt.s32.totalorder %s3892_s26, 3 }
   0x5   : > { %s7300_s27 = smov (%p31_p1, %s29_s27), 0  ;;  %p259_p3 = pnand %p3508_p0, %p258_p2 }
   0x7   : > { %262 = sbr.rel (%p259_p3) target bundleno = 878 (0x36e), region = 48 }
   0xc   : > { %v329_v0 = vld [vmem:[%s6789_s2 + $0x8] sm:$0xff]  ;;  %v328_v1 = vld [vmem:[%s6789_s2] sm:$0xff]  ;;  %p299_p4 = scmp.lt.s32.totalorder %s3884_s24, 1  ;;  %v6795_v2 = vmov 0   ;;  %vm378_vm0 = vcmask 195584   ;;  %v614_v4 = vld [vmem:[%s6791_s4 + $0x70] sm:$0xff] }
   0xd   : > { %3778 = vset.pattern.permute.xlu1 %v6795_v2  ;;  %3777 = vset.pattern.permute.xlu0 %v6795_v2  ;;  %v3790_v3 = vld [vmem:[%s6788_s1] sm:$0xff]   ;;  %v330_v5 = vld [vmem:[%s6789_s2 + $0x10] sm:$0xff]  ;;  %vm385_vm1 = vcmask 1043456   ;;  %v615_v15 = vld [vmem:[%s6791_s4 + $0x78] sm:$0xff]  ;;  %vm498_vm2 = vcmask 523264  }
   0xe   : > { %338 = vperm.xlu1 %3778, %v329_v0   ;;  %333 = vperm.xlu0 %3777, %v328_v1   ;;  %s7302_s24 = smov (!%p299_p4, %s3884_s24), 1  ;;  %v630_v6 = vld [vmem:[%s6791_s4 + $0xf0] sm:$0xff]  ;;  %v3791_v17 = vld [vmem:[%s6788_s1 + $0x8] ss:$0 sps:$4 sm:$0xff]   ;;  %v631_v19 = vld [vmem:[%s6791_s4 + $0xf8] sm:$0xff] }
   0xf   : > { %427 = vmatprep.mubr.bf16.mxu0 %v6795_v2  ;;  %s3747_s15 = smul.u32 36, %s7302_s24  ;;  %3657 = vmatprep.mubr.msk.bf16.mxu1 %vm378_vm0, %v3790_v3  ;;  %v646_v18 = vld [vmem:[%s6791_s4 + $0x170] sm:$0xff]  ;;  %v612_v20 = vld [vmem:[%s6791_s4 + $0x60] sm:$0xff]  ;;  %v647_v21 = vld [vmem:[%s6791_s4 + $0x178] sm:$0xff] }
  0x10   : > { %v3792_v22 = vld [vmem:[%s6790_s3] sm:$0xff]   ;;  %v613_v24 = vld [vmem:[%s6791_s4 + $0x68] sm:$0xff]  ;;  %v610_v28 = vld [vmem:[%s6791_s4 + $0x50] sm:$0xff] }
  0x11   : > { %s306_s18 = scalar_lea.vmem %s6787_s0, %s3747_s15  ;;  %v628_v23 = vld [vmem:[%s6791_s4 + $0xe0] sm:$0xff]  ;;  %v629_v26 = vld [vmem:[%s6791_s4 + $0xe8] sm:$0xff]  ;;  %v3794_v30 = vld [vmem:[%s6790_s3 + $0x10] sm:$0xff]   ;;  %s3748_s15 = smul.u32 384, %s7302_s24 }
  0x12   : > { %720 = vperm.xlu1 %3778, %v614_v4   ;;  %343 = vperm.xlu0 %3777, %v330_v5   ;;  %v323_v7 = vld [vmem:[%s306_s18 + $0x18] sm:$0xff]  ;;  %v3784_v8 = vld [vmem:[%s306_s18 + $0x20] ss:$0 sps:$4 sm:$0xff]   ;;  %v3786_v11 = vld [vmem:[%s306_s18 + $0x4] ss:$12 sps:$4 sm:$0xff]  }
  0x13   : > { %v3517_v9 = vcombine.high %v323_v7, %v323_v7  ;;  %v3516_v10 = vcombine.low %v323_v7, %v323_v7  ;;  %3745 = vmatprep.subr.msk.bf16.mxu1 %vm385_vm1, %v3784_v8  ;;  %v393_v12 = vsel %vm385_vm1, %v3784_v8, 0  ;;  %v3788_v14 = vld [vmem:[%s306_s18 + $0x8] ss:$12 sps:$4 sm:$0xff]   ;;  %v3789_v16 = vld [vmem:[%s306_s18] ss:$12 sps:$4 sm:$0xff]   ;;  %v611_v32 = vld [vmem:[%s6791_s4 + $0x58] sm:$0xff]  ;;  %s6559_s17 = scalar_lea.vmem %s6794_s7, %s3748_s15 }
  0x14   : > { %3654 = vmatpush3.bf16.msra.mxu1 %v393_v12  ;;  %v644_v25 = vld [vmem:[%s6791_s4 + $0x160] sm:$0xff]  ;;  %v3793_v27 = vld [vmem:[%s6790_s3 + $0x8] sm:$0xff]   ;;  %v626_v31 = vld [vmem:[%s6791_s4 + $0xd0] sm:$0xff] }
  0x15   : > { %3519 = vmatprep.subr.msk.bf16.mxu0 %vm385_vm1, %v3517_v9  ;;  %v387_v13 = vsel %vm385_vm1, %v3516_v10, 0  ;;  %3655 = vmatprep.subr.bf16.mxu1 %v3788_v14  ;;  %v645_v29 = vld [vmem:[%s6791_s4 + $0x168] sm:$0xff]  ;;  %v642_v33 = vld [vmem:[%s6791_s4 + $0x150] sm:$0xff]  ;;  %v3795_v34 = vld [vmem:[%s6790_s3 + $0x18] sm:$0xff]  }
  0x16   : > { %408 = vmatpush1.bf16.msra.mxu0 %v387_v13  ;;  %800 = vperm.xlu1 %3778, %v630_v6   ;;  %v627_v35 = vld [vmem:[%s6791_s4 + $0xd8] sm:$0xff]  ;;  %v3796_v36 = vld [vmem:[%s6790_s3 + $0x20] sm:$0xff]   ;;  %v3797_v39 = vld [vmem:[%s6790_s3 + $0x28] sm:$0xff]  }
  0x17   : > { %409 = vmatprep.subr.bf16.mxu0 %v3786_v11  ;;  %725 = vperm.xlu0 %3777, %v615_v15   ;;  %v608_v37 = vld [vmem:[%s6791_s4 + $0x40] sm:$0xff]  ;;  %v643_v38 = vld [vmem:[%s6791_s4 + $0x158] sm:$0xff]  ;;  %v609_v41 = vld [vmem:[%s6791_s4 + $0x48] sm:$0xff] }
  0x18   : > { %3656 = vmatpush3.bf16.msra.mxu1 %v3788_v14  ;;  %v624_v40 = vld [vmem:[%s6791_s4 + $0xc0] sm:$0xff]  ;;  %v3798_v42 = vld [vmem:[%s6790_s3 + $0x30] sm:$0xff]   ;;  %v625_v44 = vld [vmem:[%s6791_s4 + $0xc8] sm:$0xff] }
  0x19   : > { %3548 = vmatprep.subr.msk.bf16.mxu1 %vm385_vm1, %v3517_v9  ;;  %v640_v43 = vld [vmem:[%s6791_s4 + $0x140] sm:$0xff]  ;;  %v606_v45 = vld [vmem:[%s6791_s4 + $0x30] sm:$0xff]  ;;  %v3799_v46 = vld [vmem:[%s6790_s3 + $0x38] sm:$0xff]  }
  0x1a   : > { %410 = vmatpush1.bf16.msra.mxu0 %v3789_v16  ;;  %880 = vperm.xlu1 %3778, %v646_v18   ;;  %v641_v47 = vld [vmem:[%s6791_s4 + $0x148] sm:$0xff]  ;;  %v3800_v48 = vld [vmem:[%s6790_s3 + $0x40] sm:$0xff]   ;;  %v622_v49 = vld [vmem:[%s6791_s4 + $0xb0] sm:$0xff] }
  0x1b   : > { %3746 = vmatprep.subr.msk.bf16.mxu0 %vm385_vm1, %v3784_v8  ;;  %3658 = vmatmul.mubr.msk.bf16.vlgmr.msra.gmra.mxu1 %vm378_vm0, %v3791_v17  ;;  %v607_v50 = vld [vmem:[%s6791_s4 + $0x38] sm:$0xff]  ;;  %v638_v51 = vld [vmem:[%s6791_s4 + $0x130] sm:$0xff]  ;;  %v3801_v52 = vld [vmem:[%s6790_s3 + $0x48] sm:$0xff]  }
  0x1c   : > { %805 = vperm.xlu0 %3777, %v631_v19   ;;  %1093 = vmatpush1.bf16.msra.mxu1 %v387_v13  ;;  %v623_v53 = vld [vmem:[%s6791_s4 + $0xb8] sm:$0xff]  ;;  %v4131_v54 = vld [vmem:[%s6790_s3 + $0x50] sm:$0xff]   ;;  %v604_v55 = vld [vmem:[%s6791_s4 + $0x20] sm:$0xff] }
  0x1d   : > { %3520 = vmatmul.mubr.msk.bf16.vlgmr.msra.gmra.mxu0 %vm378_vm0, %v3790_v3  ;;  %1094 = vmatprep.subr.bf16.mxu1 %v3786_v11  ;;  %v639_v56 = vld [vmem:[%s6791_s4 + $0x138] sm:$0xff]  ;;  %v620_v57 = vld [vmem:[%s6791_s4 + $0xa0] sm:$0xff]  ;;  %v605_v59 = vld [vmem:[%s6791_s4 + $0x28] sm:$0xff] }
  0x1e   : > { %437 = vmatprep.mubr.bf16.mxu0 %v6795_v2  ;;  %710 = vperm.xlu1 %3778, %v612_v20   ;;  %v4150_v58 = vld [vmem:[%s6790_s3 + $0x58] sm:$0xff]   ;;  %v4158_v60 = vld [vmem:[%s6790_s3 + $0x60] sm:$0xff]   ;;  %v621_v62 = vld [vmem:[%s6791_s4 + $0xa8] sm:$0xff] }
  0x1f   : > { %1112 = vmatprep.mubr.bf16.mxu1 %v6795_v2  ;;  %3662 = vmatpush3.bf16.msra.mxu0 %v393_v12  ;;  %v636_v61 = vld [vmem:[%s6791_s4 + $0x120] sm:$0xff]  ;;  %v602_v63 = vld [vmem:[%s6791_s4 + $0x10] sm:$0xff]  ;;  %v4178_v0 = vld [vmem:[%s6790_s3 + $0x68] sm:$0xff]  }
  0x20   : > { %885 = vperm.xlu0 %3777, %v647_v21   ;;  %1095 = vmatpush1.bf16.msra.mxu1 %v3789_v16  ;;  %v637_v1 = vld [vmem:[%s6791_s4 + $0x128] sm:$0xff]  ;;  %v4186_v3 = vld [vmem:[%s6790_s3 + $0x70] sm:$0xff]   ;;  %v603_v5 = vld [vmem:[%s6791_s4 + $0x18] sm:$0xff] }
  0x21   : > { %3663 = vmatprep.subr.bf16.mxu0 %v3788_v14  ;;  %v618_v4 = vld [vmem:[%s6791_s4 + $0x90] sm:$0xff]  ;;  %v4206_v7 = vld [vmem:[%s6790_s3 + $0x78] sm:$0xff]   ;;  %v4214_v9 = vld [vmem:[%s6790_s3 + $0x80] sm:$0xff]  }
  0x22   : > { %790 = vperm.xlu1 %3778, %v628_v23   ;;  %v634_v6 = vld [vmem:[%s6791_s4 + $0x110] sm:$0xff]  ;;  %v619_v8 = vld [vmem:[%s6791_s4 + $0x98] sm:$0xff]  ;;  %v600_v10 = vld [vmem:[%s6791_s4] sm:$0xff] }
  0x23   : > { %3549 = vmatmul.mubr.msk.bf16.vlgmr.msra.gmra.mxu1 %vm378_vm0, %v3792_v22  ;;  %3664 = vmatpush3.bf16.msra.mxu0 %v3788_v14  ;;  %v635_v11 = vld [vmem:[%s6791_s4 + $0x118] sm:$0xff]  ;;  %v616_v12 = vld [vmem:[%s6791_s4 + $0x80] sm:$0xff]  ;;  %v4234_v13 = vld [vmem:[%s6790_s3 + $0x88] sm:$0xff]  }
  0x24   : > { %715 = vperm.xlu0 %3777, %v613_v24   ;;  %1122 = vmatprep.mubr.bf16.mxu1 %v6795_v2  ;;  %v601_v14 = vld [vmem:[%s6791_s4 + $0x8] sm:$0xff]  ;;  %v4242_v15 = vld [vmem:[%s6790_s3 + $0x90] sm:$0xff]   ;;  %v632_v16 = vld [vmem:[%s6791_s4 + $0x100] sm:$0xff] }
  0x25   : > { %3521 = vmatmul.mubr.msk.bf16.gmra.mxu0 %vm378_vm0, %v3791_v17  ;;  %v617_v17 = vld [vmem:[%s6791_s4 + $0x88] sm:$0xff]  ;;  %v2476_v18 = vld [vmem:[%s6793_s6] sm:$0xff]  ;;  %v4262_v19 = vld [vmem:[%s6790_s3 + $0x98] sm:$0xff]  }
  0x26   : > { %3665 = vmatprep.mubr.msk.bf16.mxu0 %vm378_vm0, %v3792_v22  ;;  %870 = vperm.xlu1 %3778, %v644_v25   ;;  %v633_v20 = vld [vmem:[%s6791_s4 + $0x108] sm:$0xff]  ;;  %v4270_v21 = vld [vmem:[%s6790_s3 + $0xa0] sm:$0xff]   ;;  %v2478_v22 = vld [vmem:[%s6793_s6 + $0x10] sm:$0xff] }
  0x27   : > { %v2477_v23 = vld [vmem:[%s6793_s6 + $0x8] sm:$0xff]  ;;  %v2480_v24 = vld [vmem:[%s6793_s6 + $0x20] sm:$0xff] }
  0x28   : > { %795 = vperm.xlu0 %3777, %v629_v26   ;;  %v4291_v25 = vld [vmem:[%s6790_s3 + $0xa8] sm:$0xff]   ;;  %v2479_v26 = vld [vmem:[%s6793_s6 + $0x18] sm:$0xff] }
  0x2a   : > { %700 = vperm.xlu1 %3778, %v610_v28   ;;  %v2482_v28 = vld [vmem:[%s6793_s6 + $0x30] sm:$0xff] }
  0x2b   : > { %3550 = vmatmul.mubr.msk.bf16.gmra.mxu1 %vm378_vm0, %v3793_v27 }
  0x2c   : > { %875 = vperm.xlu0 %3777, %v645_v29   ;;  %1132 = vmatprep.mubr.bf16.mxu1 %v6795_v2  ;;  %v2481_v29 = vld [vmem:[%s6793_s6 + $0x28] sm:$0xff] }
  0x2d   : > { %3666 = vmatmul.mubr.msk.bf16.vlgmr.msra.gmra.mxu0 %vm378_vm0, %v3793_v27  ;;  %v4299_v27 = vld [vmem:[%s6790_s3 + $0xb0] sm:$0xff]  }
  0x2e   : > { %3669 = vmatprep.mubr.msk.bf16.mxu0 %vm378_vm0, %v3794_v30  ;;  %780 = vperm.xlu1 %3778, %v626_v31   ;;  %v4320_v31 = vld [vmem:[%s6790_s3 + $0xb8] sm:$0xff]  }
  0x30   : > { %705 = vperm.xlu0 %3777, %v611_v32   ;;  %v2483_v32 = vld [vmem:[%s6793_s6 + $0x38] sm:$0xff] }
  0x32   : > { %860 = vperm.xlu1 %3778, %v642_v33   ;;  %v2486_v33 = vld [vmem:[%s6793_s6 + $0x50] sm:$0xff] }
  0x33   : > { %3551 = vmatmul.mubr.msk.bf16.gmra.mxu1 %vm378_vm0, %v3794_v30  ;;  %v2484_v30 = vld [vmem:[%s6793_s6 + $0x40] sm:$0xff] }
  0x34   : > { %785 = vperm.xlu0 %3777, %v627_v35   ;;  %1142 = vmatprep.mubr.bf16.mxu1 %v6795_v2 }
  0x35   : > { %3670 = vmatmul.mubr.msk.bf16.gmra.mxu0 %vm378_vm0, %v3795_v34 }
  0x36   : > { %3673 = vmatprep.mubr.msk.bf16.mxu0 %vm378_vm0, %v3796_v36  ;;  %690 = vperm.xlu1 %3778, %v608_v37   ;;  %v2488_v37 = vld [vmem:[%s6793_s6 + $0x60] sm:$0xff] }
  0x38   : > { %865 = vperm.xlu0 %3777, %v643_v38   ;;  %v2487_v38 = vld [vmem:[%s6793_s6 + $0x58] sm:$0xff] }
  0x3a   : > { %770 = vperm.xlu1 %3778, %v624_v40   ;;  %v2490_v40 = vld [vmem:[%s6793_s6 + $0x70] sm:$0xff] }
  0x3b   : > { %3552 = vmatmul.mubr.msk.bf16.gmra.mxu1 %vm378_vm0, %v3795_v34  ;;  %v2485_v34 = vld [vmem:[%s6793_s6 + $0x48] sm:$0xff] }
  0x3c   : > { %695 = vperm.xlu0 %3777, %v609_v41   ;;  %1152 = vmatprep.mubr.bf16.mxu1 %v6795_v2 }
  0x3d   : > { %3674 = vmatmul.mubr.msk.bf16.gmra.mxu0 %vm378_vm0, %v3797_v39 }
  0x3e   : > { %3677 = vmatprep.mubr.msk.bf16.mxu0 %vm378_vm0, %v3798_v42  ;;  %850 = vperm.xlu1 %3778, %v640_v43  }
  0x40   : > { %775 = vperm.xlu0 %3777, %v625_v44   ;;  %v2491_v44 = vld [vmem:[%s6793_s6 + $0x78] sm:$0xff] }
  0x42   : > { %680 = vperm.xlu1 %3778, %v606_v45  }
  0x43   : > { %3553 = vmatmul.mubr.msk.bf16.gmra.mxu1 %vm378_vm0, %v3796_v36 }
  0x44   : > { %855 = vperm.xlu0 %3777, %v641_v47   ;;  %1162 = vmatprep.mubr.bf16.mxu1 %v6795_v2 }
  0x45   : > { %3678 = vmatmul.mubr.msk.bf16.gmra.mxu0 %vm378_vm0, %v3799_v46 }
  0x46   : > { %3681 = vmatprep.mubr.msk.bf16.mxu0 %vm378_vm0, %v3800_v48  ;;  %760 = vperm.xlu1 %3778, %v622_v49  }
  0x48   : > { %685 = vperm.xlu0 %3777, %v607_v50  }
  0x4a   : > { %840 = vperm.xlu1 %3778, %v638_v51  }
  0x4b   : > { %3554 = vmatmul.mubr.msk.bf16.gmra.mxu1 %vm378_vm0, %v3797_v39 }
  0x4c   : > { %765 = vperm.xlu0 %3777, %v623_v53   ;;  %1172 = vmatprep.mubr.bf16.mxu1 %v6795_v2 }
  0x4d   : > { %3682 = vmatmul.mubr.msk.bf16.gmra.mxu0 %vm378_vm0, %v3801_v52 }
  0x4e   : > { %3685 = vmatprep.mubr.msk.bf16.mxu0 %vm378_vm0, %v4131_v54  ;;  %670 = vperm.xlu1 %3778, %v604_v55  }
  0x50   : > { %845 = vperm.xlu0 %3777, %v639_v56  }
  0x52   : > { %750 = vperm.xlu1 %3778, %v620_v57  }
  0x53   : > { %3555 = vmatmul.mubr.msk.bf16.gmra.mxu1 %vm378_vm0, %v3798_v42  ;;  %v2489_v42 = vld [vmem:[%s6793_s6 + $0x68] sm:$0xff] }
  0x54   : > { %675 = vperm.xlu0 %3777, %v605_v59   ;;  %1182 = vmatprep.mubr.bf16.mxu1 %v6795_v2 }
  0x55   : > { %3686 = vmatmul.mubr.msk.bf16.gmra.mxu0 %vm378_vm0, %v4150_v58 }
  0x56   : > { %3689 = vmatprep.mubr.msk.bf16.mxu0 %vm378_vm0, %v4158_v60  ;;  %830 = vperm.xlu1 %3778, %v636_v61  }
  0x58   : > { %755 = vperm.xlu0 %3777, %v621_v62  }
  0x5a   : > { %660 = vperm.xlu1 %3778, %v602_v63  }
  0x5b   : > { %3556 = vmatmul.mubr.msk.bf16.gmra.mxu1 %vm378_vm0, %v3799_v46 }
  0x5c   : > { %835 = vperm.xlu0 %3777, %v637_v1   ;;  %1192 = vmatprep.mubr.bf16.mxu1 %v6795_v2 }
  0x5d   : > { %3690 = vmatmul.mubr.msk.bf16.gmra.mxu0 %vm378_vm0, %v4178_v0 }
  0x5e   : > { %3693 = vmatprep.mubr.msk.bf16.mxu0 %vm378_vm0, %v4186_v3  ;;  %740 = vperm.xlu1 %3778, %v618_v4  }
  0x60   : > { %665 = vperm.xlu0 %3777, %v603_v5  }
  0x62   : > { %820 = vperm.xlu1 %3778, %v634_v6  }
  0x63   : > { %3557 = vmatmul.mubr.msk.bf16.gmra.mxu1 %vm378_vm0, %v3800_v48 }
  0x64   : > { %745 = vperm.xlu0 %3777, %v619_v8   ;;  %1202 = vmatprep.mubr.bf16.mxu1 %v6795_v2 }
  0x65   : > { %3694 = vmatmul.mubr.msk.bf16.gmra.mxu0 %vm378_vm0, %v4206_v7 }
  0x66   : > { %3697 = vmatprep.mubr.msk.bf16.mxu0 %vm378_vm0, %v4214_v9  ;;  %650 = vperm.xlu1 %3778, %v600_v10  }
  0x68   : > { %825 = vperm.xlu0 %3777, %v635_v11  }
  0x6a   : > { %730 = vperm.xlu1 %3778, %v616_v12  }
  0x6b   : > { %3558 = vmatmul.mubr.msk.bf16.gmra.mxu1 %vm378_vm0, %v3801_v52 }
  0x6c   : > { %655 = vperm.xlu0 %3777, %v601_v14   ;;  %1212 = vmatprep.mubr.bf16.mxu1 %v6795_v2 }
  0x6d   : > { %3698 = vmatmul.mubr.msk.bf16.gmra.mxu0 %vm378_vm0, %v4234_v13 }
  0x6e   : > { %3701 = vmatprep.mubr.msk.bf16.mxu0 %vm378_vm0, %v4242_v15  ;;  %810 = vperm.xlu1 %3778, %v632_v16  }
  0x70   : > { %735 = vperm.xlu0 %3777, %v617_v17  }
  0x72   : > { %2494 = vperm.xlu1 %3778, %v2476_v18  }
  0x73   : > { %3559 = vmatmul.mubr.msk.bf16.gmra.mxu1 %vm378_vm0, %v4131_v54 }
  0x74   : > { %815 = vperm.xlu0 %3777, %v633_v20   ;;  %1222 = vmatprep.mubr.bf16.mxu1 %v6795_v2 }
  0x75   : > { %3702 = vmatmul.mubr.msk.bf16.gmra.mxu0 %vm378_vm0, %v4262_v19 }
  0x76   : > { %3705 = vmatprep.mubr.msk.bf16.mxu0 %vm378_vm0, %v4270_v21  ;;  %2504 = vperm.xlu1 %3778, %v2478_v22  }
  0x78   : > { %2499 = vperm.xlu0 %3777, %v2477_v23  }
  0x7a   : > { %2514 = vperm.xlu1 %3778, %v2480_v24  }
  0x7b   : > { %3560 = vmatmul.mubr.msk.bf16.gmra.mxu1 %vm378_vm0, %v4150_v58 }
  0x7c   : > { %2509 = vperm.xlu0 %3777, %v2479_v26   ;;  %1232 = vmatprep.mubr.bf16.mxu1 %v6795_v2 }
  0x7d   : > { %3706 = vmatmul.mubr.msk.bf16.gmra.mxu0 %vm378_vm0, %v4291_v25 }
  0x7e   : > { %3709 = vmatprep.mubr.msk.bf16.mxu0 %vm378_vm0, %v4299_v27  ;;  %2524 = vperm.xlu1 %3778, %v2482_v28  }
  0x80   : > { %2519 = vperm.xlu0 %3777, %v2481_v29  }
  0x82   : > { %2534 = vperm.xlu1 %3778, %v2484_v30  }
  0x83   : > { %3561 = vmatmul.mubr.msk.bf16.gmra.mxu1 %vm378_vm0, %v4158_v60 }
  0x84   : > { %2529 = vperm.xlu0 %3777, %v2483_v32   ;;  %1242 = vmatprep.mubr.bf16.mxu1 %v6795_v2 }
  0x85   : > { %3710 = vmatmul.mubr.msk.bf16.gmra.mxu0 %vm378_vm0, %v4320_v31 }
  0x86   : > { %2652 = vmatprep.mubr.bf16.mxu0 %v6795_v2  ;;  %2544 = vperm.xlu1 %3778, %v2486_v33  }
  0x88   : > { %2539 = vperm.xlu0 %3777, %v2485_v34  }
  0x89   : > { %v4337_v35 = vpop.permute.xlu1 %338  ;;  %v4339_v36 = vpop.permute.xlu0 %333 }
  0x8a   : > { %2554 = vperm.xlu1 %3778, %v2488_v37  }
  0x8b   : > { %3562 = vmatmul.mubr.msk.bf16.gmra.mxu1 %vm378_vm0, %v4178_v0 }
  0x8c   : > { %2549 = vperm.xlu0 %3777, %v2487_v38   ;;  %1252 = vmatprep.mubr.bf16.mxu1 %v6795_v2 }
  0x8d   : > { %v4349_v39 = vpop.permute.xlu1 %720  ;;  %v4354_v41 = vpop.permute.xlu0 %343 }
  0x8e   : > { %6907 = vst [vmem:[#allocation2_spill] sm:$0xff] %v4349_v39  ;;  %2564 = vperm.xlu1 %3778, %v2490_v40  }
  0x90   : > { %2559 = vperm.xlu0 %3777, %v2489_v42  }
  0x91   : > { %v4360_v43 = vpop.permute.xlu1 %800 }
  0x92   : > { %6908 = vst [vmem:[#allocation3_spill] sm:$0xff] %v4360_v43  ;;  %v4365_v45 = vpop.permute.xlu0 %725 }
  0x93   : > { %6909 = vst [vmem:[#allocation4_spill] sm:$0xff] %v4365_v45  ;;  %3563 = vmatmul.mubr.msk.bf16.gmra.mxu1 %vm378_vm0, %v4186_v3 }
  0x94   : > { %2569 = vperm.xlu0 %3777, %v2491_v44   ;;  %1262 = vmatprep.mubr.bf16.mxu1 %v6795_v2 }
  0x95   : > { %v4370_v46 = vpop.permute.xlu1 %880 }
  0x96   : > { %6910 = vst [vmem:[#allocation5_spill] sm:$0xff] %v4370_v46 }
  0x97   : > { %v4372_v47 = vpop.permute.xlu0 %805 }
  0x98   : > { %6911 = vst [vmem:[#allocation6_spill] sm:$0xff] %v4372_v47 }
  0x99   : > { %v4374_v48 = vpop.permute.xlu1 %710 }
  0x9b   : > { %v4376_v49 = vpop.permute.xlu0 %885  ;;  %3564 = vmatmul.mubr.msk.bf16.gmra.mxu1 %vm378_vm0, %v4206_v7 }
  0x9c   : > { %6912 = vst [vmem:[#allocation7_spill] sm:$0xff] %v4376_v49  ;;  %1272 = vmatprep.mubr.bf16.mxu1 %v6795_v2 }
  0x9d   : > { %v4381_v50 = vpop.permute.xlu1 %790 }
  0x9e   : > { %6913 = vst [vmem:[#allocation8_spill] sm:$0xff] %v4381_v50 }
  0x9f   : > { %v4383_v51 = vpop.permute.xlu0 %715 }
  0xa1   : > { %v4385_v52 = vpop.permute.xlu1 %870 }
  0xa2   : > { %6914 = vst [vmem:[#allocation9_spill] sm:$0xff] %v4385_v52 }
  0xa3   : > { %v4387_v53 = vpop.permute.xlu0 %795  ;;  %3565 = vmatmul.mubr.msk.bf16.gmra.mxu1 %vm378_vm0, %v4214_v9 }
  0xa4   : > { %6915 = vst [vmem:[#allocation10_spill] sm:$0xff] %v4387_v53  ;;  %1282 = vmatprep.mubr.bf16.mxu1 %v6795_v2 }
  0xa5   : > { %v4394_v55 = vpop.permute.xlu1 %700 }
  0xa7   : > { %v4392_v54 = vpop.permute.xlu0 %875 }
  0xa8   : > { %6916 = vst [vmem:[#allocation11_spill] sm:$0xff] %v4392_v54 }
  0xa9   : > { %v4401_v57 = vpop.permute.xlu1 %780 }
  0xaa   : > { %6917 = vst [vmem:[#allocation12_spill] sm:$0xff] %v4401_v57 }
  0xab   : > { %v4396_v56 = vpop.permute.xlu0 %705  ;;  %3566 = vmatmul.mubr.msk.bf16.gmra.mxu1 %vm378_vm0, %v4234_v13 }
  0xac   : > { %1292 = vmatprep.mubr.bf16.mxu1 %v6795_v2 }
  0xad   : > { %v4405_v59 = vpop.permute.xlu1 %860 }
  0xae   : > { %6919 = vst [vmem:[#allocation14_spill] sm:$0xff] %v4405_v59  ;;  %v3895_v59 = vmov 1966171168  }
  0xaf   : > { %v4403_v58 = vpop.permute.xlu0 %785 }
  0xb0   : > { %6918 = vst [vmem:[#allocation13_spill] sm:$0xff] %v4403_v58 }
  0xb1   : > { %v4412_v61 = vpop.permute.xlu1 %690 }
  0xb3   : > { %3567 = vmatmul.mubr.msk.bf16.gmra.mxu1 %vm378_vm0, %v4242_v15  ;;  %v4409_v60 = vpop.permute.xlu0 %865 }
  0xb4   : > { %6920 = vst [vmem:[#allocation15_spill] sm:$0xff] %v4409_v60  ;;  %1302 = vmatprep.mubr.bf16.mxu1 %v6795_v2 }
  0xb5   : > { %v4419_v63 = vpop.permute.xlu1 %770 }
  0xb6   : > { %6921 = vst [vmem:[#allocation16_spill] sm:$0xff] %v4419_v63 }
  0xb7   : > { %v4414_v62 = vpop.permute.xlu0 %695 }
  0xb9   : > { %v4426_v1 = vpop.permute.xlu1 %850 }
  0xba   : > { %6923 = vst [vmem:[#allocation18_spill] sm:$0xff] %v4426_v1 }
  0xbb   : > { %3568 = vmatmul.mubr.msk.bf16.gmra.mxu1 %vm378_vm0, %v4262_v19  ;;  %v4421_v0 = vpop.permute.xlu0 %775 }
  0xbc   : > { %1312 = vmatprep.mubr.bf16.mxu1 %v6795_v2  ;;  %6922 = vst [vmem:[#allocation17_spill] sm:$0xff] %v4421_v0 }
  0xbd   : > { %v4430_v4 = vpop.permute.xlu1 %680 }
  0xbf   : > { %v4428_v3 = vpop.permute.xlu0 %855 }
  0xc0   : > { %6924 = vst [vmem:[#allocation19_spill] sm:$0xff] %v4428_v3 }
  0xc1   : > { %v4437_v6 = vpop.permute.xlu1 %760 }
  0xc2   : > { %6925 = vst [vmem:[#allocation20_spill] sm:$0xff] %v4437_v6 }
  0xc3   : > { %3569 = vmatmul.mubr.msk.bf16.gmra.mxu1 %vm378_vm0, %v4270_v21  ;;  %v4434_v5 = vpop.permute.xlu0 %685 }
  0xc4   : > { %1322 = vmatprep.mubr.bf16.mxu1 %v6795_v2 }
  0xc5   : > { %v4444_v8 = vpop.permute.xlu1 %840 }
  0xc6   : > { %6927 = vst [vmem:[#allocation22_spill] sm:$0xff] %v4444_v8 }
  0xc7   : > { %v4439_v7 = vpop.permute.xlu0 %765 }
  0xc8   : > { %6926 = vst [vmem:[#allocation21_spill] sm:$0xff] %v4439_v7 }
  0xc9   : > { %v4451_v13 = vpop.permute.xlu1 %670 }
  0xcb   : > { %3570 = vmatmul.mubr.msk.bf16.gmra.mxu1 %vm378_vm0, %v4291_v25  ;;  %v4446_v9 = vpop.permute.xlu0 %845 }
  0xcc   : > { %1332 = vmatprep.mubr.bf16.mxu1 %v6795_v2  ;;  %6928 = vst [vmem:[#allocation23_spill] sm:$0xff] %v4446_v9  ;;  %v1593_v9 = vlaneseq }
  0xcd   : > { %v4459_v26 = vpop.permute.xlu1 %750 }
  0xce   : > { %6929 = vst [vmem:[#allocation24_spill] sm:$0xff] %v4459_v26  ;;  %v1594_v58 = vshrl.u32 %v1593_v9, 7 }
  0xcf   : > { %v4453_v15 = vpop.permute.xlu0 %675 }
  0xd0   : > { %v4562_v9 = vsub.s32 2, %v1594_v58 }
  0xd3   : > { %3571 = vmatmul.mubr.msk.bf16.gmra.mxu1 %vm378_vm0, %v4299_v27  ;;  %v4464_v29 = vpop.permute.xlu0 %755 }
  0xd4   : > { %1342 = vmatprep.mubr.bf16.mxu1 %v6795_v2  ;;  %6930 = vst [vmem:[#allocation25_spill] sm:$0xff] %v4464_v29 }
  0xdb   : > { %v3659_v10 = vpop.f32.mrf.mxu1  ;;  %3572 = vmatmul.mubr.msk.bf16.gmra.mxu1 %vm378_vm0, %v4320_v31 }
  0xdc   : > { %v489_v12 = vadd.f32 %v3659_v10, %v4354_v41 }
  0xdd   : > { %v429_v11 = vpop.f32.mrf.mxu0  ;;  %v480_v14 = vpop.f32.mrf.mxu1 }
  0xde   : > { %v481_v17 = vadd.f32 %v480_v14, %v4339_v36  ;;  %v501_v19 = vsel %vm498_vm2, %v489_v12, -inf  ;;  %v430_v27 = vadd.f32 %v429_v11, %v4339_v36 }
  0xdf   : > { %v431_v16 = vpop.f32.mrf.mxu0  ;;  %v3660_v18 = vpop.f32.mrf.mxu1 }
  0xe0   : > { %v499_v20 = vsel %vm498_vm2, %v481_v17, -inf  ;;  %v432_v38 = vadd.f32 %v431_v16, %v4339_v36  ;;  %v4480_v36 = vpop.permute.xlu0 %835 }
  0xe1   : > { %v433_v21 = vpop.f32.mrf.mxu0  ;;  %v502_v22 = vmax.f32 %v499_v20, %v501_v19  ;;  %v483_v23 = vpop.f32.mrf.mxu1  ;;  %6932 = vst [vmem:[#allocation27_spill] sm:$0xff] %v4480_v36  ;;  %v1591_v36 = vunpack.c.l.s4 %v3895_v59 }
  0xe2   : > { %v484_v25 = vadd.f32 %v483_v23, %v4337_v35  ;;  %v434_v32 = vadd.f32 %v433_v21, %v4337_v35  ;;  %v4476_v21 = vpop.permute.xlu1 %830 }
  0xe3   : > { %v435_v24 = vpop.f32.mrf.mxu0  ;;  %v4462_v28 = vpop.f32.mrf.mxu1  ;;  %6931 = vst [vmem:[#allocation26_spill] sm:$0xff] %v4476_v21 }
  0xe4   : > { %v500_v30 = vsel %vm498_vm2, %v484_v25, -inf  ;;  %v436_v18 = vadd.f32 %v435_v24, %v4337_v35 }
  0xe5   : > { %v439_v31 = vpop.f32.mrf.mxu0  ;;  %v503_v33 = vmax.f32 %v502_v22, %v500_v30  ;;  %v4469_v37 = vpop.f32.mrf.mxu1 }
  0xe6   : > { %v440_v34 = vadd.f32 %v439_v31, %v4354_v41 }
  0xe7   : > { %v441_v40 = vpop.f32.mrf.mxu0  ;;  %v506_v42 = vsub.f32 %v481_v17, %v503_v33  ;;  %v509_v44 = vsub.f32 %v484_v25, %v503_v33  ;;  %v512_v10 = vsub.f32 %v489_v12, %v503_v33  ;;  %v4472_v14 = vpop.f32.mrf.mxu1 }
  0xe8   : > { %v494_v11 = vmax.f32 %v430_v27, %v440_v34  ;;  %v442_v19 = vadd.f32 %v441_v40, %v4354_v41 }
  0xe9   : > { %v443_v20 = vpop.f32.mrf.mxu0  ;;  %v517_v22 = vmul.f32 1.442695, %v506_v42  ;;  %v523_v23 = vmul.f32 1.442695, %v509_v44  ;;  %v529_v30 = vmul.f32 1.442695, %v512_v10  ;;  %v4478_v2 = vpop.f32.mrf.mxu1 }
  0xea   : > { %v495_v31 = vmax.f32 %v494_v11, %v434_v32  ;;  %v496_v16 = vmax.f32 %v432_v38, %v442_v19 }
  0xeb   : > { %v444_v12 = vpop.f32.mrf.mxu0  ;;  %3824 = vpow2.f32 %v517_v22  ;;  %v4482_v35 = vpop.f32.mrf.mxu1 }
  0xec   : > { %v504_v17 = vsub.f32 %v430_v27, %v495_v31  ;;  %v507_v25 = vsub.f32 %v434_v32, %v495_v31  ;;  %v510_v33 = vsub.f32 %v440_v34, %v495_v31  ;;  %3826 = vpow2.f32 %v523_v23  ;;  %v4490_v27 = vpop.permute.xlu1 %660  ;;  %v4494_v34 = vpop.permute.xlu0 %665 }
  0xed   : > { %v497_v41 = vmax.f32 %v496_v16, %v436_v18  ;;  %v4484_v24 = vpop.f32.mrf.mxu0  ;;  %3828 = vpow2.f32 %v529_v30  ;;  %v4486_v10 = vpop.f32.mrf.mxu1 }
  0xee   : > { %v513_v40 = vmul.f32 1.442695, %v504_v17  ;;  %v519_v42 = vmul.f32 1.442695, %v507_v25  ;;  %v525_v44 = vmul.f32 1.442695, %v510_v33 }
  0xef   : > { %v505_v11 = vsub.f32 %v432_v38, %v497_v41  ;;  %v508_v20 = vsub.f32 %v436_v18, %v497_v41  ;;  %v511_v54 = vsub.f32 %v442_v19, %v497_v41  ;;  %v4488_v12 = vpop.f32.mrf.mxu0  ;;  %v4492_v32 = vpop.f32.mrf.mxu1 }
  0xf0   : > { %3830 = vpow2.f32 %v513_v40  ;;  %v4506_v17 = vpop.permute.xlu1 %740  ;;  %v4510_v33 = vpop.permute.xlu0 %745 }
  0xf1   : > { %3832 = vpow2.f32 %v519_v42  ;;  %v515_v22 = vmul.f32 1.442695, %v505_v11  ;;  %v521_v23 = vmul.f32 1.442695, %v508_v20  ;;  %v527_v30 = vmul.f32 1.442695, %v511_v54  ;;  %v4496_v31 = vpop.f32.mrf.mxu0  ;;  %v4498_v16 = vpop.f32.mrf.mxu1 }
  0xf2   : > { %3834 = vpow2.f32 %v525_v44  ;;  %6933 = vst [vmem:[#allocation28_spill] sm:$0xff] %v4506_v17  ;;  %6934 = vst [vmem:[#allocation29_spill] sm:$0xff] %v4510_v33 }
  0xf3   : > { %3836 = vpow2.f32 %v515_v22  ;;  %v4500_v38 = vpop.f32.mrf.mxu0  ;;  %v4502_v18 = vpop.f32.mrf.mxu1 }
  0xf4   : > { %3838 = vpow2.f32 %v521_v23  ;;  %v4532_v49 = vpop.permute.xlu1 %820  ;;  %v4538_v1 = vpop.permute.xlu0 %825 }
  0xf5   : > { %3840 = vpow2.f32 %v527_v30  ;;  %v4504_v19 = vpop.f32.mrf.mxu0  ;;  %v4508_v25 = vpop.f32.mrf.mxu1  ;;  %6935 = vst [vmem:[#allocation30_spill] sm:$0xff] %v4532_v49  ;;  %6937 = vst [vmem:[#allocation32_spill] sm:$0xff] %v4538_v1  ;;  %v1592_v1 = vunpack.c.0.s8 %v1591_v36  ;;  %v4560_v36 = vsub.s32 0, %v1594_v58 }
  0xf7   : > { %v4512_v54 = vpop.f32.mrf.mxu0  ;;  %v4514_v41 = vpop.f32.mrf.mxu1  ;;  %v4556_v33 = vsub.s32 %v1592_v1, %v1594_v58  ;;  %6941 = vst [vmem:[#allocation36_spill] sm:$0xff] %v4560_v36  ;;  %v4578_v36 = vadd.f32 %v4482_v35, %v4490_v27  ;;  %v4597_v35 = vadd.f32 %v4496_v31, %v4494_v34 }
  0xf8   : > { %v4516_v40 = vpop.eup %3824  ;;  %v656_v7 = vpop.permute.xlu0 %655 }
  0xf9   : > { %v4518_v42 = vpop.f32.mrf.mxu0  ;;  %v4520_v44 = vpop.eup %3826  ;;  %v535_v11 = vsel %vm498_vm2, %v4516_v40, 0.0  ;;  %6940 = vst [vmem:[#allocation35_spill] sm:$0xff] %v4556_v33  ;;  %v4574_v1 = vadd.f32 %v4478_v2, %v656_v7  ;;  %v4593_v2 = vadd.f32 %v4492_v32, %v4494_v34  ;;  %v4616_v32 = vadd.f32 %v4508_v25, %v4451_v13 }
  0xfa   : > { %v4524_v20 = vpop.f32.mrf.mxu1  ;;  %v4526_v22 = vpop.eup %3828  ;;  %v536_v23 = vsel %vm498_vm2, %v4520_v44, 0.0 }
  0xfb   : > { %v4530_v30 = vpop.f32.mrf.mxu0  ;;  %v537_v52 = vadd.f32 %v536_v23, %v535_v11  ;;  %v538_v60 = vsel %vm498_vm2, %v4526_v22, 0.0 }
  0xfc   : > { %v1144_v46 = vpop.f32.mrf.mxu1 }
  0xfd   : > { %v4534_v3 = vpop.eup %3830  ;;  %v3675_v21 = vpop.f32.mrf.mxu0  ;;  %v539_v53 = vadd.f32 %v538_v60, %v537_v52 }
  0xfe   : > { %6936 = vst [vmem:[#allocation31_spill] sm:$0xff] %v4534_v3  ;;  %v4540_v8 = vpop.eup %3832  ;;  %v1146_v47 = vpop.f32.mrf.mxu1  ;;  %v4642_v25 = vadd.f32 %v3675_v21, %v4394_v55 }
  0xff   : > { %6938 = vst [vmem:[#allocation33_spill] sm:$0xff] %v4540_v8  ;;  %v4542_v50 = vpop.eup %3834  ;;  %v531_v11 = vadd.f32 %v4540_v8, %v4534_v3  ;;  %v1419_v23 = vpop.f32.mrf.mxu0  ;;  %3842 = vrcp.f32 %v539_v53  ;;  %v4558_v8 = vsub.s32 1, %v1594_v58  ;;  %v4582_v58 = vadd.f32 %v4484_v24, %v4490_v27 }
 0x100   : > { %v4546_v49 = vpop.eup %3836  ;;  %v1148_v43 = vpop.f32.mrf.mxu1  ;;  %v4601_v24 = vadd.f32 %v4498_v16, %v4494_v34  ;;  %v4620_v34 = vadd.f32 %v4512_v54, %v4451_v13  ;;  %v4628_v16 = vadd.f32 %v4518_v42, %v4434_v5  ;;  %v4645_v54 = vadd.f32 %v1146_v47, %v4430_v4 }
 0x101   : > { %v4548_v0 = vpop.eup %3838  ;;  %v532_v59 = vadd.f32 %v4542_v50, %v531_v11  ;;  %v3676_v63 = vpop.f32.mrf.mxu0  ;;  %v4648_v42 = vadd.f32 %v1419_v23, %v4412_v61 }
 0x102   : > { %6939 = vst [vmem:[#allocation34_spill] sm:$0xff] %v4548_v0  ;;  %v4551_v57 = vpop.eup %3840  ;;  %v651_v52 = vpop.permute.xlu1 %650  ;;  %v533_v60 = vadd.f32 %v4548_v0, %v4546_v49  ;;  %v4571_v0 = vadd.f32 %v4472_v14, %v656_v7 }
 0x103   : > { %v1150_v29 = vpop.f32.mrf.mxu1  ;;  %3844 = vrcp.f32 %v532_v59  ;;  %v1422_v26 = vpop.f32.mrf.mxu0  ;;  %v4565_v3 = vadd.f32 %v4462_v28, %v651_v52  ;;  %v4568_v59 = vadd.f32 %v4469_v37, %v651_v52  ;;  %v4586_v28 = vadd.f32 %v4486_v10, %v4490_v27 }
 0x104   : > { %v534_v53 = vadd.f32 %v4551_v57, %v533_v60  ;;  %v4589_v14 = vadd.f32 %v4488_v12, %v651_v52  ;;  %v4604_v10 = vadd.f32 %v4500_v38, %v656_v7  ;;  %v4608_v12 = vadd.f32 %v4502_v18, %v4451_v13 }
 0x105   : > { %v1154_v6 = vpop.f32.mrf.mxu1  ;;  %v3679_v11 = vpop.f32.mrf.mxu0  ;;  %6942 = vst [vmem:[#allocation37_spill] sm:$0xff] %v4565_v3  ;;  %v4612_v27 = vadd.f32 %v4504_v19, %v4430_v4  ;;  %v4624_v7 = vadd.f32 %v4514_v41, %v4453_v15  ;;  %v4632_v38 = vadd.f32 %v4524_v20, %v4453_v15  ;;  %v4636_v19 = vadd.f32 %v4530_v30, %v4453_v15 }
 0x106   : > { %3846 = vrcp.f32 %v534_v53  ;;  %v4639_v13 = vadd.f32 %v1144_v46, %v4430_v4  ;;  %v4651_v20 = vadd.f32 %v1148_v43, %v4434_v5  ;;  %v4654_v52 = vadd.f32 %v3676_v63, %v4396_v56 }
 0x107   : > { %v1156_v60 = vpop.f32.mrf.mxu1  ;;  %v1435_v37 = vpop.f32.mrf.mxu0  ;;  %v4657_v15 = vadd.f32 %v1150_v29, %v4434_v5  ;;  %v4660_v21 = vadd.f32 %v1422_v26, %v4414_v62  ;;  %v4663_v47 = vadd.f32 %v1154_v6, %v4412_v61  ;;  %v4666_v4 = vadd.f32 %v3679_v11, %v4349_v39 }
 0x108   : > { %v4669_v43 = vadd.f32 %v1156_v60, %v4412_v61  ;;  %v4674_v29 = vadd.f32 %v1435_v37, %v4374_v48 }
 0x109   : > { %v1158_v53 = vpop.f32.mrf.mxu1  ;;  %v3680_v31 = vpop.f32.mrf.mxu0  ;;  %6943 = vst [vmem:[#allocation38_spill] sm:$0xff] %v4666_v4 }
 0x10a   : > { %6944 = vst [vmem:[#allocation39_spill] sm:$0xff] %v4674_v29  ;;  %v4678_v6 = vadd.f32 %v1158_v53, %v4414_v62  ;;  %v4681_v11 = vadd.f32 %v3680_v31, %v4365_v45  ;;  %v6952_v45 = vld [vmem:[#allocation33_spill] sm:$0xff] }
 0x10b   : > { %v1160_v18 = vpop.f32.mrf.mxu1  ;;  %v1438_v41 = vpop.f32.mrf.mxu0 }
 0x10c   : > { %v3843_v30 = vpop.eup %3842  ;;  %6945 = vst [vmem:[#allocation40_spill] sm:$0xff] %v4681_v11  ;;  %v4684_v61 = vadd.f32 %v1160_v18, %v4414_v62  ;;  %v4687_v60 = vadd.f32 %v1438_v41, %v4383_v51  ;;  %v6951_v18 = vld [vmem:[#allocation31_spill] sm:$0xff] }
 0x10d   : > { %v1164_v46 = vpop.f32.mrf.mxu1  ;;  %v3683_v23 = vpop.f32.mrf.mxu0  ;;  %v548_v63 = vmul.f32 %v3843_v30, %v4520_v44  ;;  %v545_v5 = vmul.f32 %v3843_v30, %v4516_v40  ;;  %v551_v26 = vmul.f32 %v3843_v30, %v4526_v22 }
 0x10e   : > { %6946 = vst [vmem:[#allocation41_spill] sm:$0xff] %v4684_v61  ;;  %6947 = vst [vmem:[#allocation42_spill] sm:$0xff] %v4687_v60  ;;  %v4689_v40 = vpop.permute.xlu1 %730  ;;  %v4692_v4 = vadd.f32 %v1164_v46, %v4394_v55  ;;  %v4695_v22 = vadd.f32 %v3683_v23, %v4506_v17 }
 0x10f   : > { %v1166_v3 = vpop.f32.mrf.mxu1  ;;  %v1451_v44 = vpop.f32.mrf.mxu0  ;;  %6948 = vst [vmem:[#allocation43_spill] sm:$0xff] %v4689_v40  ;;  %v1589_v29 = vcombine.high %v545_v5, %v545_v5  ;;  %v1610_v30 = vrot.slane %v545_v5, %v4556_v33  ;;  %v1677_v61 = vrot.slane %v548_v63, %v4556_v33 }
 0x110   : > { %v3845_v37 = vpop.eup %3844  ;;  %6949 = vst [vmem:[#allocation44_spill] sm:$0xff] %v4695_v22  ;;  %v4698_v53 = vadd.f32 %v1166_v3, %v4394_v55  ;;  %v4709_v17 = vadd.f32 %v1451_v44, %v4689_v40  ;;  %v4711_v55 = vpop.permute.xlu0 %735  ;;  %v1656_v3 = vcombine.high %v548_v63, %v548_v63  ;;  %v1723_v22 = vcombine.high %v551_v26, %v551_v26  ;;  %v6958_v44 = vld [vmem:[#allocation34_spill] sm:$0xff] }
 0x111   : > { %v1168_v31 = vpop.f32.mrf.mxu1  ;;  %v549_v62 = vmul.f32 %v3845_v37, %v4542_v50  ;;  %v543_v41 = vmul.f32 %v3845_v37, %v6951_v18  ;;  %v546_v60 = vmul.f32 %v3845_v37, %v6952_v45  ;;  %v3684_v11 = vpop.f32.mrf.mxu0  ;;  %6955 = vst [vmem:[#allocation46_spill] sm:$0xff] %v4711_v55  ;;  %v1617_v18 = vrot.slane %v1589_v29, %v4556_v33 }
 0x112   : > { %6950 = vst [vmem:[#allocation45_spill] sm:$0xff] %v4698_v53  ;;  %v4706_v46 = vadd.f32 %v1168_v31, %v4396_v56  ;;  %6954 = vst [vmem:[#allocation33_spill] sm:$0xff] %v4709_v17  ;;  %v6956_v53 = vld [vmem:[#allocation29_spill] sm:$0xff]  ;;  %v4718_v37 = vrot.slane %v551_v26, %v4556_v33 }
 0x113   : > { %v1170_v23 = vpop.f32.mrf.mxu1  ;;  %v3847_v50 = vpop.eup %3846  ;;  %v4715_v5 = vadd.f32 %v3684_v11, %v6956_v53 }
 0x114   : > { %6953 = vst [vmem:[#allocation31_spill] sm:$0xff] %v4706_v46  ;;  %v1454_v45 = vpop.f32.mrf.mxu0  ;;  %6957 = vst [vmem:[#allocation47_spill] sm:$0xff] %v4718_v37  ;;  %v550_v31 = vmul.f32 %v3847_v50, %v4551_v57  ;;  %v544_v46 = vmul.f32 %v3847_v50, %v4546_v49  ;;  %v547_v40 = vmul.f32 %v3847_v50, %v6958_v44  ;;  %v6963_v44 = vld [vmem:[#allocation20_spill] sm:$0xff] }
 0x115   : > { %v4724_v17 = vadd.f32 %v1170_v23, %v4396_v56  ;;  %v1174_v63 = vpop.f32.mrf.mxu1  ;;  %v4730_v53 = vadd.f32 %v1454_v45, %v4711_v55  ;;  %v4733_v37 = vrot.slane %v1656_v3, %v4556_v33  ;;  %v4736_v57 = vrot.slane %v1723_v22, %v4556_v33 }
 0x116   : > { %v4727_v29 = vadd.f32 %v1174_v63, %v4374_v48  ;;  %v3687_v11 = vpop.f32.mrf.mxu0  ;;  %v1587_v49 = vcombine.low %v543_v41, %v544_v46  ;;  %v1588_v26 = vcombine.high %v543_v41, %v544_v46  ;;  %v1654_v50 = vcombine.low %v546_v60, %v547_v40 }
 0x117   : > { %6959 = vst [vmem:[#allocation34_spill] sm:$0xff] %v4724_v17  ;;  %6961 = vst [vmem:[#allocation49_spill] sm:$0xff] %v4733_v37  ;;  %v4739_v56 = vadd.f32 %v3687_v11, %v6963_v44  ;;  %v1176_v23 = vpop.f32.mrf.mxu1  ;;  %v1655_v17 = vcombine.high %v546_v60, %v547_v40  ;;  %v1721_v45 = vcombine.low %v549_v62, %v550_v31 }
 0x118   : > { %6960 = vst [vmem:[#allocation48_spill] sm:$0xff] %v4727_v29  ;;  %6962 = vst [vmem:[#allocation50_spill] sm:$0xff] %v4736_v57  ;;  %v4742_v63 = vadd.f32 %v1176_v23, %v4374_v48  ;;  %v1467_v29 = vpop.f32.mrf.mxu0  ;;  %v1722_v55 = vcombine.high %v549_v62, %v550_v31  ;;  %v1596_v3 = vrot.slane %v1587_v49, %v4556_v33  ;;  %v6964_v57 = vld [vmem:[#allocation24_spill] sm:$0xff] }
 0x119   : > { %v1603_v37 = vrot.slane %v1588_v26, %v4556_v33  ;;  %v1663_v22 = vrot.slane %v1654_v50, %v4556_v33  ;;  %v4748_v41 = vadd.f32 %v1467_v29, %v6964_v57  ;;  %v1178_v46 = vpop.f32.mrf.mxu1  ;;  %v4754_v48 = vrot.slane %v1655_v17, %v4556_v33  ;;  %v6969_v57 = vld [vmem:[#allocation21_spill] sm:$0xff] }
 0x11a   : > { %v4751_v11 = vadd.f32 %v1178_v46, %v4383_v51  ;;  %v3688_v44 = vpop.f32.mrf.mxu0  ;;  %v4757_v60 = vrot.slane %v1721_v45, %v4556_v33  ;;  %v4760_v40 = vrot.slane %v1722_v55, %v4556_v33  ;;  %v1618_v62 = vcombine.low %v1596_v3, %v1610_v30 }
 0x11b   : > { %6965 = vst [vmem:[#allocation51_spill] sm:$0xff] %v4748_v41  ;;  %6966 = vst [vmem:[#allocation52_spill] sm:$0xff] %v4754_v48  ;;  %v1619_v31 = vcombine.high %v1596_v3, %v1610_v30  ;;  %v1621_v49 = vcombine.high %v1603_v37, %v1617_v18  ;;  %v1620_v26 = vcombine.low %v1603_v37, %v1617_v18  ;;  %v1180_v29 = vpop.f32.mrf.mxu1 }
 0x11c   : > { %6967 = vst [vmem:[#allocation53_spill] sm:$0xff] %v4757_v60  ;;  %6968 = vst [vmem:[#allocation54_spill] sm:$0xff] %v4760_v40  ;;  %v1685_v50 = vcombine.low %v1663_v22, %v1677_v61  ;;  %v1686_v23 = vcombine.high %v1663_v22, %v1677_v61  ;;  %v4763_v46 = vadd.f32 %v3688_v44, %v6969_v57  ;;  %v1470_v17 = vpop.f32.mrf.mxu0 }
 0x11d   : > { %v4766_v41 = vadd.f32 %v1180_v29, %v4383_v51  ;;  %v1628_v45 = vrot.slane %v1618_v62, %v4556_v33  ;;  %v1642_v60 = vrot.slane %v1619_v31, %v4556_v33  ;;  %v4771_v55 = vrot.slane %v1621_v49, %v4556_v33  ;;  %v1184_v18 = vpop.f32.mrf.mxu1  ;;  %v6970_v51 = vld [vmem:[#allocation25_spill] sm:$0xff]  ;;  %v6971_v31 = vld [vmem:[#allocation36_spill] sm:$0xff] }
 0x11e   : > { %v4774_v30 = vrot.slane %v1620_v26, %v4556_v33  ;;  %v4777_v61 = vrot.slane %v1686_v23, %v4556_v33  ;;  %v4780_v37 = vrot.slane %v1685_v50, %v4556_v33  ;;  %v4783_v44 = vadd.f32 %v1470_v17, %v6970_v51  ;;  %v4788_v22 = vpop.f32.mrf.mxu0 }
 0x11f   : > { %v4786_v3 = vadd.f32 %v1184_v18, %v4349_v39  ;;  %v1795_v62 = vrot.slane %v1628_v45, %v4558_v8  ;;  %v4792_v49 = vrot.slane %v1628_v45, %v6971_v31  ;;  %v1803_v26 = vrot.slane %v1642_v60, %v6971_v31  ;;  %v4796_v23 = vpop.f32.mrf.mxu1 }
 0x120   : > { %v1811_v29 = vrot.slane %v1642_v60, %v4562_v9  ;;  %6972 = vst [vmem:[#allocation36_spill] sm:$0xff] %v4796_v23  ;;  %v1807_v50 = vrot.slane %v1642_v60, %v4558_v8  ;;  %v1799_v17 = vrot.slane %v1628_v45, %v4562_v9  ;;  %v1650_v57 = vcombine.high %v1628_v45, %v1628_v45  ;;  %v4800_v40 = vpop.f32.mrf.mxu0 }
 0x121   : > { %v1652_v18 = vcombine.high %v1642_v60, %v1642_v60  ;;  %v4803_v51 = vmul.f32 %v1795_v62, %v4568_v59  ;;  %v4807_v33 = vmul.f32 %v4792_v49, %v4571_v0  ;;  %v4810_v39 = vmul.f32 %v1795_v62, %v4574_v1  ;;  %v4815_v48 = vpop.f32.mrf.mxu1 }
 0x122   : > { %v4813_v23 = vmul.f32 %v1803_v26, %v4578_v36  ;;  %v2156_v45 = vmul.f32 %v1811_v29, %v4582_v58  ;;  %v4819_v60 = vmul.f32 %v1807_v50, %v4586_v28  ;;  %v2150_v59 = vmul.f32 %v1799_v17, %v4589_v14  ;;  %v4825_v0 = vpop.f32.mrf.mxu0 }
 0x123   : > { %6973 = vst [vmem:[#allocation55_spill] sm:$0xff] %v4803_v51  ;;  %6974 = vst [vmem:[#allocation56_spill] sm:$0xff] %v4807_v33  ;;  %v4823_v51 = vmul.f32 %v1803_v26, %v4593_v2  ;;  %v2159_v1 = vmul.f32 %v1811_v29, %v4597_v35  ;;  %v4829_v62 = vmul.f32 %v1807_v50, %v4601_v24  ;;  %v4833_v58 = vpop.f32.mrf.mxu1  ;;  %v7004_v33 = vld [vmem:[#allocation45_spill] sm:$0xff] }
 0x124   : > { %6975 = vst [vmem:[#allocation57_spill] sm:$0xff] %v4810_v39  ;;  %6976 = vst [vmem:[#allocation58_spill] sm:$0xff] %v4813_v23  ;;  %v2153_v36 = vmul.f32 %v1799_v17, %v4604_v10  ;;  %v1815_v23 = vrot.slane %v1650_v57, %v6971_v31  ;;  %v4836_v28 = vsel %vm498_vm2, %v2156_v45, 0.0  ;;  %v4839_v14 = vsel %vm498_vm2, %v2150_v59, 0.0  ;;  %v4843_v35 = vpop.f32.mrf.mxu0  ;;  %v7003_v39 = vld [vmem:[#allocation44_spill] sm:$0xff] }
 0x125   : > { %6977 = vst [vmem:[#allocation59_spill] sm:$0xff] %v4819_v60  ;;  %6978 = vst [vmem:[#allocation60_spill] sm:$0xff] %v4823_v51  ;;  %v1835_v2 = vrot.slane %v1652_v18, %v4562_v9  ;;  %v1819_v26 = vrot.slane %v1650_v57, %v4558_v8  ;;  %v4846_v24 = vsel %vm498_vm2, %v2159_v1, 0.0  ;;  %v1823_v50 = vrot.slane %v1650_v57, %v4562_v9  ;;  %v4855_v17 = vpop.f32.mrf.mxu1 }
 0x126   : > { %6979 = vst [vmem:[#allocation61_spill] sm:$0xff] %v4829_v62  ;;  %6980 = vst [vmem:[#allocation62_spill] sm:$0xff] %v4839_v14  ;;  %v4849_v10 = vsel %vm498_vm2, %v2153_v36, 0.0  ;;  %v4852_v29 = vmul.f32 %v1815_v23, %v4608_v12  ;;  %v4862_v62 = vmul.f32 %v1815_v23, %v4624_v7  ;;  %v4865_v51 = vpop.f32.mrf.mxu0 }
 0x127   : > { %6981 = vst [vmem:[#allocation63_spill] sm:$0xff] %v4849_v10  ;;  %v2168_v45 = vmul.f32 %v1835_v2, %v4612_v27  ;;  %v4859_v59 = vmul.f32 %v1819_v26, %v4616_v32  ;;  %v2171_v1 = vmul.f32 %v1835_v2, %v4628_v16  ;;  %v2162_v36 = vmul.f32 %v1823_v50, %v4620_v34  ;;  %v4873_v27 = vpop.f32.mrf.mxu1  ;;  %v7001_v10 = vld [vmem:[#allocation42_spill] sm:$0xff] }
 0x128   : > { %6982 = vst [vmem:[#allocation64_spill] sm:$0xff] %v4852_v29  ;;  %6984 = vst [vmem:[#allocation66_spill] sm:$0xff] %v4862_v62  ;;  %v4869_v12 = vmul.f32 %v1819_v26, %v4632_v38  ;;  %v2165_v57 = vmul.f32 %v1823_v50, %v4636_v19  ;;  %v1827_v29 = vrot.slane %v1652_v18, %v6971_v31  ;;  %v4884_v23 = vpop.f32.mrf.mxu0 }
 0x129   : > { %6983 = vst [vmem:[#allocation65_spill] sm:$0xff] %v4859_v59  ;;  %v4876_v32 = vsel %vm498_vm2, %v2168_v45, 0.0  ;;  %v4879_v7 = vsel %vm498_vm2, %v2171_v1, 0.0  ;;  %v1859_v16 = vrot.slane %v4771_v55, %v4562_v9  ;;  %v1831_v34 = vrot.slane %v1652_v18, %v4558_v8  ;;  %v4897_v50 = vpop.f32.mrf.mxu1  ;;  %v7000_v59 = vld [vmem:[#allocation39_spill] sm:$0xff] }
 0x12a   : > { %6985 = vst [vmem:[#allocation67_spill] sm:$0xff] %v4869_v12  ;;  %v4887_v38 = vsel %vm498_vm2, %v2162_v36, 0.0  ;;  %v4890_v19 = vsel %vm498_vm2, %v2165_v57, 0.0  ;;  %v4893_v2 = vmul.f32 %v1827_v29, %v4639_v13  ;;  %v1847_v26 = vrot.slane %v4774_v30, %v4562_v9  ;;  %v4907_v57 = vpop.f32.mrf.mxu0 }
 0x12b   : > { %v2180_v45 = vmul.f32 %v1859_v16, %v4642_v25  ;;  %v4901_v18 = vmul.f32 %v1831_v34, %v4645_v54  ;;  %v4904_v1 = vmul.f32 %v1827_v29, %v4651_v20  ;;  %v2183_v36 = vmul.f32 %v1859_v16, %v4654_v52  ;;  %v4916_v62 = vpop.f32.mrf.mxu1 }
 0x12c   : > { %6986 = vst [vmem:[#allocation68_spill] sm:$0xff] %v4893_v2  ;;  %v2174_v13 = vmul.f32 %v1847_v26, %v4648_v42  ;;  %v4911_v2 = vmul.f32 %v1831_v34, %v4657_v15  ;;  %v2177_v12 = vmul.f32 %v1847_v26, %v4660_v21  ;;  %v1839_v25 = vrot.slane %v4774_v30, %v6971_v31  ;;  %v4930_v15 = vpop.f32.mrf.mxu0 }
 0x12d   : > { %6987 = vst [vmem:[#allocation69_spill] sm:$0xff] %v4901_v18  ;;  %6988 = vst [vmem:[#allocation70_spill] sm:$0xff] %v4904_v1  ;;  %v4919_v54 = vsel %vm498_vm2, %v2180_v45, 0.0  ;;  %v4922_v20 = vsel %vm498_vm2, %v2183_v36, 0.0  ;;  %v4926_v52 = vcombine.high %v4771_v55, %v4771_v55  ;;  %v1843_v42 = vrot.slane %v4774_v30, %v4558_v8  ;;  %v4943_v26 = vpop.f32.mrf.mxu1 }
 0x12e   : > { %6989 = vst [vmem:[#allocation71_spill] sm:$0xff] %v4911_v2  ;;  %v4933_v21 = vsel %vm498_vm2, %v2174_v13, 0.0  ;;  %v4936_v29 = vsel %vm498_vm2, %v2177_v12, 0.0  ;;  %v4939_v16 = vmul.f32 %v1839_v25, %v4663_v47  ;;  %v1651_v34 = vcombine.high %v4774_v30, %v4774_v30  ;;  %v6993_v2 = vld [vmem:[#allocation41_spill] sm:$0xff]  ;;  %v4956_v1 = vpop.f32.mrf.mxu0 }
 0x12f   : > { %v1883_v45 = vrot.slane %v4926_v52, %v4562_v9  ;;  %v4948_v36 = vmul.f32 %v1843_v42, %v4669_v43  ;;  %v4951_v13 = vmul.f32 %v1839_v25, %v4678_v6  ;;  %v4954_v12 = vmul.f32 %v1843_v42, %v6993_v2  ;;  %6995 = vst [vmem:[#allocation75_spill] sm:$0xff] %v4956_v1  ;;  %v6997_v6 = vld [vmem:[#allocation38_spill] sm:$0xff] }
 0x130   : > { %6990 = vst [vmem:[#allocation72_spill] sm:$0xff] %v4939_v16  ;;  %v1871_v47 = vrot.slane %v1651_v34, %v4562_v9  ;;  %v1851_v30 = vrot.slane %v4771_v55, %v6971_v31  ;;  %v1907_v16 = vrot.slane %v4777_v61, %v4562_v9  ;;  %v1855_v43 = vrot.slane %v4771_v55, %v4558_v8  ;;  %v4974_v18 = vpop.f32.mrf.mxu0 }
 0x131   : > { %6991 = vst [vmem:[#allocation73_spill] sm:$0xff] %v4948_v36  ;;  %6992 = vst [vmem:[#allocation74_spill] sm:$0xff] %v4951_v13  ;;  %v4965_v36 = vpop.f32.mrf.mxu1  ;;  %v2192_v25 = vmul.f32 %v1883_v45, %v6997_v6  ;;  %v6998_v13 = vld [vmem:[#allocation40_spill] sm:$0xff]  ;;  %v1863_v42 = vrot.slane %v1651_v34, %v6971_v31 }
 0x132   : > { %6994 = vst [vmem:[#allocation41_spill] sm:$0xff] %v4954_v12  ;;  %6996 = vst [vmem:[#allocation76_spill] sm:$0xff] %v4965_v36  ;;  %v2195_v2 = vmul.f32 %v1883_v45, %v6998_v13  ;;  %v4972_v12 = vcombine.high %v4777_v61, %v4777_v61  ;;  %v2186_v60 = vmul.f32 %v1871_v47, %v7000_v59 }
 0x133   : > { %6999 = vst [vmem:[#allocation38_spill] sm:$0xff] %v4974_v18  ;;  %v2189_v14 = vmul.f32 %v1871_v47, %v7001_v10  ;;  %v4979_v55 = vmul.f32 %v1851_v30, %v4692_v4  ;;  %v2204_v36 = vmul.f32 %v1907_v16, %v7003_v39  ;;  %v4982_v6 = vpop.f32.mrf.mxu1  ;;  %v4985_v45 = vsel %vm498_vm2, %v2192_v25, 0.0  ;;  %v7006_v18 = vld [vmem:[#allocation31_spill] sm:$0xff]  ;;  %v5004_v25 = vpop.f32.mrf.mxu0 }
 0x134   : > { %v4988_v13 = vsel %vm498_vm2, %v2195_v2, 0.0  ;;  %v4991_v1 = vmul.f32 %v1855_v43, %v7004_v33  ;;  %v4994_v59 = vmul.f32 %v1851_v30, %v7006_v18  ;;  %v4997_v10 = vsel %vm498_vm2, %v2186_v60, 0.0  ;;  %v7010_v30 = vld [vmem:[#allocation48_spill] sm:$0xff] }
 0x135   : > { %7002 = vst [vmem:[#allocation40_spill] sm:$0xff] %v4979_v55  ;;  %v5000_v4 = vsel %vm498_vm2, %v2189_v14, 0.0  ;;  %v2315_v39 = vsel %vm498_vm2, %v2204_v36, 0.0  ;;  %v2207_v47 = vmul.f32 %v1907_v16, %v4715_v5  ;;  %v5006_v2 = vpop.f32.mrf.mxu1  ;;  %v5015_v60 = vmul.f32 %v1863_v42, %v7010_v30 }
 0x136   : > { %7005 = vst [vmem:[#allocation39_spill] sm:$0xff] %v4991_v1  ;;  %7007 = vst [vmem:[#allocation42_spill] sm:$0xff] %v4994_v59  ;;  %v5009_v33 = vadd.f32 %v2315_v39, %v4836_v28  ;;  %v7008_v1 = vld [vmem:[#allocation34_spill] sm:$0xff]  ;;  %v1931_v14 = vrot.slane %v4972_v12, %v4562_v9  ;;  %v1867_v5 = vrot.slane %v1651_v34, %v4558_v8 }
 0x137   : > { %v5012_v18 = vmul.f32 %v1855_v43, %v7008_v1  ;;  %7011 = vst [vmem:[#allocation45_spill] sm:$0xff] %v5015_v60  ;;  %v2324_v36 = vsel %vm498_vm2, %v2207_v47, 0.0  ;;  %v5023_v16 = vcombine.high %v4780_v37, %v4780_v37  ;;  %v5026_v28 = vmul.f32 %v1863_v42, %v4751_v11  ;;  %v5028_v39 = vpop.f32.mrf.mxu1  ;;  %v5047_v42 = vpop.f32.mrf.mxu0 }
 0x138   : > { %v5031_v1 = vadd.f32 %v2324_v36, %v4846_v24  ;;  %v2216_v43 = vmul.f32 %v1931_v14, %v4739_v56  ;;  %v2219_v30 = vmul.f32 %v1931_v14, %v4763_v46  ;;  %v1895_v47 = vrot.slane %v4780_v37, %v4562_v9  ;;  %v7015_v36 = vld [vmem:[#allocation33_spill] sm:$0xff] }
 0x139   : > { %7009 = vst [vmem:[#allocation44_spill] sm:$0xff] %v5012_v18  ;;  %7012 = vst [vmem:[#allocation31_spill] sm:$0xff] %v5026_v28  ;;  %v5038_v34 = vmul.f32 %v1867_v5, %v4742_v63  ;;  %v1919_v60 = vrot.slane %v5023_v16, %v4562_v9  ;;  %v5043_v11 = vmul.f32 %v1867_v5, %v4766_v41  ;;  %v5049_v56 = vpop.f32.mrf.mxu1  ;;  %v7017_v41 = vld [vmem:[#allocation51_spill] sm:$0xff]  ;;  %v5082_v55 = vpop.f32.mrf.mxu0 }
 0x13a   : > { %v1875_v24 = vrot.slane %v4926_v52, %v6971_v31  ;;  %v2351_v46 = vsel %vm498_vm2, %v2216_v43, 0.0  ;;  %v2360_v14 = vsel %vm498_vm2, %v2219_v30, 0.0  ;;  %v2198_v63 = vmul.f32 %v1895_v47, %v7015_v36  ;;  %v7023_v36 = vld [vmem:[#allocation2_spill] sm:$0xff] }
 0x13b   : > { %7013 = vst [vmem:[#allocation34_spill] sm:$0xff] %v5038_v34  ;;  %7014 = vst [vmem:[#allocation48_spill] sm:$0xff] %v5043_v11  ;;  %v2201_v28 = vmul.f32 %v1895_v47, %v4730_v53  ;;  %v5056_v34 = vadd.f32 %v2351_v46, %v4876_v32  ;;  %v2210_v5 = vmul.f32 %v1919_v60, %v7017_v41  ;;  %v5063_v59 = vpop.f32.mrf.mxu1  ;;  %v7020_v32 = vld [vmem:[#allocation12_spill] sm:$0xff] }
 0x13c   : > { %v5060_v11 = vadd.f32 %v2360_v14, %v4879_v7  ;;  %v2213_v18 = vmul.f32 %v1919_v60, %v4783_v44  ;;  %v5066_v43 = vsel %vm498_vm2, %v2198_v63, 0.0  ;;  %v5072_v53 = vmul.f32 %v1875_v24, %v4786_v3  ;;  %v7021_v14 = vld [vmem:[#allocation49_spill] sm:$0xff]  ;;  %v7022_v44 = vld [vmem:[#allocation52_spill] sm:$0xff] }
 0x13d   : > { %7016 = vst [vmem:[#allocation33_spill] sm:$0xff] %v5056_v34  ;;  %v5069_v30 = vsel %vm498_vm2, %v2201_v28, 0.0  ;;  %v1492_v47 = vadd.f32 %v4788_v22, %v7020_v32  ;;  %v2333_v46 = vsel %vm498_vm2, %v2210_v5, 0.0  ;;  %v1688_v60 = vcombine.high %v7022_v44, %v7021_v14  ;;  %v7024_v41 = vld [vmem:[#allocation36_spill] sm:$0xff]  ;;  %v5084_v28 = vpop.f32.mrf.mxu1  ;;  %v7028_v32 = vld [vmem:[#allocation35_spill] sm:$0xff] }
 0x13e   : > { %7018 = vst [vmem:[#allocation51_spill] sm:$0xff] %v5060_v11  ;;  %7019 = vst [vmem:[#allocation77_spill] sm:$0xff] %v5072_v53  ;;  %v2342_v7 = vsel %vm498_vm2, %v2213_v18, 0.0  ;;  %v1187_v63 = vadd.f32 %v7024_v41, %v7023_v36  ;;  %v5087_v3 = vadd.f32 %v2333_v46, %v4887_v38  ;;  %v1879_v22 = vrot.slane %v4926_v52, %v4558_v8  ;;  %v7027_v18 = vld [vmem:[#allocation16_spill] sm:$0xff]  ;;  %v7031_v38 = vld [vmem:[#allocation13_spill] sm:$0xff] }
 0x13f   : > { %v5090_v53 = vadd.f32 %v2342_v7, %v4890_v19  ;;  %v1484_v5 = vadd.f32 %v4800_v40, %v7027_v18  ;;  %v5097_v11 = vrot.slane %v1688_v60, %v7028_v32  ;;  %v1687_v36 = vcombine.low %v7022_v44, %v7021_v14  ;;  %v7030_v41 = vld [vmem:[#allocation4_spill] sm:$0xff]  ;;  %v5105_v19 = vpop.f32.mrf.mxu1  ;;  %v7033_v40 = vld [vmem:[#allocation17_spill] sm:$0xff]  ;;  %v7034_v18 = vld [vmem:[#allocation43_spill] sm:$0xff] }
 0x140   : > { %7025 = vst [vmem:[#allocation49_spill] sm:$0xff] %v5087_v3  ;;  %v1189_v34 = vadd.f32 %v4815_v48, %v7030_v41  ;;  %v1495_v46 = vadd.f32 %v4825_v0, %v7031_v38  ;;  %v5107_v7 = vmul.f32 %v1879_v22, %v1187_v63  ;;  %v1191_v52 = vadd.f32 %v4833_v58, %v7030_v41  ;;  %v5124_v63 = vpop.f32.mrf.mxu0 }
 0x141   : > { %7026 = vst [vmem:[#allocation52_spill] sm:$0xff] %v5090_v53  ;;  %7029 = vst [vmem:[#allocation2_spill] sm:$0xff] %v5097_v11  ;;  %v1487_v60 = vadd.f32 %v4843_v35, %v7033_v40  ;;  %v1195_v53 = vadd.f32 %v4855_v17, %v7034_v18  ;;  %v1955_v14 = vrot.slane %v5097_v11, %v4562_v9  ;;  %v5126_v58 = vpop.f32.mrf.mxu1  ;;  %v7037_v35 = vld [vmem:[#allocation37_spill] sm:$0xff] }
 0x142   : > { %7032 = vst [vmem:[#allocation36_spill] sm:$0xff] %v5107_v7  ;;  %v5118_v48 = vrot.slane %v1687_v36, %v7028_v32  ;;  %v5120_v0 = vmul.f32 %v1875_v24, %v1189_v34  ;;  %v1887_v44 = vrot.slane %v4780_v37, %v6971_v31  ;;  %v5128_v41 = vmul.f32 %v1879_v22, %v1191_v52  ;;  %v7038_v7 = vld [vmem:[#allocation3_spill] sm:$0xff]  ;;  %v7040_v52 = vld [vmem:[#allocation8_spill] sm:$0xff] }
 0x143   : > { %v2148_v17 = vmul.f32 %v4792_v49, %v7037_v35  ;;  %v1508_v38 = vadd.f32 %v4865_v51, %v7038_v7  ;;  %v5136_v36 = vcombine.high %v5097_v11, %v5097_v11  ;;  %v2228_v34 = vmul.f32 %v1955_v14, %v1492_v47  ;;  %v5140_v3 = vpop.f32.mrf.mxu1 }
 0x144   : > { %7035 = vst [vmem:[#allocation35_spill] sm:$0xff] %v5120_v0  ;;  %7036 = vst [vmem:[#allocation4_spill] sm:$0xff] %v5128_v41  ;;  %v1943_v24 = vrot.slane %v5118_v48, %v4562_v9  ;;  %v2231_v0 = vmul.f32 %v1955_v14, %v1495_v46  ;;  %v2196_v40 = vmul.f32 %v1887_v44, %v1195_v53  ;;  %v5152_v14 = vpop.f32.mrf.mxu0 }
 0x145   : > { %7039 = vst [vmem:[#allocation43_spill] sm:$0xff] %v5136_v36  ;;  %v1979_v22 = vrot.slane %v5136_v36, %v4562_v9  ;;  %v1197_v49 = vadd.f32 %v4873_v27, %v7034_v18  ;;  %v1891_v51 = vrot.slane %v4780_v37, %v4558_v8  ;;  %v1500_v35 = vadd.f32 %v4884_v23, %v7040_v52  ;;  %v5154_v7 = vpop.f32.mrf.mxu1  ;;  %v7054_v52 = vld [vmem:[#allocation47_spill] sm:$0xff] }
 0x146   : > { %v2387_v47 = vsel %vm498_vm2, %v2228_v34, 0.0  ;;  %v2222_v41 = vmul.f32 %v1943_v24, %v1484_v5  ;;  %v2396_v46 = vsel %vm498_vm2, %v2231_v0, 0.0  ;;  %v2225_v53 = vmul.f32 %v1943_v24, %v1487_v60  ;;  %v7045_v24 = vld [vmem:[#allocation55_spill] sm:$0xff] }
 0x147   : > { %v5157_v36 = vadd.f32 %v2387_v47, %v4919_v54  ;;  %v5160_v27 = vadd.f32 %v2396_v46, %v4922_v20  ;;  %v5162_v37 = vadd.f32 %v2196_v40, %v2148_v17  ;;  %v2240_v18 = vmul.f32 %v1979_v22, %v1508_v38  ;;  %v5170_v0 = vpop.f32.mrf.mxu1  ;;  %v7043_v38 = vld [vmem:[#allocation46_spill] sm:$0xff] }
 0x148   : > { %v2369_v23 = vsel %vm498_vm2, %v2222_v41, 0.0  ;;  %v2378_v5 = vsel %vm498_vm2, %v2225_v53, 0.0  ;;  %v2197_v34 = vmul.f32 %v1891_v51, %v1197_v49  ;;  %v5168_v60 = vcombine.high %v5118_v48, %v5118_v48  ;;  %v7047_v46 = vld [vmem:[#allocation6_spill] sm:$0xff]  ;;  %v5191_v53 = vpop.f32.mrf.mxu0 }
 0x149   : > { %7041 = vst [vmem:[#allocation37_spill] sm:$0xff] %v5162_v37  ;;  %v5173_v54 = vadd.f32 %v2369_v23, %v4933_v21  ;;  %v5176_v20 = vadd.f32 %v2378_v5, %v4936_v29  ;;  %v2423_v40 = vsel %vm498_vm2, %v2240_v18, 0.0  ;;  %v1199_v41 = vadd.f32 %v4897_v50, %v7043_v38  ;;  %v5193_v29 = vpop.f32.mrf.mxu1  ;;  %v7048_v23 = vld [vmem:[#allocation10_spill] sm:$0xff]  ;;  %v7049_v5 = vld [vmem:[#allocation28_spill] sm:$0xff]  ;;  %v7051_v37 = vld [vmem:[#allocation75_spill] sm:$0xff] }
 0x14a   : > { %7042 = vst [vmem:[#allocation78_spill] sm:$0xff] %v5168_v60  ;;  %v5182_v17 = vadd.f32 %v2423_v40, %v4985_v45  ;;  %v5185_v49 = vadd.f32 %v2197_v34, %v7045_v24  ;;  %v1967_v47 = vrot.slane %v5168_v60, %v4562_v9  ;;  %v1511_v21 = vadd.f32 %v4907_v57, %v7047_v46  ;;  %v7050_v57 = vld [vmem:[#allocation30_spill] sm:$0xff] }
 0x14b   : > { %v2199_v18 = vmul.f32 %v1887_v44, %v1199_v41  ;;  %v1201_v50 = vadd.f32 %v4916_v62, %v7043_v38  ;;  %v1503_v45 = vadd.f32 %v4930_v15, %v7048_v23  ;;  %v1205_v34 = vadd.f32 %v4943_v26, %v7049_v5  ;;  %v5205_v60 = vpop.f32.mrf.mxu1  ;;  %v7052_v44 = vld [vmem:[#allocation56_spill] sm:$0xff]  ;;  %v7055_v15 = vld [vmem:[#allocation53_spill] sm:$0xff] }
 0x14c   : > { %7044 = vst [vmem:[#allocation46_spill] sm:$0xff] %v5182_v17  ;;  %7046 = vst [vmem:[#allocation55_spill] sm:$0xff] %v5185_v49  ;;  %v2234_v40 = vmul.f32 %v1967_v47, %v1500_v35  ;;  %v2243_v24 = vmul.f32 %v1979_v22, %v1511_v21  ;;  %v1899_v49 = vrot.slane %v4777_v61, %v6971_v31  ;;  %v5212_v17 = vpop.permute.xlu1 %810  ;;  %v7057_v21 = vld [vmem:[#allocation76_spill] sm:$0xff] }
 0x14d   : > { %v1524_v46 = vadd.f32 %v7051_v37, %v7050_v57  ;;  %v5208_v41 = vadd.f32 %v2199_v18, %v7052_v44  ;;  %v2200_v62 = vmul.f32 %v1891_v51, %v1201_v50  ;;  %v2237_v38 = vmul.f32 %v1967_v47, %v1503_v45  ;;  %7056 = vst [vmem:[#allocation75_spill] sm:$0xff] %v5212_v17  ;;  %v5218_v57 = vpop.f32.mrf.mxu0  ;;  %v5220_v11 = vpop.f32.mrf.mxu1  ;;  %v7058_v18 = vld [vmem:[#allocation57_spill] sm:$0xff] }
 0x14e   : > { %v1753_v23 = vcombine.high %v7055_v15, %v7054_v52  ;;  %v2405_v26 = vsel %vm498_vm2, %v2234_v40, 0.0  ;;  %v2432_v22 = vsel %vm498_vm2, %v2243_v24, 0.0  ;;  %v2202_v35 = vmul.f32 %v1899_v49, %v1205_v34  ;;  %v7060_v40 = vld [vmem:[#allocation58_spill] sm:$0xff]  ;;  %v5243_v44 = vpop.permute.xlu0 %815 }
 0x14f   : > { %7053 = vst [vmem:[#allocation28_spill] sm:$0xff] %v5208_v41  ;;  %v1207_v37 = vadd.f32 %v7057_v21, %v7049_v5  ;;  %v5223_v51 = vadd.f32 %v2405_v26, %v4997_v10  ;;  %v5226_v47 = vadd.f32 %v2432_v22, %v4988_v13  ;;  %v5229_v50 = vadd.f32 %v2200_v62, %v7058_v18  ;;  %v5245_v13 = vpop.f32.mrf.mxu1  ;;  %v7062_v62 = vld [vmem:[#allocation38_spill] sm:$0xff]  ;;  %v7065_v18 = vld [vmem:[#allocation32_spill] sm:$0xff] }
 0x150   : > { %v2414_v45 = vsel %vm498_vm2, %v2237_v38, 0.0  ;;  %v5236_v5 = vadd.f32 %v2202_v35, %v7060_v40  ;;  %v5239_v24 = vrot.slane %v1753_v23, %v7028_v32  ;;  %v1903_v10 = vrot.slane %v4777_v61, %v4558_v8  ;;  %v7063_v38 = vld [vmem:[#allocation62_spill] sm:$0xff]  ;;  %v7064_v35 = vld [vmem:[#allocation29_spill] sm:$0xff] }
 0x151   : > { %7059 = vst [vmem:[#allocation56_spill] sm:$0xff] %v5229_v50  ;;  %v5233_v34 = vadd.f32 %v2414_v45, %v5000_v4  ;;  %v1516_v26 = vadd.f32 %v7062_v62, %v5212_v17  ;;  %v1752_v4 = vcombine.low %v7055_v15, %v7054_v52  ;;  %v2298_v22 = vadd.f32 %v5066_v43, %v7063_v38  ;;  %v5261_v62 = vpop.f32.mrf.mxu0  ;;  %v7066_v15 = vld [vmem:[#allocation63_spill] sm:$0xff] }
 0x152   : > { %7061 = vst [vmem:[#allocation47_spill] sm:$0xff] %v5236_v5  ;;  %v1209_v23 = vadd.f32 %v4982_v6, %v7064_v35  ;;  %v2003_v21 = vrot.slane %v5239_v24, %v4562_v9  ;;  %v2203_v61 = vmul.f32 %v1903_v10, %v1207_v37  ;;  %v1527_v45 = vadd.f32 %v5004_v25, %v7065_v18  ;;  %v5263_v5 = vpop.f32.mrf.mxu1  ;;  %v7067_v50 = vld [vmem:[#allocation59_spill] sm:$0xff] }
 0x153   : > { %v1211_v40 = vadd.f32 %v5006_v2, %v7064_v35  ;;  %v5266_v52 = vrot.slane %v1752_v4, %v7028_v32  ;;  %v1519_v6 = vadd.f32 %v5047_v42, %v5243_v44  ;;  %v2307_v37 = vadd.f32 %v5069_v30, %v7066_v15  ;;  %v7068_v4 = vld [vmem:[#allocation60_spill] sm:$0xff] }
 0x154   : > { %v2205_v43 = vmul.f32 %v1899_v49, %v1209_v23  ;;  %v2252_v38 = vmul.f32 %v2003_v21, %v1524_v46  ;;  %v5273_v25 = vadd.f32 %v2203_v61, %v7067_v50  ;;  %v2255_v41 = vmul.f32 %v2003_v21, %v1527_v45  ;;  %v5275_v35 = vpop.f32.mrf.mxu1  ;;  %v7070_v49 = vld [vmem:[#allocation24_spill] sm:$0xff]  ;;  %v7071_v23 = vld [vmem:[#allocation61_spill] sm:$0xff]  ;;  %v7073_v21 = vld [vmem:[#allocation22_spill] sm:$0xff]  ;;  %v3708_v45 = vpop.f32.mrf.mxu0 }
 0x155   : > { %v2206_v2 = vmul.f32 %v1903_v10, %v1211_v40  ;;  %v1991_v18 = vrot.slane %v5266_v52, %v4562_v9  ;;  %v1215_v42 = vadd.f32 %v5028_v39, %v7070_v49  ;;  %v1911_v30 = vrot.slane %v5023_v16, %v6971_v31 }
 0x156   : > { %v5280_v17 = vadd.f32 %v2205_v43, %v7068_v4  ;;  %v2317_v46 = vsel %vm498_vm2, %v2252_v38, 0.0  ;;  %v2326_v50 = vsel %vm498_vm2, %v2255_v41, 0.0  ;;  %v1540_v61 = vadd.f32 %v5082_v55, %v7073_v21  ;;  %v5293_v40 = vpop.f32.mrf.mxu1 }
 0x157   : > { %v5289_v10 = vadd.f32 %v2206_v2, %v7071_v23  ;;  %v5296_v43 = vadd.f32 %v2317_v46, %v5009_v33  ;;  %v2246_v39 = vmul.f32 %v1991_v18, %v1516_v26  ;;  %v5299_v15 = vadd.f32 %v2326_v50, %v5031_v1  ;;  %v7077_v1 = vld [vmem:[#allocation26_spill] sm:$0xff]  ;;  %v1550_v50 = vpop.f32.mrf.mxu0 }
 0x158   : > { %7069 = vst [vmem:[#allocation53_spill] sm:$0xff] %v5280_v17  ;;  %v2249_v4 = vmul.f32 %v1991_v18, %v1519_v6  ;;  %v2208_v38 = vmul.f32 %v1911_v30, %v1215_v42  ;;  %v5303_v41 = vcombine.high %v5239_v24, %v5239_v24  ;;  %v1217_v2 = vadd.f32 %v5049_v56, %v7070_v49  ;;  %v5309_v23 = vpop.f32.mrf.mxu1  ;;  %v7080_v56 = vld [vmem:[#allocation64_spill] sm:$0xff] }
 0x159   : > { %7072 = vst [vmem:[#allocation76_spill] sm:$0xff] %v5289_v10  ;;  %7074 = vst [vmem:[#allocation57_spill] sm:$0xff] %v5296_v43  ;;  %v1915_v55 = vrot.slane %v5023_v16, %v4558_v8  ;;  %v2299_v33 = vsel %vm498_vm2, %v2246_v39, 0.0  ;;  %v1532_v18 = vadd.f32 %v5124_v63, %v7077_v1  ;;  %v5317_v6 = vcombine.high %v5266_v52, %v5266_v52 }
 0x15a   : > { %7075 = vst [vmem:[#allocation58_spill] sm:$0xff] %v5299_v15  ;;  %7076 = vst [vmem:[#allocation38_spill] sm:$0xff] %v5303_v41  ;;  %v2308_v26 = vsel %vm498_vm2, %v2249_v4, 0.0  ;;  %v5319_v42 = vadd.f32 %v2299_v33, %v2298_v22  ;;  %v5324_v49 = vadd.f32 %v2208_v38, %v7080_v56  ;;  %v2027_v16 = vrot.slane %v5303_v41, %v4562_v9  ;;  %v5328_v39 = vpop.f32.mrf.mxu1  ;;  %v7082_v15 = vld [vmem:[#allocation25_spill] sm:$0xff]  ;;  %v7083_v22 = vld [vmem:[#allocation23_spill] sm:$0xff] }
 0x15b   : > { %v5321_v46 = vadd.f32 %v2308_v26, %v2307_v37  ;;  %v2209_v4 = vmul.f32 %v1915_v55, %v1217_v2  ;;  %v2015_v63 = vrot.slane %v5317_v6, %v4562_v9  ;;  %v1219_v43 = vadd.f32 %v5063_v59, %v7082_v15  ;;  %v7084_v26 = vld [vmem:[#allocation27_spill] sm:$0xff]  ;;  %v7086_v41 = vld [vmem:[#allocation65_spill] sm:$0xff] }
 0x15c   : > { %7078 = vst [vmem:[#allocation62_spill] sm:$0xff] %v5319_v42  ;;  %7081 = vst [vmem:[#allocation63_spill] sm:$0xff] %v5324_v49  ;;  %v1543_v37 = vadd.f32 %v5152_v14, %v7083_v22  ;;  %v2264_v33 = vmul.f32 %v2027_v16, %v1540_v61  ;;  %v1221_v38 = vadd.f32 %v5084_v28, %v7082_v15  ;;  %v5342_v2 = vpop.f32.mrf.mxu1  ;;  %v3711_v15 = vpop.f32.mrf.mxu0 }
 0x15d   : > { %7079 = vst [vmem:[#allocation29_spill] sm:$0xff] %v5321_v46  ;;  %v1535_v56 = vadd.f32 %v5191_v53, %v7084_v26  ;;  %v7085_v46 = vld [vmem:[#allocation20_spill] sm:$0xff]  ;;  %v5345_v49 = vadd.f32 %v2209_v4, %v7086_v41  ;;  %v2258_v21 = vmul.f32 %v2015_v63, %v1532_v18  ;;  %v2211_v59 = vmul.f32 %v1911_v30, %v1219_v43  ;;  %v7087_v26 = vld [vmem:[#allocation33_spill] sm:$0xff]  ;;  %v7089_v41 = vld [vmem:[#allocation66_spill] sm:$0xff] }
 0x15e   : > { %v1225_v42 = vadd.f32 %v5105_v19, %v7085_v46  ;;  %v2267_v10 = vmul.f32 %v2027_v16, %v1543_v37  ;;  %v2353_v14 = vsel %vm498_vm2, %v2264_v33, 0.0  ;;  %v2212_v61 = vmul.f32 %v1915_v55, %v1221_v38  ;;  %v5350_v53 = vpop.f32.mrf.mxu1  ;;  %v7091_v43 = vld [vmem:[#allocation49_spill] sm:$0xff]  ;;  %v7093_v55 = vld [vmem:[#allocation51_spill] sm:$0xff] }
 0x15f   : > { %v2261_v22 = vmul.f32 %v2015_v63, %v1535_v56  ;;  %v1923_v28 = vrot.slane %v4972_v12, %v6971_v31  ;;  %v5353_v19 = vadd.f32 %v2353_v14, %v7087_v26  ;;  %v2335_v17 = vsel %vm498_vm2, %v2258_v21, 0.0  ;;  %v7095_v63 = vld [vmem:[#allocation67_spill] sm:$0xff]  ;;  %v7097_v26 = vld [vmem:[#allocation52_spill] sm:$0xff]  ;;  %v7100_v14 = vld [vmem:[#allocation50_spill] sm:$0xff] }
 0x160   : > { %v5357_v4 = vadd.f32 %v2211_v59, %v7089_v41  ;;  %v2362_v30 = vsel %vm498_vm2, %v2267_v10, 0.0  ;;  %v5361_v18 = vadd.f32 %v2335_v17, %v7091_v43  ;;  %v5367_v37 = vadd.f32 %v2212_v61, %v7095_v63  ;;  %v5370_v38 = vpop.f32.mrf.mxu1  ;;  %v7099_v59 = vld [vmem:[#allocation14_spill] sm:$0xff]  ;;  %v1563_v63 = vpop.f32.mrf.mxu0 }
 0x161   : > { %7088 = vst [vmem:[#allocation59_spill] sm:$0xff] %v5353_v19  ;;  %v5364_v16 = vadd.f32 %v2362_v30, %v7093_v55  ;;  %v2344_v33 = vsel %vm498_vm2, %v2261_v22, 0.0  ;;  %v2214_v56 = vmul.f32 %v1923_v28, %v1225_v42  ;;  %v1556_v10 = vadd.f32 %v5218_v57, %v7099_v59  ;;  %v7101_v17 = vld [vmem:[#allocation54_spill] sm:$0xff] }
 0x162   : > { %7090 = vst [vmem:[#allocation60_spill] sm:$0xff] %v5357_v4  ;;  %7092 = vst [vmem:[#allocation24_spill] sm:$0xff] %v5361_v18  ;;  %v5373_v21 = vadd.f32 %v2344_v33, %v7097_v26  ;;  %v1755_v41 = vcombine.high %v7101_v17, %v7100_v14  ;;  %v1227_v30 = vadd.f32 %v5126_v58, %v7085_v46  ;;  %v7102_v43 = vld [vmem:[#allocation18_spill] sm:$0xff]  ;;  %v5387_v42 = vpop.f32.mrf.mxu1  ;;  %v7103_v33 = vld [vmem:[#allocation68_spill] sm:$0xff] }
 0x163   : > { %7094 = vst [vmem:[#allocation61_spill] sm:$0xff] %v5364_v16  ;;  %7096 = vst [vmem:[#allocation26_spill] sm:$0xff] %v5367_v37  ;;  %v1927_v61 = vrot.slane %v4972_v12, %v4558_v8  ;;  %v1548_v22 = vadd.f32 %v5261_v62, %v7102_v43  ;;  %v1754_v55 = vcombine.low %v7101_v17, %v7100_v14  ;;  %v7106_v46 = vld [vmem:[#allocation15_spill] sm:$0xff] }
 0x164   : > { %7098 = vst [vmem:[#allocation64_spill] sm:$0xff] %v5373_v21  ;;  %v5390_v57 = vadd.f32 %v2214_v56, %v7103_v33  ;;  %v5393_v26 = vrot.slane %v1755_v41, %v7028_v32  ;;  %v7105_v21 = vld [vmem:[#allocation21_spill] sm:$0xff]  ;;  %v1559_v12 = vadd.f32 %v3708_v45, %v7106_v46  ;;  %v7107_v17 = vld [vmem:[#allocation19_spill] sm:$0xff]  ;;  %v5404_v19 = vpop.f32.mrf.mxu1  ;;  %v7108_v33 = vld [vmem:[#allocation16_spill] sm:$0xff]  ;;  %v1935_v45 = vrot.slane %v5118_v48, %v6971_v31  ;;  %v3712_v46 = vpop.f32.mrf.mxu0 }
 0x165   : > { %v1229_v58 = vadd.f32 %v5140_v3, %v7105_v21  ;;  %v2215_v18 = vmul.f32 %v1927_v61, %v1227_v30  ;;  %v5399_v62 = vrot.slane %v1754_v55, %v7028_v32  ;;  %v1231_v14 = vadd.f32 %v5154_v7, %v7105_v21  ;;  %v7109_v30 = vld [vmem:[#allocation69_spill] sm:$0xff]  ;;  %v7112_v37 = vld [vmem:[#allocation71_spill] sm:$0xff] }
 0x166   : > { %7104 = vst [vmem:[#allocation25_spill] sm:$0xff] %v5390_v57  ;;  %v1551_v16 = vadd.f32 %v1550_v50, %v7107_v17  ;;  %v2051_v56 = vrot.slane %v5393_v26, %v4562_v9  ;;  %v1235_v3 = vadd.f32 %v5170_v0, %v7108_v33  ;;  %v7110_v50 = vld [vmem:[#allocation5_spill] sm:$0xff]  ;;  %v5418_v59 = vpop.f32.mrf.mxu1 }
 0x167   : > { %v2217_v41 = vmul.f32 %v1923_v28, %v1229_v58  ;;  %v5413_v32 = vadd.f32 %v2215_v18, %v7109_v30  ;;  %v2039_v7 = vrot.slane %v5399_v62, %v4562_v9  ;;  %v2218_v21 = vmul.f32 %v1927_v61, %v1231_v14  ;;  %v7111_v28 = vld [vmem:[#allocation70_spill] sm:$0xff]  ;;  %v7114_v14 = vld [vmem:[#allocation72_spill] sm:$0xff] }
 0x168   : > { %v1572_v55 = vadd.f32 %v3711_v15, %v7110_v50  ;;  %v2276_v17 = vmul.f32 %v2051_v56, %v1556_v10  ;;  %v2279_v0 = vmul.f32 %v2051_v56, %v1559_v12  ;;  %v2220_v57 = vmul.f32 %v1935_v45, %v1235_v3  ;;  %v5430_v61 = vpop.f32.mrf.mxu1  ;;  %v1566_v3 = vpop.f32.mrf.mxu0 }
 0x169   : > { %v5421_v58 = vadd.f32 %v2217_v41, %v7111_v28  ;;  %v2270_v43 = vmul.f32 %v2039_v7, %v1548_v22  ;;  %v5424_v4 = vadd.f32 %v2218_v21, %v7112_v37  ;;  %v2273_v18 = vmul.f32 %v2039_v7, %v1551_v16  ;;  %v7117_v21 = vld [vmem:[#allocation17_spill] sm:$0xff] }
 0x16a   : > { %v5428_v30 = vcombine.high %v5393_v26, %v5393_v26  ;;  %v2389_v15 = vsel %vm498_vm2, %v2276_v17, 0.0  ;;  %v2398_v10 = vsel %vm498_vm2, %v2279_v0, 0.0  ;;  %v5435_v41 = vadd.f32 %v2220_v57, %v7114_v14  ;;  %v5447_v17 = vpop.f32.mrf.mxu1  ;;  %v7119_v14 = vld [vmem:[#allocation11_spill] sm:$0xff] }
 0x16b   : > { %v1237_v22 = vadd.f32 %v5193_v29, %v7108_v33  ;;  %v5440_v37 = vadd.f32 %v2389_v15, %v5157_v36  ;;  %v2371_v16 = vsel %vm498_vm2, %v2270_v43, 0.0  ;;  %v5444_v12 = vadd.f32 %v2398_v10, %v5160_v27  ;;  %v7115_v43 = vld [vmem:[#allocation9_spill] sm:$0xff] }
 0x16c   : > { %7113 = vst [vmem:[#allocation20_spill] sm:$0xff] %v5428_v30  ;;  %v2380_v56 = vsel %vm498_vm2, %v2273_v18, 0.0  ;;  %v5450_v7 = vadd.f32 %v2371_v16, %v5173_v54  ;;  %v2075_v36 = vrot.slane %v5428_v30, %v4562_v9  ;;  %v1939_v29 = vrot.slane %v5118_v48, %v4558_v8  ;;  %v7118_v54 = vld [vmem:[#allocation7_spill] sm:$0xff]  ;;  %v5467_v18 = vpop.f32.mrf.mxu1  ;;  %v7120_v30 = vld [vmem:[#allocation12_spill] sm:$0xff] }
 0x16d   : > { %v5453_v57 = vadd.f32 %v2380_v56, %v5176_v20  ;;  %v1564_v27 = vadd.f32 %v1563_v63, %v7115_v43  ;;  %v5462_v33 = vcombine.high %v5399_v62, %v5399_v62  ;;  %v1239_v28 = vadd.f32 %v5205_v60, %v7117_v21 }
 0x16e   : > { %v1575_v0 = vadd.f32 %v3712_v46, %v7118_v54  ;;  %v2288_v20 = vmul.f32 %v2075_v36, %v1572_v55  ;;  %v2221_v15 = vmul.f32 %v1939_v29, %v1237_v22  ;;  %v1241_v10 = vadd.f32 %v5220_v11, %v7117_v21  ;;  %v5476_v60 = vpop.f32.mrf.mxu1  ;;  %v7121_v54 = vld [vmem:[#allocation73_spill] sm:$0xff]  ;;  %v7122_v11 = vld [vmem:[#allocation2_spill] sm:$0xff] }
 0x16f   : > { %7116 = vst [vmem:[#allocation65_spill] sm:$0xff] %v5462_v33  ;;  %v1567_v48 = vadd.f32 %v1566_v3, %v7119_v14  ;;  %v2063_v63 = vrot.slane %v5462_v33, %v4562_v9  ;;  %v2223_v16 = vmul.f32 %v1935_v45, %v1239_v28  ;;  %v1245_v50 = vadd.f32 %v5245_v13, %v7120_v30  ;;  %v7123_v3 = vld [vmem:[#allocation46_spill] sm:$0xff]  ;;  %v7136_v33 = vld [vmem:[#allocation45_spill] sm:$0xff] }
 0x170   : > { %v2291_v56 = vmul.f32 %v2075_v36, %v1575_v0  ;;  %v2425_v46 = vsel %vm498_vm2, %v2288_v20, 0.0  ;;  %v5480_v55 = vadd.f32 %v2221_v15, %v7121_v54  ;;  %v2224_v22 = vmul.f32 %v1939_v29, %v1241_v10  ;;  %v7124_v45 = vld [vmem:[#allocation74_spill] sm:$0xff]  ;;  %v1284_v28 = vpop.f32.mrf.mxu1  ;;  %v7125_v20 = vld [vmem:[#allocation41_spill] sm:$0xff] }
 0x171   : > { %v1947_v21 = vrot.slane %v7122_v11, %v6971_v31  ;;  %v5485_v14 = vadd.f32 %v2425_v46, %v7123_v3  ;;  %v2282_v9 = vmul.f32 %v2063_v63, %v1564_v27  ;;  %v5488_v36 = vadd.f32 %v2223_v16, %v7124_v45  ;;  %v7126_v16 = vld [vmem:[#allocation13_spill] sm:$0xff]  ;;  %v7127_v45 = vld [vmem:[#allocation40_spill] sm:$0xff] }
 0x172   : > { %v2434_v13 = vsel %vm498_vm2, %v2291_v56, 0.0  ;;  %v5495_v54 = vadd.f32 %v2224_v22, %v7125_v20  ;;  %v2285_v29 = vmul.f32 %v2063_v63, %v1567_v48  ;;  %v1247_v46 = vadd.f32 %v5263_v5, %v7120_v30  ;;  %v1286_v3 = vpop.f32.mrf.mxu1 }
 0x173   : > { %v5492_v0 = vadd.f32 %v2434_v13, %v5226_v47  ;;  %v2226_v15 = vmul.f32 %v1947_v21, %v1245_v50  ;;  %v2407_v10 = vsel %vm498_vm2, %v2282_v9, 0.0  ;;  %v1951_v27 = vrot.slane %v7122_v11, %v4558_v8  ;;  %v7128_v11 = vld [vmem:[#allocation8_spill] sm:$0xff] }
 0x174   : > { %v1249_v56 = vadd.f32 %v5275_v35, %v7126_v16  ;;  %v5505_v47 = vadd.f32 %v2407_v10, %v5223_v51  ;;  %v2416_v22 = vsel %vm498_vm2, %v2285_v29, 0.0  ;;  %v1251_v50 = vadd.f32 %v5293_v40, %v7126_v16  ;;  %v1288_v9 = vpop.f32.mrf.mxu1  ;;  %v7129_v51 = vld [vmem:[#allocation78_spill] sm:$0xff]  ;;  %v7130_v40 = vld [vmem:[#allocation39_spill] sm:$0xff] }
 0x175   : > { %v5509_v48 = vadd.f32 %v2226_v15, %v7127_v45  ;;  %v5514_v5 = vadd.f32 %v2416_v22, %v5233_v34  ;;  %v2227_v30 = vmul.f32 %v1951_v27, %v1247_v46  ;;  %v1255_v35 = vadd.f32 %v5309_v23, %v7128_v11  ;;  %v7131_v34 = vld [vmem:[#allocation42_spill] sm:$0xff] }
 0x176   : > { %v2229_v63 = vmul.f32 %v1947_v21, %v1249_v56  ;;  %v2230_v13 = vmul.f32 %v1951_v27, %v1251_v50  ;;  %v1959_v20 = vrot.slane %v7129_v51, %v6971_v31  ;;  %v1257_v29 = vadd.f32 %v5328_v39, %v7128_v11  ;;  %v7132_v21 = vld [vmem:[#allocation10_spill] sm:$0xff]  ;;  %v1290_v16 = vpop.f32.mrf.mxu1  ;;  %v7133_v56 = vld [vmem:[#allocation44_spill] sm:$0xff]  ;;  %v7134_v50 = vld [vmem:[#allocation3_spill] sm:$0xff] }
 0x177   : > { %v1963_v15 = vrot.slane %v7129_v51, %v4558_v8  ;;  %v5525_v10 = vadd.f32 %v2227_v30, %v7130_v40  ;;  %v1259_v23 = vadd.f32 %v5342_v2, %v7132_v21  ;;  %v1261_v27 = vadd.f32 %v5350_v53, %v7132_v21  ;;  %v7137_v21 = vld [vmem:[#allocation34_spill] sm:$0xff] }
 0x178   : > { %v5528_v46 = vadd.f32 %v2229_v63, %v7131_v34  ;;  %v5535_v22 = vadd.f32 %v2230_v13, %v7133_v56  ;;  %v2232_v39 = vmul.f32 %v1959_v20, %v1255_v35  ;;  %v1265_v11 = vadd.f32 %v5370_v38, %v7134_v50  ;;  %v7135_v63 = vld [vmem:[#allocation43_spill] sm:$0xff]  ;;  %v1294_v34 = vpop.f32.mrf.mxu1 }
 0x179   : > { %v2233_v45 = vmul.f32 %v1963_v15, %v1257_v29  ;;  %v2235_v30 = vmul.f32 %v1959_v20, %v1259_v23  ;;  %v2236_v51 = vmul.f32 %v1963_v15, %v1261_v27  ;;  %v1971_v40 = vrot.slane %v7135_v63, %v6971_v31  ;;  %v7139_v29 = vld [vmem:[#allocation6_spill] sm:$0xff]  ;;  %v7140_v20 = vld [vmem:[#allocation31_spill] sm:$0xff]  ;;  %v7141_v23 = vld [vmem:[#allocation48_spill] sm:$0xff] }
 0x17a   : > { %v1267_v2 = vadd.f32 %v5387_v42, %v7134_v50  ;;  %v5544_v53 = vadd.f32 %v2232_v39, %v7136_v33  ;;  %v1975_v35 = vrot.slane %v7135_v63, %v4558_v8  ;;  %v1269_v38 = vadd.f32 %v5404_v19, %v7139_v29  ;;  %v1296_v56 = vpop.f32.mrf.mxu1  ;;  %v7142_v50 = vld [vmem:[#allocation75_spill] sm:$0xff]  ;;  %v7143_v19 = vld [vmem:[#allocation77_spill] sm:$0xff] }
 0x17b   : > { %v5547_v13 = vadd.f32 %v2233_v45, %v7137_v21  ;;  %v5554_v15 = vadd.f32 %v2235_v30, %v7140_v20  ;;  %v5557_v27 = vadd.f32 %v2236_v51, %v7141_v23  ;;  %v2238_v42 = vmul.f32 %v1971_v40, %v1265_v11  ;;  %v7146_v23 = vld [vmem:[#allocation4_spill] sm:$0xff] }
 0x17c   : > { %v1271_v33 = vadd.f32 %v5418_v59, %v7139_v29  ;;  %v2239_v39 = vmul.f32 %v1975_v35, %v1267_v2  ;;  %v2241_v45 = vmul.f32 %v1971_v40, %v1269_v38  ;;  %v1275_v21 = vadd.f32 %v5430_v61, %v7142_v50  ;;  %v1298_v59 = vpop.f32.mrf.mxu1  ;;  %v7144_v29 = vld [vmem:[#allocation36_spill] sm:$0xff]  ;;  %v7145_v40 = vld [vmem:[#allocation35_spill] sm:$0xff] }
 0x17d   : > { %7138 = vst [vmem:[#allocation33_spill] sm:$0xff] %v5547_v13  ;;  %v1983_v63 = vrot.slane %v5266_v52, %v6971_v31  ;;  %v5566_v13 = vadd.f32 %v2238_v42, %v7143_v19  ;;  %v1277_v51 = vadd.f32 %v5447_v17, %v7142_v50  ;;  %v1987_v11 = vrot.slane %v5266_v52, %v4558_v8  ;;  %v7149_v19 = vld [vmem:[#allocation37_spill] sm:$0xff] }
 0x17e   : > { %v2242_v30 = vmul.f32 %v1975_v35, %v1271_v33  ;;  %v5573_v2 = vadd.f32 %v2239_v39, %v7144_v29  ;;  %v5576_v38 = vadd.f32 %v2241_v45, %v7145_v40  ;;  %v1279_v20 = vadd.f32 %v5467_v18, %v5243_v44  ;;  %v7148_v33 = vld [vmem:[#allocation30_spill] sm:$0xff]  ;;  %v1300_v50 = vpop.f32.mrf.mxu1  ;;  %v7151_v18 = vld [vmem:[#allocation55_spill] sm:$0xff] }
 0x17f   : > { %v2244_v61 = vmul.f32 %v1983_v63, %v1275_v21  ;;  %v2245_v35 = vmul.f32 %v1987_v11, %v1277_v51  ;;  %v1281_v17 = vadd.f32 %v5476_v60, %v5243_v44  ;;  %v1285_v52 = vadd.f32 %v1284_v28, %v7148_v33  ;;  %v7152_v44 = vld [vmem:[#allocation32_spill] sm:$0xff] }
 0x180   : > { %v5581_v42 = vadd.f32 %v2242_v30, %v7146_v23  ;;  %v2247_v29 = vmul.f32 %v1983_v63, %v1279_v20  ;;  %v1995_v45 = vrot.slane %v5239_v24, %v6971_v31  ;;  %v1287_v21 = vadd.f32 %v1286_v3, %v7148_v33  ;;  %v1304_v28 = vpop.f32.mrf.mxu1  ;;  %v7153_v23 = vld [vmem:[#allocation28_spill] sm:$0xff] }
 0x181   : > { %v5587_v39 = vadd.f32 %v7149_v19, %v2244_v61  ;;  %v5593_v40 = vadd.f32 %v7151_v18, %v2245_v35  ;;  %v2248_v30 = vmul.f32 %v1987_v11, %v1281_v17  ;;  %v1999_v51 = vrot.slane %v5239_v24, %v4558_v8  ;;  %v7154_v19 = vld [vmem:[#allocation56_spill] sm:$0xff]  ;;  %v7155_v17 = vld [vmem:[#allocation47_spill] sm:$0xff]  ;;  %v7156_v18 = vld [vmem:[#allocation53_spill] sm:$0xff] }
 0x182   : > { %7147 = vst [vmem:[#allocation66_spill] sm:$0xff] %v5581_v42  ;;  %v1289_v60 = vadd.f32 %v1288_v9, %v7152_v44  ;;  %v5599_v42 = vadd.f32 %v7153_v23, %v2247_v29  ;;  %v2250_v61 = vmul.f32 %v1995_v45, %v1285_v52  ;;  %v1291_v63 = vadd.f32 %v1290_v16, %v7152_v44  ;;  %v1306_v24 = vpop.f32.mrf.mxu1 }
 0x183   : > { %7150 = vst [vmem:[#allocation49_spill] sm:$0xff] %v5587_v39  ;;  %v1295_v20 = vadd.f32 %v1294_v34, %v7077_v1  ;;  %v5604_v3 = vadd.f32 %v7154_v19, %v2248_v30  ;;  %v2251_v35 = vmul.f32 %v1999_v51, %v1287_v21  ;;  %v2007_v11 = vrot.slane %v5317_v6, %v6971_v31  ;;  %v7158_v19 = vld [vmem:[#allocation27_spill] sm:$0xff]  ;;  %v7164_v39 = vld [vmem:[#allocation26_spill] sm:$0xff] }
 0x184   : > { %v2253_v33 = vmul.f32 %v1995_v45, %v1289_v60  ;;  %v5611_v29 = vadd.f32 %v7155_v17, %v2250_v61  ;;  %v2254_v52 = vmul.f32 %v1999_v51, %v1291_v63  ;;  %v1297_v16 = vadd.f32 %v1296_v56, %v7077_v1  ;;  %v1308_v44 = vpop.f32.mrf.mxu1  ;;  %v7157_v60 = vld [vmem:[#allocation76_spill] sm:$0xff]  ;;  %v7159_v63 = vld [vmem:[#allocation22_spill] sm:$0xff]  ;;  %v7160_v56 = vld [vmem:[#allocation63_spill] sm:$0xff] }
 0x185   : > { %v5615_v34 = vadd.f32 %v5273_v25, %v2251_v35  ;;  %v2256_v45 = vmul.f32 %v2007_v11, %v1295_v20  ;;  %v2011_v21 = vrot.slane %v5317_v6, %v4558_v8  ;;  %v1299_v61 = vadd.f32 %v1298_v59, %v7158_v19 }
 0x186   : > { %v5618_v30 = vadd.f32 %v7156_v18, %v2253_v33  ;;  %v5623_v23 = vadd.f32 %v7157_v60, %v2254_v52  ;;  %v1301_v51 = vadd.f32 %v1300_v50, %v7158_v19  ;;  %v1305_v1 = vadd.f32 %v1304_v28, %v7159_v63  ;;  %v7161_v33 = vld [vmem:[#allocation38_spill] sm:$0xff]  ;;  %v1310_v17 = vpop.f32.mrf.mxu1  ;;  %v7162_v19 = vld [vmem:[#allocation23_spill] sm:$0xff] }
 0x187   : > { %v5631_v35 = vadd.f32 %v7160_v56, %v2256_v45  ;;  %v2257_v20 = vmul.f32 %v2011_v21, %v1297_v16  ;;  %v2019_v6 = vrot.slane %v7161_v33, %v6971_v31  ;;  %v2259_v18 = vmul.f32 %v2007_v11, %v1299_v61  ;;  %v7163_v56 = vld [vmem:[#allocation60_spill] sm:$0xff] }
 0x188   : > { %v2260_v52 = vmul.f32 %v2011_v21, %v1301_v51  ;;  %v1307_v60 = vadd.f32 %v1306_v24, %v7159_v63  ;;  %v2023_v59 = vrot.slane %v7161_v33, %v4558_v8  ;;  %v1309_v9 = vadd.f32 %v1308_v44, %v7162_v19  ;;  %v1314_v16 = vpop.f32.mrf.mxu1  ;;  %v7165_v24 = vld [vmem:[#allocation18_spill] sm:$0xff]  ;;  %v7166_v51 = vld [vmem:[#allocation25_spill] sm:$0xff] }
 0x189   : > { %v5639_v50 = vadd.f32 %v5345_v49, %v2257_v20  ;;  %v2262_v28 = vmul.f32 %v2019_v6, %v1305_v1  ;;  %v1311_v45 = vadd.f32 %v1310_v17, %v7162_v19  ;;  %v5644_v25 = vadd.f32 %v7163_v56, %v2259_v18 }
 0x18a   : > { %v5647_v11 = vadd.f32 %v7164_v39, %v2260_v52  ;;  %v2263_v21 = vmul.f32 %v2023_v59, %v1307_v60  ;;  %v1315_v61 = vadd.f32 %v1314_v16, %v7165_v24  ;;  %v2265_v49 = vmul.f32 %v2019_v6, %v1309_v9  ;;  %v1316_v1 = vpop.f32.mrf.mxu1 }
 0x18b   : > { %v5651_v63 = vadd.f32 %v7166_v51, %v2262_v28  ;;  %v2266_v20 = vmul.f32 %v2023_v59, %v1311_v45  ;;  %v2031_v44 = vrot.slane %v5399_v62, %v6971_v31  ;;  %v1317_v39 = vadd.f32 %v1316_v1, %v7165_v24  ;;  %v7167_v28 = vld [vmem:[#allocation19_spill] sm:$0xff]  ;;  %v7180_v51 = vld [vmem:[#allocation33_spill] sm:$0xff] }
 0x18c   : > { %v5658_v17 = vadd.f32 %v5413_v32, %v2263_v21  ;;  %v2035_v18 = vrot.slane %v5399_v62, %v4558_v8  ;;  %v5664_v52 = vadd.f32 %v5421_v58, %v2265_v49  ;;  %v1318_v60 = vpop.f32.mrf.mxu1  ;;  %v2043_v62 = vrot.slane %v5393_v26, %v6971_v31 }
 0x18d   : > { %v5667_v9 = vadd.f32 %v5424_v4, %v2266_v20  ;;  %v2268_v6 = vmul.f32 %v2031_v44, %v1315_v61  ;;  %v1319_v19 = vadd.f32 %v1318_v60, %v7167_v28  ;;  %v2047_v21 = vrot.slane %v5393_v26, %v4558_v8 }
 0x18e   : > { %v2269_v59 = vmul.f32 %v2035_v18, %v1317_v39  ;;  %v2461_v32 = vpack.c.bf16 %v5664_v52, %v5651_v63  ;;  %v1320_v16 = vpop.f32.mrf.mxu1  ;;  %v5697_v26 = vpack.c.bf16 %v5492_v0, %v5485_v14  ;;  %v5705_v60 = vpack.c.bf16 %v5444_v12, %v5440_v37  ;;  %v7171_v37 = vld [vmem:[#allocation24_spill] sm:$0xff] }
 0x18f   : > { %v5673_v45 = vadd.f32 %v5435_v41, %v2268_v6  ;;  %v2271_v4 = vmul.f32 %v2031_v44, %v1319_v19  ;;  %v1321_v56 = vadd.f32 %v1320_v16, %v7167_v28  ;;  %v2462_v61 = vpack.c.bf16 %v5667_v9, %v5658_v17  ;;  %v7168_v44 = vld [vmem:[#allocation14_spill] sm:$0xff]  ;;  %v7172_v12 = vld [vmem:[#allocation64_spill] sm:$0xff]  ;;  %v3866_v17 = vld [vmem:[%s6793_s6 + $0x58] sm:$0xff] }
 0x190   : > { %v5678_v58 = vadd.f32 %v5480_v55, %v2269_v59  ;;  %v1324_v24 = vpop.f32.mrf.mxu1  ;;  %v5701_v6 = vpack.c.bf16 %v5514_v5, %v5505_v47  ;;  %v7170_v59 = vld [vmem:[#allocation61_spill] sm:$0xff]  ;;  %v5723_v16 = vpack.c.bf16 %v7172_v12, %v7171_v37  ;;  %v3867_v9 = vld [vmem:[%s6793_s6 + $0x70] sm:$0xff]  ;;  %v7187_v63 = vpack.c.bf16 %v5623_v23, %v5615_v34  ;;  %v3816_v23 = vld [vmem:[%s6792_s5] sm:$0xff]  }
 0x191   : > { %v5692_v49 = vadd.f32 %v5488_v36, %v2271_v4  ;;  %v2272_v20 = vmul.f32 %v2035_v18, %v1321_v56  ;;  %v1325_v1 = vadd.f32 %v1324_v24, %v7168_v44  ;;  %v5709_v36 = vpack.c.bf16 %v5453_v57, %v5450_v7  ;;  %v7169_v18 = vld [vmem:[#allocation59_spill] sm:$0xff]  ;;  %v7173_v7 = vld [vmem:[#allocation57_spill] sm:$0xff]  ;;  %v7174_v57 = vld [vmem:[#allocation58_spill] sm:$0xff] }
 0x192   : > { %v1326_v39 = vpop.f32.mrf.mxu1  ;;  %v5713_v28 = vpack.c.bf16 %v7170_v59, %v7169_v18  ;;  %v5727_v4 = vpack.c.bf16 %v7174_v57, %v7173_v7  ;;  %v7175_v56 = vld [vmem:[#allocation62_spill] sm:$0xff]  ;;  %v7176_v24 = vld [vmem:[#allocation29_spill] sm:$0xff]  ;;  %v7188_v52 = vpack.c.bf16 %v5618_v30, %v5611_v29 }
 0x193   : > { %v2464_v14 = vpack.c.bf16 %v5692_v49, %v5673_v45  ;;  %v5718_v0 = vadd.f32 %v5495_v54, %v2272_v20  ;;  %v2274_v47 = vmul.f32 %v2043_v62, %v1325_v1  ;;  %v1327_v5 = vadd.f32 %v1326_v39, %v7168_v44  ;;  %v7177_v20 = vld [vmem:[#allocation15_spill] sm:$0xff]  ;;  %v3869_v34 = vld [vmem:[%s6793_s6 + $0x78] sm:$0xff]  ;;  %v3820_v30 = vld [vmem:[%s6792_s5 + $0x20] sm:$0xff]  }
 0x194   : > { %v1328_v19 = vpop.f32.mrf.mxu1  ;;  %v5731_v18 = vpack.c.bf16 %v7176_v24, %v7175_v56  ;;  %v7185_v45 = vpack.c.bf16 %v5647_v11, %v5639_v50  ;;  %v3868_v50 = vld [vmem:[%s6793_s6 + $0x68] sm:$0xff]  ;;  %v3897_v11 = vmov 2   ;;  %v3819_v29 = vld [vmem:[%s6792_s5 + $0x18] sm:$0xff]  }
 0x195   : > { %v5734_v59 = vadd.f32 %v5509_v48, %v2274_v47  ;;  %v2275_v54 = vmul.f32 %v2047_v21, %v1327_v5  ;;  %v1329_v1 = vadd.f32 %v1328_v19, %v7177_v20  ;;  %v2465_v44 = vpack.c.bf16 %v5718_v0, %v5678_v58  ;;  %v7178_v47 = vld [vmem:[#allocation65_spill] sm:$0xff]  ;;  %v3864_v58 = vld [vmem:[%s6793_s6 + $0x48] sm:$0xff]  ;;  %v3865_v0 = vld [vmem:[%s6793_s6 + $0x60] sm:$0xff] }
 0x196   : > { %v1330_v39 = vpop.f32.mrf.mxu1  ;;  %v2055_v5 = vrot.slane %v7178_v47, %v6971_v31  ;;  %v2059_v55 = vrot.slane %v7178_v47, %v4558_v8  ;;  %v3821_v49 = vld [vmem:[%s6792_s5 + $0x28] sm:$0xff]  }
 0x197   : > { %v5740_v37 = vadd.f32 %v5525_v10, %v2275_v54  ;;  %v2277_v12 = vmul.f32 %v2043_v62, %v1329_v1  ;;  %v1331_v7 = vadd.f32 %v1330_v39, %v7177_v20  ;;  %v7179_v39 = vld [vmem:[#allocation11_spill] sm:$0xff] }
 0x198   : > { %v1334_v57 = vpop.f32.mrf.mxu1 }
 0x199   : > { %v5744_v56 = vadd.f32 %v5528_v46, %v2277_v12  ;;  %v2278_v24 = vmul.f32 %v2047_v21, %v1331_v7  ;;  %v1335_v48 = vadd.f32 %v1334_v57, %v7115_v43 }
 0x19a   : > { %v1336_v19 = vpop.f32.mrf.mxu1 }
 0x19b   : > { %v2467_v10 = vpack.c.bf16 %v5744_v56, %v5734_v59  ;;  %v2394_v62 = vadd.f32 %v5535_v22, %v2278_v24  ;;  %v2280_v54 = vmul.f32 %v2055_v5, %v1335_v48  ;;  %v1337_v20 = vadd.f32 %v1336_v19, %v7115_v43  ;;  %v7181_v24 = vld [vmem:[#allocation5_spill] sm:$0xff]  ;;  %v7182_v48 = vld [vmem:[#allocation20_spill] sm:$0xff] }
 0x19c   : > { %v1338_v46 = vpop.f32.mrf.mxu1 }
 0x19d   : > { %v2401_v21 = vadd.f32 %v5544_v53, %v2280_v54  ;;  %v2281_v1 = vmul.f32 %v2059_v55, %v1337_v20  ;;  %v1339_v12 = vadd.f32 %v1338_v46, %v7179_v39  ;;  %v2468_v7 = vpack.c.bf16 %v2394_v62, %v5740_v37 }
 0x19e   : > { %v1340_v57 = vpop.f32.mrf.mxu1  ;;  %v2067_v53 = vrot.slane %v7182_v48, %v6971_v31  ;;  %v2071_v54 = vrot.slane %v7182_v48, %v4558_v8  ;;  %v3896_v8 = vmov 1   ;;  %v3860_v48 = vld [vmem:[%s6793_s6 + $0x28] sm:$0xff] }
 0x19f   : > { %v2403_v33 = vadd.f32 %v7180_v51, %v2281_v1  ;;  %v2283_v47 = vmul.f32 %v2055_v5, %v1339_v12  ;;  %v1341_v41 = vadd.f32 %v1340_v57, %v7179_v39  ;;  %3779 = vset.pattern.permute.xlu1 %v3896_v8  ;;  %3780 = vset.pattern.permute.xlu0 %v3896_v8 }
 0x1a0   : > { %v1344_v59 = vpop.f32.mrf.mxu1 }
 0x1a1   : > { %v2410_v22 = vadd.f32 %v5554_v15, %v2283_v47  ;;  %v2284_v56 = vmul.f32 %v2059_v55, %v1341_v41  ;;  %v1345_v43 = vadd.f32 %v1344_v59, %v7181_v24  ;;  %v7183_v41 = vld [vmem:[#allocation7_spill] sm:$0xff]  ;;  %v7184_v47 = vld [vmem:[#allocation66_spill] sm:$0xff] }
 0x1a2   : > { %v1346_v19 = vpop.f32.mrf.mxu1 }
 0x1a3   : > { %v2470_v37 = vpack.c.bf16 %v2410_v22, %v2401_v21  ;;  %v2412_v62 = vadd.f32 %v5557_v27, %v2284_v56  ;;  %v2286_v51 = vmul.f32 %v2067_v53, %v1345_v43  ;;  %v1347_v5 = vadd.f32 %v1346_v19, %v7181_v24  ;;  %v3856_v56 = vld [vmem:[%s6793_s6 + $0x10] sm:$0xff]  ;;  %v3858_v24 = vld [vmem:[%s6793_s6 + $0x18] sm:$0xff] }
 0x1a4   : > { %v1348_v20 = vpop.f32.mrf.mxu1  ;;  %v3859_v43 = vld [vmem:[%s6793_s6 + $0x30] sm:$0xff]  ;;  %v3862_v19 = vld [vmem:[%s6793_s6 + $0x38] sm:$0xff] }
 0x1a5   : > { %v2419_v46 = vadd.f32 %v5566_v13, %v2286_v51  ;;  %v2287_v15 = vmul.f32 %v2071_v54, %v1347_v5  ;;  %v1349_v55 = vadd.f32 %v1348_v20, %v7183_v41  ;;  %v2471_v1 = vpack.c.bf16 %v2412_v62, %v2403_v33  ;;  %v3854_v13 = vld [vmem:[%s6793_s6] sm:$0xff]  ;;  %v3855_v33 = vld [vmem:[%s6793_s6 + $0x8] sm:$0xff] }
 0x1a6   : > { %v1350_v39 = vpop.f32.mrf.mxu1  ;;  %3146 = vperm.xlu1 %3779, %v3854_v13   ;;  %3150 = vperm.xlu0 %3780, %v3855_v33  }
 0x1a7   : > { %v2421_v31 = vadd.f32 %v5573_v2, %v2287_v15  ;;  %v2289_v12 = vmul.f32 %v2067_v53, %v1349_v55  ;;  %v1351_v57 = vadd.f32 %v1350_v39, %v7183_v41  ;;  %v3861_v53 = vld [vmem:[%s6793_s6 + $0x40] sm:$0xff] }
 0x1a9   : > { %v2428_v27 = vadd.f32 %v5576_v38, %v2289_v12  ;;  %v2290_v21 = vmul.f32 %v2071_v54, %v1351_v57  ;;  %v3857_v38 = vld [vmem:[%s6793_s6 + $0x20] sm:$0xff] }
 0x1aa   : > { %3154 = vperm.xlu1 %3779, %v3856_v56   ;;  %3162 = vperm.xlu0 %3780, %v3857_v38  }
 0x1ab   : > { %v2473_v2 = vpack.c.bf16 %v2428_v27, %v2419_v46  ;;  %v2430_v59 = vadd.f32 %v7184_v47, %v2290_v21 }
 0x1ad   : > { %v2474_v22 = vpack.c.bf16 %v2430_v59, %v2421_v31 }
 0x1ae   : > { %3158 = vperm.xlu1 %3779, %v3858_v24   ;;  %3170 = vperm.xlu0 %3780, %v3859_v43  }
 0x1af   : > { %2620 = vmatprep.subr.bf16.mxu0 %v2474_v22 }
 0x1b0   : > { %2621 = vmatpush1.bf16.msra.mxu0 %v2473_v2 }
 0x1b1   : > { %2622 = vmatprep.subr.bf16.mxu0 %v2471_v1 }
 0x1b2   : > { %3166 = vperm.xlu1 %3779, %v3860_v48   ;;  %3178 = vperm.xlu0 %3780, %v3861_v53  }
 0x1b4   : > { %2623 = vmatpush1.bf16.msra.mxu0 %v2470_v37  ;;  %v5901_v37 = vpop.permute.xlu0 %2499 }
 0x1b5   : > { %2624 = vmatprep.subr.bf16.mxu0 %v2468_v7  ;;  %v3863_v7 = vld [vmem:[%s6793_s6 + $0x50] sm:$0xff] }
 0x1b6   : > { %3174 = vperm.xlu1 %3779, %v3862_v19   ;;  %3186 = vperm.xlu0 %3780, %v3863_v7  }
 0x1b8   : > { %2625 = vmatpush1.bf16.msra.mxu0 %v2467_v10  ;;  %v5905_v46 = vpop.permute.xlu0 %2509 }
 0x1b9   : > { %2626 = vmatprep.subr.bf16.mxu0 %v2465_v44  ;;  %v5899_v44 = vpop.permute.xlu1 %2494 }
 0x1ba   : > { %3182 = vperm.xlu1 %3779, %v3864_v58   ;;  %3194 = vperm.xlu0 %3780, %v3865_v0  }
 0x1bc   : > { %2627 = vmatpush1.bf16.msra.mxu0 %v2464_v14  ;;  %v5909_v39 = vpop.permute.xlu0 %2519 }
 0x1bd   : > { %2628 = vmatprep.subr.bf16.mxu0 %v2462_v61  ;;  %v7186_v61 = vpack.c.bf16 %v5644_v25, %v5631_v35  ;;  %v7189_v25 = vpack.c.bf16 %v5604_v3, %v5593_v40  ;;  %v7190_v35 = vld [vmem:[#allocation49_spill] sm:$0xff]  ;;  %v7192_v40 = vmov 0   ;;  %v3817_v3 = vld [vmem:[%s6792_s5 + $0x8] sm:$0xff]   ;;  %v5903_v51 = vpop.permute.xlu1 %2504 }
 0x1be   : > { %3190 = vperm.xlu1 %3779, %v3866_v17   ;;  %3202 = vperm.xlu0 %3780, %v3867_v9  }
 0x1c0   : > { %2629 = vmatpush1.bf16.msra.mxu0 %v2461_v32  ;;  %v7191_v32 = vpack.c.bf16 %v5599_v42, %v7190_v35  ;;  %v3818_v42 = vld [vmem:[%s6792_s5 + $0x10] sm:$0xff]  }
 0x1c1   : > { %2630 = vmatprep.subr.bf16.mxu0 %v7185_v45  ;;  %v5907_v41 = vpop.permute.xlu1 %2514 }
 0x1c2   : > { %3198 = vperm.xlu1 %3779, %v3868_v50   ;;  %3781 = vset.pattern.permute.xlu0 %v3897_v11 }
 0x1c3   : > { %3258 = vperm.xlu0 %3781, %v3854_v13  }
 0x1c4   : > { %2631 = vmatpush1.bf16.msra.mxu0 %v7186_v61 }
 0x1c5   : > { %2632 = vmatprep.subr.bf16.mxu0 %v7187_v63  ;;  %v5914_v57 = vpop.permute.xlu1 %2524 }
 0x1c6   : > { %3206 = vperm.xlu1 %3779, %v3869_v34  }
 0x1c7   : > { %3270 = vperm.xlu0 %3781, %v3858_v24  }
 0x1c8   : > { %2633 = vmatpush1.bf16.msra.mxu0 %v7188_v52 }
 0x1c9   : > { %2634 = vmatprep.subr.bf16.mxu0 %v7189_v25 }
 0x1ca   : > { %3782 = vset.pattern.permute.xlu1 %v3897_v11 }
 0x1cb   : > { %3262 = vperm.xlu1 %3782, %v3855_v33   ;;  %3278 = vperm.xlu0 %3781, %v3860_v48  }
 0x1cc   : > { %2635 = vmatpush1.bf16.msra.mxu0 %v7191_v32 }
 0x1cd   : > { %3713 = vmatprep.subr.bf16.mxu0 %v5697_v26 }
 0x1cf   : > { %2653 = vmatmul.mubr.bf16.vlgmr.msra.gmra.mxu0 %v3816_v23  ;;  %3266 = vperm.xlu1 %3782, %v3856_v56   ;;  %v5936_v56 = vpop.permute.xlu0 %2529 }
 0x1d0   : > { %3714 = vmatpush3.bf16.msra.mxu0 %v5697_v26  ;;  %2662 = vmatprep.mubr.bf16.mxu0 %v7192_v40  ;;  %v3822_v26 = vld [vmem:[%s6792_s5 + $0x30] sm:$0xff]  }
 0x1d1   : > { %3715 = vmatprep.subr.bf16.mxu0 %v5701_v6  ;;  %3286 = vperm.xlu0 %3781, %v3862_v19   ;;  %v5947_v19 = vpop.permute.xlu1 %2534 }
 0x1d3   : > { %3274 = vperm.xlu1 %3782, %v3857_v38   ;;  %v5965_v52 = vpop.permute.xlu0 %2539 }
 0x1d4   : > { %3716 = vmatpush3.bf16.msra.mxu0 %v5701_v6  ;;  %v3823_v6 = vld [vmem:[%s6792_s5 + $0x38] sm:$0xff]  }
 0x1d5   : > { %3717 = vmatprep.subr.bf16.mxu0 %v5705_v60  ;;  %3294 = vperm.xlu0 %3781, %v3864_v58  }
 0x1d7   : > { %2663 = vmatmul.mubr.bf16.gmra.mxu0 %v3817_v3  ;;  %3282 = vperm.xlu1 %3782, %v3859_v43  }
 0x1d8   : > { %3718 = vmatpush3.bf16.msra.mxu0 %v5705_v60  ;;  %2672 = vmatprep.mubr.bf16.mxu0 %v7192_v40 }
 0x1d9   : > { %3719 = vmatprep.subr.bf16.mxu0 %v5709_v36  ;;  %3302 = vperm.xlu0 %3781, %v3866_v17  }
 0x1db   : > { %3290 = vperm.xlu1 %3782, %v3861_v53  }
 0x1dc   : > { %3720 = vmatpush3.bf16.msra.mxu0 %v5709_v36 }
 0x1dd   : > { %3721 = vmatprep.subr.bf16.mxu0 %v5713_v28  ;;  %3310 = vperm.xlu0 %3781, %v3868_v50  }
 0x1df   : > { %2673 = vmatmul.mubr.bf16.gmra.mxu0 %v3818_v42  ;;  %3298 = vperm.xlu1 %3782, %v3863_v7  }
 0x1e0   : > { %3722 = vmatpush3.bf16.msra.mxu0 %v5713_v28  ;;  %2682 = vmatprep.mubr.bf16.mxu0 %v7192_v40 }
 0x1e1   : > { %3723 = vmatprep.subr.bf16.mxu0 %v5723_v16  ;;  %3318 = vperm.xlu0 %3781, %v3869_v34  }
 0x1e3   : > { %3306 = vperm.xlu1 %3782, %v3865_v0  }
 0x1e4   : > { %3724 = vmatpush3.bf16.msra.mxu0 %v5723_v16 }
 0x1e5   : > { %3725 = vmatprep.subr.bf16.mxu0 %v5727_v4 }
 0x1e7   : > { %2683 = vmatmul.mubr.bf16.gmra.mxu0 %v3819_v29  ;;  %3314 = vperm.xlu1 %3782, %v3867_v9  }
 0x1e8   : > { %3726 = vmatpush3.bf16.msra.mxu0 %v5727_v4  ;;  %2692 = vmatprep.mubr.bf16.mxu0 %v7192_v40 }
 0x1e9   : > { %3727 = vmatprep.subr.bf16.mxu0 %v5731_v18 }
 0x1ec   : > { %3728 = vmatpush3.bf16.msra.mxu0 %v5731_v18 }
 0x1ef   : > { %2693 = vmatmul.mubr.bf16.gmra.mxu0 %v3820_v30 }
 0x1f0   : > { %2702 = vmatprep.mubr.bf16.mxu0 %v7192_v40 }
 0x1f7   : > { %2703 = vmatmul.mubr.bf16.gmra.mxu0 %v3821_v49 }
 0x1f8   : > { %2712 = vmatprep.mubr.bf16.mxu0 %v7192_v40 }
 0x1ff   : > { %2713 = vmatmul.mubr.bf16.gmra.mxu0 %v3822_v26 }
 0x200   : > { %2722 = vmatprep.mubr.bf16.mxu0 %v7192_v40  ;;  %v5975_v40 = vpop.permute.xlu1 %2544 }
 0x207   : > { %2723 = vmatmul.mubr.bf16.gmra.mxu0 %v3823_v6 }
 0x208   : > { %3729 = vmatprep.mubr.bf16.mxu0 %v3816_v23 }
 0x20f   : > { %3730 = vmatmul.mubr.bf16.vlgmr.msra.gmra.mxu0 %v3817_v3 }
 0x210   : > { %3733 = vmatprep.mubr.bf16.mxu0 %v3818_v42 }
 0x217   : > { %3734 = vmatmul.mubr.bf16.gmra.mxu0 %v3819_v29 }
 0x218   : > { %3737 = vmatprep.mubr.bf16.mxu0 %v3820_v30 }
 0x21f   : > { %3738 = vmatmul.mubr.bf16.gmra.mxu0 %v3821_v49 }
 0x220   : > { %3741 = vmatprep.mubr.bf16.mxu0 %v3822_v26 }
 0x227   : > { %3742 = vmatmul.mubr.bf16.gmra.mxu0 %v3823_v6 }
 0x28f   : > { %v2654_v60 = vpop.f32.mrf.mxu0 }
 0x290   : > { %v5917_v27 = vadd.f32 %v2654_v60, %v5899_v44 }
 0x291   : > { %v2656_v36 = vpop.f32.mrf.mxu0 }
 0x292   : > { %v5926_v2 = vadd.f32 %v2656_v36, %v5899_v44 }
 0x293   : > { %v2658_v28 = vpop.f32.mrf.mxu0 }
 0x294   : > { %v5912_v12 = vadd.f32 %v2658_v28, %v5901_v37 }
 0x295   : > { %v2660_v14 = vpop.f32.mrf.mxu0 }
 0x296   : > { %v5920_v21 = vadd.f32 %v2660_v14, %v5901_v37  ;;  %v2830_v47 = vadd.f32 %v5912_v12, %v5917_v27  ;;  %v5993_v14 = vpop.permute.xlu0 %2549 }
 0x297   : > { %v2664_v16 = vpop.f32.mrf.mxu0 }
 0x298   : > { %v5923_v13 = vadd.f32 %v2664_v16, %v5903_v51  ;;  %v2851_v24 = vadd.f32 %v5920_v21, %v5926_v2 }
 0x299   : > { %v2666_v4 = vpop.f32.mrf.mxu0 }
 0x29a   : > { %v5931_v59 = vadd.f32 %v2666_v4, %v5903_v51  ;;  %v2831_v43 = vadd.f32 %v2830_v47, %v5923_v13 }
 0x29b   : > { %v2668_v18 = vpop.f32.mrf.mxu0 }
 0x29c   : > { %v5934_v22 = vadd.f32 %v2668_v18, %v5905_v46  ;;  %v2852_v58 = vadd.f32 %v2851_v24, %v5931_v59  ;;  %v6021_v24 = vpop.permute.xlu0 %2559 }
 0x29d   : > { %v2670_v10 = vpop.f32.mrf.mxu0 }
 0x29e   : > { %v5942_v48 = vadd.f32 %v2670_v10, %v5905_v46  ;;  %v2832_v0 = vadd.f32 %v2831_v43, %v5934_v22 }
 0x29f   : > { %v2674_v54 = vpop.f32.mrf.mxu0 }
 0x2a0   : > { %v5945_v53 = vadd.f32 %v2674_v54, %v5907_v41  ;;  %v2853_v61 = vadd.f32 %v2852_v58, %v5942_v48 }
 0x2a1   : > { %v2676_v62 = vpop.f32.mrf.mxu0 }
 0x2a2   : > { %v5952_v45 = vadd.f32 %v2676_v62, %v5907_v41  ;;  %v2833_v63 = vadd.f32 %v2832_v0, %v5945_v53  ;;  %v6003_v62 = vpop.permute.xlu1 %2554 }
 0x2a3   : > { %v2678_v5 = vpop.f32.mrf.mxu0 }
 0x2a4   : > { %v5955_v17 = vadd.f32 %v2678_v5, %v5909_v39  ;;  %v2854_v34 = vadd.f32 %v2853_v61, %v5952_v45 }
 0x2a5   : > { %v2680_v20 = vpop.f32.mrf.mxu0 }
 0x2a6   : > { %v5960_v50 = vadd.f32 %v2680_v20, %v5909_v39  ;;  %v2834_v23 = vadd.f32 %v2833_v63, %v5955_v17  ;;  %v6031_v61 = vpop.permute.xlu1 %2564 }
 0x2a7   : > { %v2684_v15 = vpop.f32.mrf.mxu0  ;;  %7194 = vst [vmem:[#allocation67_spill] sm:$0xff] %v6031_v61 }
 0x2a8   : > { %v5963_v11 = vadd.f32 %v2684_v15, %v5914_v57  ;;  %v2855_v42 = vadd.f32 %v2854_v34, %v5960_v50 }
 0x2a9   : > { %v2686_v55 = vpop.f32.mrf.mxu0 }
 0x2aa   : > { %v5970_v35 = vadd.f32 %v2686_v55, %v5914_v57  ;;  %v2835_v29 = vadd.f32 %v2834_v23, %v5963_v11 }
 0x2ab   : > { %v2688_v1 = vpop.f32.mrf.mxu0 }
 0x2ac   : > { %v5973_v32 = vadd.f32 %v2688_v1, %v5936_v56  ;;  %v2856_v6 = vadd.f32 %v2855_v42, %v5970_v35 }
 0x2ad   : > { %v2690_v31 = vpop.f32.mrf.mxu0 }
 0x2ae   : > { %v5980_v30 = vadd.f32 %v2690_v31, %v5936_v56  ;;  %v2836_v60 = vadd.f32 %v2835_v29, %v5973_v32 }
 0x2af   : > { %v2694_v8 = vpop.f32.mrf.mxu0 }
 0x2b0   : > { %v5983_v49 = vadd.f32 %v2694_v8, %v5947_v19  ;;  %v2857_v4 = vadd.f32 %v2856_v6, %v5980_v30 }
 0x2b1   : > { %v2696_v33 = vpop.f32.mrf.mxu0 }
 0x2b2   : > { %v5988_v36 = vadd.f32 %v2696_v33, %v5947_v19  ;;  %v2837_v18 = vadd.f32 %v2836_v60, %v5983_v49  ;;  %v6046_v60 = vpop.permute.xlu0 %2569 }
 0x2b3   : > { %v2698_v38 = vpop.f32.mrf.mxu0  ;;  %7197 = vst [vmem:[#allocation54_spill] sm:$0xff] %v6046_v60 }
 0x2b4   : > { %v5991_v28 = vadd.f32 %v2698_v38, %v5965_v52  ;;  %v2858_v20 = vadd.f32 %v2857_v4, %v5988_v36 }
 0x2b5   : > { %v2700_v7 = vpop.f32.mrf.mxu0 }
 0x2b6   : > { %v5998_v10 = vadd.f32 %v2700_v7, %v5965_v52  ;;  %v2838_v15 = vadd.f32 %v2837_v18, %v5991_v28 }
 0x2b7   : > { %v2704_v9 = vpop.f32.mrf.mxu0 }
 0x2b8   : > { %v6001_v54 = vadd.f32 %v2704_v9, %v5975_v40  ;;  %v2859_v8 = vadd.f32 %v2858_v20, %v5998_v10 }
 0x2b9   : > { %v2706_v25 = vpop.f32.mrf.mxu0 }
 0x2ba   : > { %v6008_v55 = vadd.f32 %v2706_v25, %v5975_v40  ;;  %v2839_v33 = vadd.f32 %v2838_v15, %v6001_v54 }
 0x2bb   : > { %v2708_v3 = vpop.f32.mrf.mxu0 }
 0x2bc   : > { %v6011_v1 = vadd.f32 %v2708_v3, %v5993_v14  ;;  %v2860_v7 = vadd.f32 %v2859_v8, %v6008_v55 }
 0x2bd   : > { %v2710_v26 = vpop.f32.mrf.mxu0 }
 0x2be   : > { %v6016_v47 = vadd.f32 %v2710_v26, %v5993_v14  ;;  %v2840_v58 = vadd.f32 %v2839_v33, %v6011_v1 }
 0x2bf   : > { %v2714_v16 = vpop.f32.mrf.mxu0 }
 0x2c0   : > { %v6019_v38 = vadd.f32 %v2714_v16, %v6003_v62  ;;  %v2861_v25 = vadd.f32 %v2860_v7, %v6016_v47 }
 0x2c1   : > { %v2716_v5 = vpop.f32.mrf.mxu0 }
 0x2c2   : > { %v6026_v0 = vadd.f32 %v2716_v5, %v6003_v62  ;;  %v2841_v34 = vadd.f32 %v2840_v58, %v6019_v38 }
 0x2c3   : > { %v2718_v31 = vpop.f32.mrf.mxu0 }
 0x2c4   : > { %7193 = vst [vmem:[#allocation51_spill] sm:$0xff] %v6026_v0  ;;  %v6029_v9 = vadd.f32 %v2718_v31, %v6021_v24  ;;  %v2862_v29 = vadd.f32 %v2861_v25, %v6026_v0 }
 0x2c5   : > { %v2720_v43 = vpop.f32.mrf.mxu0 }
 0x2c6   : > { %v6036_v23 = vadd.f32 %v2720_v43, %v6021_v24  ;;  %v2842_v26 = vadd.f32 %v2841_v34, %v6029_v9 }
 0x2c7   : > { %v2724_v63 = vpop.f32.mrf.mxu0 }
 0x2c8   : > { %7195 = vst [vmem:[#allocation52_spill] sm:$0xff] %v6036_v23  ;;  %v6039_v3 = vadd.f32 %v2724_v63, %v6031_v61  ;;  %v2863_v4 = vadd.f32 %v2862_v29, %v6036_v23 }
 0x2c9   : > { %v2726_v42 = vpop.f32.mrf.mxu0 }
 0x2ca   : > { %v6044_v6 = vadd.f32 %v2726_v42, %v6031_v61  ;;  %v2843_v18 = vadd.f32 %v2842_v26, %v6039_v3 }
 0x2cb   : > { %v2728_v16 = vpop.f32.mrf.mxu0 }
 0x2cc   : > { %7196 = vst [vmem:[#allocation50_spill] sm:$0xff] %v6044_v6  ;;  %v6051_v5 = vadd.f32 %v2728_v16, %v6046_v60  ;;  %v2864_v15 = vadd.f32 %v2863_v4, %v6044_v6 }
 0x2cd   : > { %v2730_v20 = vpop.f32.mrf.mxu0 }
 0x2ce   : > { %v2844_v31 = vadd.f32 %v2843_v18, %v6051_v5  ;;  %v6056_v8 = vadd.f32 %v2730_v20, %v6046_v60  ;;  %v6062_v60 = vpop.permute.xlu1 %3146 }
 0x2cf   : > { %v3731_v33 = vpop.f32.mrf.mxu0  ;;  %7199 = vst [vmem:[#allocation21_spill] sm:$0xff] %v6062_v60 }
 0x2d0   : > { %7198 = vst [vmem:[#allocation68_spill] sm:$0xff] %v6056_v8  ;;  %v2845_v43 = vrot.slane %v2844_v31, 4  ;;  %v2865_v7 = vadd.f32 %v2864_v15, %v6056_v8 }
 0x2d1   : > { %v2767_v58 = vpop.f32.mrf.mxu0 }
 0x2d2   : > { %v2846_v63 = vadd.f32 %v2845_v43, %v2844_v31  ;;  %v2866_v25 = vrot.slane %v2865_v7, 4  ;;  %v6067_v31 = vadd.f32 %v2767_v58, %v5899_v44  ;;  %v6086_v58 = vpop.permute.xlu1 %3154 }
 0x2d3   : > { %v3732_v34 = vpop.f32.mrf.mxu0  ;;  %7201 = vst [vmem:[#allocation69_spill] sm:$0xff] %v6086_v58 }
 0x2d4   : > { %v2847_v42 = vrot.slane %v2846_v63, 2  ;;  %v2867_v29 = vadd.f32 %v2866_v25, %v2865_v7  ;;  %v2872_v44 = vsel %vm498_vm2, %v6067_v31, 0.0 }
 0x2d5   : > { %v2770_v26 = vpop.f32.mrf.mxu0 }
 0x2d6   : > { %v2848_v16 = vadd.f32 %v2847_v42, %v2846_v63  ;;  %v2868_v23 = vrot.slane %v2867_v29, 2  ;;  %v6060_v20 = vadd.f32 %v2770_v26, %v5901_v37  ;;  %v6082_v42 = vadd.f32 %v3731_v33, %v5903_v51 }
 0x2d7   : > { %v3735_v0 = vpop.f32.mrf.mxu0 }
 0x2d8   : > { %v2849_v4 = vrot.slane %v2848_v16, 1  ;;  %v2869_v61 = vadd.f32 %v2868_v23, %v2867_v29  ;;  %v2873_v37 = vsel %vm498_vm2, %v6060_v20, 0.0  ;;  %v6120_v60 = vadd.f32 %v3735_v0, %v5914_v57 }
 0x2d9   : > { %v2783_v6 = vpop.f32.mrf.mxu0 }
 0x2da   : > { %v2850_v18 = vadd.f32 %v2849_v4, %v2848_v16  ;;  %v2870_v23 = vrot.slane %v2869_v61, 1  ;;  %v2875_v4 = vsel %vm498_vm2, %v6082_v42, 0.0 }
 0x2db   : > { %v3736_v15 = vpop.f32.mrf.mxu0 }
 0x2dc   : > { %v6064_v8 = vmul.f32 0.0078125, %v2850_v18  ;;  %v2871_v51 = vadd.f32 %v2870_v23, %v2869_v61 }
 0x2dd   : > { %v2786_v43 = vpop.f32.mrf.mxu0 }
 0x2de   : > { %v6071_v7 = vsub.f32 %v5917_v27, %v6064_v8  ;;  %v6075_v63 = vsub.f32 %v5912_v12, %v6064_v8  ;;  %v2874_v27 = vadd.f32 %v2873_v37, %v2872_v44  ;;  %v6092_v12 = vsub.f32 %v5923_v13, %v6064_v8 }
 0x2df   : > { %v6079_v25 = vpop.f32.mrf.mxu0  ;;  %v6100_v33 = vsub.f32 %v5934_v22, %v6064_v8  ;;  %v6107_v37 = vadd.f32 %v3732_v34, %v5905_v46  ;;  %v6111_v44 = vsub.f32 %v5945_v53, %v6064_v8  ;;  %v6115_v58 = vmul.f32 0.0078125, %v2871_v51  ;;  %v6117_v22 = vpop.permute.xlu1 %3158 }
 0x2e0   : > { %7200 = vst [vmem:[#allocation16_spill] sm:$0xff] %v6075_v63  ;;  %v2961_v26 = vmul.f32 %v6071_v7, %v6071_v7  ;;  %v2964_v16 = vmul.f32 %v6075_v63, %v6075_v63  ;;  %v2876_v13 = vadd.f32 %v2875_v4, %v2874_v27  ;;  %v2967_v61 = vmul.f32 %v6092_v12, %v6092_v12  ;;  %v6125_v46 = vpop.permute.xlu0 %3150 }
 0x2e1   : > { %v6088_v29 = vpop.f32.mrf.mxu0  ;;  %7202 = vst [vmem:[#allocation70_spill] sm:$0xff] %v6117_v22  ;;  %v6123_v63 = vadd.f32 %v2783_v6, %v5907_v41  ;;  %7203 = vst [vmem:[#allocation71_spill] sm:$0xff] %v6125_v46  ;;  %v6129_v53 = vsub.f32 %v5955_v17, %v6064_v8  ;;  %v2970_v34 = vmul.f32 %v6100_v33, %v6100_v33  ;;  %v2877_v41 = vsel %vm498_vm2, %v6107_v37, 0.0 }
 0x2e2   : > { %v3009_v23 = vadd.f32 %v2964_v16, %v2961_v26  ;;  %v6135_v16 = vsub.f32 %v5926_v2, %v6115_v58  ;;  %v6139_v57 = vsub.f32 %v5920_v21, %v6115_v58  ;;  %v6145_v17 = vsub.f32 %v5963_v11, %v6064_v8 }
 0x2e3   : > { %v6104_v18 = vpop.f32.mrf.mxu0  ;;  %v2973_v0 = vmul.f32 %v6111_v44, %v6111_v44  ;;  %v2878_v51 = vadd.f32 %v2877_v41, %v2876_v13  ;;  %v6151_v2 = vsub.f32 %v5973_v32, %v6064_v8  ;;  %v2883_v21 = vsel %vm498_vm2, %v6120_v60, 0.0 }
 0x2e4   : > { %v3010_v27 = vadd.f32 %v3009_v23, %v2967_v61  ;;  %7204 = vst [vmem:[#allocation72_spill] sm:$0xff] %v6135_v16  ;;  %7205 = vst [vmem:[#allocation9_spill] sm:$0xff] %v6139_v57  ;;  %v2879_v4 = vsel %vm498_vm2, %v6123_v63, 0.0  ;;  %v6158_v61 = vadd.f32 %v3736_v15, %v5936_v56  ;;  %v6162_v11 = vsub.f32 %v5983_v49, %v6064_v8  ;;  %v6185_v41 = vpop.permute.xlu0 %3162 }
 0x2e5   : > { %v2802_v26 = vpop.f32.mrf.mxu0  ;;  %v6166_v13 = vsub.f32 %v5991_v28, %v6064_v8  ;;  %v2976_v32 = vmul.f32 %v6129_v53, %v6129_v53  ;;  %v6176_v56 = vsub.f32 %v5931_v59, %v6115_v58  ;;  %v2962_v49 = vmul.f32 %v6135_v16, %v6135_v16 }
 0x2e6   : > { %v3011_v6 = vadd.f32 %v3010_v27, %v2970_v34  ;;  %7206 = vst [vmem:[#allocation17_spill] sm:$0xff] %v6162_v11  ;;  %v6172_v27 = vpop.permute.xlu1 %3166  ;;  %v2965_v15 = vmul.f32 %v6139_v57, %v6139_v57  ;;  %v6183_v28 = vadd.f32 %v2786_v43, %v5909_v39  ;;  %v6195_v16 = vsub.f32 %v6011_v1, %v6064_v8 }
 0x2e7   : > { %v6170_v34 = vpop.f32.mrf.mxu0  ;;  %7207 = vst [vmem:[#allocation12_spill] sm:$0xff] %v6172_v27  ;;  %7208 = vst [vmem:[#allocation73_spill] sm:$0xff] %v6176_v56  ;;  %v2880_v27 = vadd.f32 %v2879_v4, %v2878_v51  ;;  %v6199_v57 = vsub.f32 %v6019_v38, %v6064_v8  ;;  %v6203_v39 = vsub.f32 %v6029_v9, %v6064_v8 }
 0x2e8   : > { %v3012_v23 = vadd.f32 %v3011_v6, %v2973_v0  ;;  %v6189_v0 = vsub.f32 %v6001_v54, %v6064_v8  ;;  %v2979_v6 = vmul.f32 %v6145_v17, %v6145_v17  ;;  %v6207_v54 = vsub.f32 %v5942_v48, %v6115_v58 }
 0x2e9   : > { %v6211_v43 = vsub.f32 %v6039_v3, %v6064_v8  ;;  %v6215_v1 = vsub.f32 %v6051_v5, %v6064_v8  ;;  %v2982_v38 = vmul.f32 %v6151_v2, %v6151_v2  ;;  %v2815_v4 = vpop.f32.mrf.mxu0  ;;  %v6221_v9 = vsub.f32 %v5952_v45, %v6115_v58 }
 0x2ea   : > { %v3013_v59 = vadd.f32 %v3012_v23, %v2976_v32  ;;  %7209 = vst [vmem:[#allocation2_spill] sm:$0xff] %v6207_v54  ;;  %v2968_v48 = vmul.f32 %v6176_v56, %v6176_v56  ;;  %v3030_v32 = vadd.f32 %v2965_v15, %v2962_v49  ;;  %v2881_v3 = vsel %vm498_vm2, %v6183_v28, 0.0 }
 0x2eb   : > { %7210 = vst [vmem:[#allocation46_spill] sm:$0xff] %v6221_v9  ;;  %v2985_v5 = vmul.f32 %v6162_v11, %v6162_v11  ;;  %v2882_v23 = vadd.f32 %v2881_v3, %v2880_v27  ;;  %v6237_v45 = vsub.f32 %v5960_v50, %v6115_v58  ;;  %v2971_v49 = vmul.f32 %v6207_v54, %v6207_v54  ;;  %v6244_v11 = vpop.permute.xlu0 %3170 }
 0x2ec   : > { %v3014_v51 = vadd.f32 %v3013_v59, %v2979_v6  ;;  %v6231_v6 = vadd.f32 %v6088_v29, %v5947_v19  ;;  %v6233_v59 = vpop.permute.xlu1 %3174  ;;  %v3031_v15 = vadd.f32 %v3030_v32, %v2968_v48  ;;  %v6242_v56 = vadd.f32 %v2802_v26, %v5965_v52 }
 0x2ed   : > { %7211 = vst [vmem:[#allocation74_spill] sm:$0xff] %v6237_v45  ;;  %v2988_v27 = vmul.f32 %v6166_v13, %v6166_v13  ;;  %v2991_v19 = vmul.f32 %v6189_v0, %v6189_v0  ;;  %v6252_v50 = vsub.f32 %v5970_v35, %v6115_v58  ;;  %v2974_v48 = vmul.f32 %v6221_v9, %v6221_v9 }
 0x2ee   : > { %v3015_v8 = vadd.f32 %v3014_v51, %v2982_v38  ;;  %v2884_v38 = vadd.f32 %v2883_v21, %v2882_v23  ;;  %v3744_v51 = vpop.f32.mrf.mxu0  ;;  %v3032_v52 = vadd.f32 %v3031_v15, %v2971_v49  ;;  %v2885_v26 = vsel %vm498_vm2, %v6158_v61, 0.0 }
 0x2ef   : > { %7212 = vst [vmem:[#allocation41_spill] sm:$0xff] %v6252_v50  ;;  %v6260_v3 = vsub.f32 %v5980_v30, %v6115_v58  ;;  %v6264_v21 = vadd.f32 %v6079_v25, %v5975_v40  ;;  %v2977_v35 = vmul.f32 %v6237_v45, %v6237_v45  ;;  %v2887_v23 = vsel %vm498_vm2, %v6231_v6, 0.0  ;;  %v6288_v9 = vpop.permute.xlu0 %3178 }
 0x2f0   : > { %v3016_v29 = vadd.f32 %v3015_v8, %v2985_v5  ;;  %v2886_v5 = vadd.f32 %v2885_v26, %v2884_v38  ;;  %v3033_v8 = vadd.f32 %v3032_v52, %v2974_v48  ;;  %v2889_v49 = vsel %vm498_vm2, %v6242_v56, 0.0  ;;  %v2818_v25 = vpop.f32.mrf.mxu0 }
 0x2f1   : > { %7213 = vst [vmem:[#allocation13_spill] sm:$0xff] %v6260_v3  ;;  %v2994_v15 = vmul.f32 %v6195_v16, %v6195_v16  ;;  %v2997_v30 = vmul.f32 %v6199_v57, %v6199_v57  ;;  %v6280_v38 = vsub.f32 %v5988_v36, %v6115_v58  ;;  %v2980_v48 = vmul.f32 %v6252_v50, %v6252_v50 }
 0x2f2   : > { %v3017_v32 = vadd.f32 %v3016_v29, %v2988_v27  ;;  %v2888_v40 = vadd.f32 %v2887_v23, %v2886_v5  ;;  %v6276_v29 = vpop.permute.xlu1 %3182  ;;  %v3034_v52 = vadd.f32 %v3033_v8, %v2977_v35  ;;  %v6286_v26 = vadd.f32 %v6104_v18, %v5993_v14 }
 0x2f3   : > { %7214 = vst [vmem:[#allocation40_spill] sm:$0xff] %v6280_v38  ;;  %v2891_v23 = vsel %vm498_vm2, %v6264_v21, 0.0  ;;  %v6299_v35 = vadd.f32 %v2815_v4, %v6003_v62  ;;  %v6302_v14 = vadd.f32 %v2818_v25, %v6021_v24  ;;  %v3000_v18 = vmul.f32 %v6203_v39, %v6203_v39 }
 0x2f4   : > { %v3018_v27 = vadd.f32 %v3017_v32, %v2991_v19  ;;  %v6292_v19 = vsub.f32 %v5998_v10, %v6115_v58  ;;  %v2983_v32 = vmul.f32 %v6260_v3, %v6260_v3  ;;  %v2890_v36 = vadd.f32 %v2889_v49, %v2888_v40 }
 0x2f5   : > { %v3035_v5 = vadd.f32 %v3034_v52, %v2980_v48  ;;  %v3003_v10 = vmul.f32 %v6211_v43, %v6211_v43  ;;  %v6310_v49 = vsub.f32 %v6008_v55, %v6115_v58  ;;  %v2893_v24 = vsel %vm498_vm2, %v6286_v26, 0.0  ;;  %v7218_v48 = vld [vmem:[#allocation67_spill] sm:$0xff] }
 0x2f6   : > { %v3019_v45 = vadd.f32 %v3018_v27, %v2994_v15  ;;  %7215 = vst [vmem:[#allocation8_spill] sm:$0xff] %v6292_v19  ;;  %v2892_v15 = vadd.f32 %v2891_v23, %v2890_v36  ;;  %v2986_v27 = vmul.f32 %v6280_v38, %v6280_v38  ;;  %v6318_v40 = vsub.f32 %v6016_v47, %v6115_v58  ;;  %v6322_v25 = vpop.permute.xlu1 %3190 }
 0x2f7   : > { %7216 = vst [vmem:[#allocation78_spill] sm:$0xff] %v6310_v49  ;;  %v3036_v62 = vadd.f32 %v3035_v5, %v2983_v32  ;;  %v6326_v52 = vadd.f32 %v6170_v34, %v7218_v48  ;;  %v2895_v32 = vsel %vm498_vm2, %v6299_v35, 0.0  ;;  %v2897_v36 = vsel %vm498_vm2, %v6302_v14, 0.0  ;;  %v6332_v5 = vpop.permute.xlu0 %3186 }
 0x2f8   : > { %v3020_v8 = vadd.f32 %v3019_v45, %v2997_v30  ;;  %7217 = vst [vmem:[#allocation39_spill] sm:$0xff] %v6318_v40  ;;  %v2989_v45 = vmul.f32 %v6292_v19, %v6292_v19  ;;  %v2894_v30 = vadd.f32 %v2893_v24, %v2892_v15  ;;  %v3006_v47 = vmul.f32 %v6215_v1, %v6215_v1  ;;  %v7222_v19 = vld [vmem:[#allocation52_spill] sm:$0xff] }
 0x2f9   : > { %v3037_v55 = vadd.f32 %v3036_v62, %v2986_v27  ;;  %v2992_v34 = vmul.f32 %v6310_v49, %v6310_v49  ;;  %v7221_v62 = vld [vmem:[#allocation54_spill] sm:$0xff]  ;;  %v6347_v50 = vsub.f32 %v7222_v19, %v6115_v58 }
 0x2fa   : > { %v3021_v4 = vadd.f32 %v3020_v8, %v3000_v18  ;;  %v2896_v18 = vadd.f32 %v2895_v32, %v2894_v30  ;;  %v7219_v8 = vld [vmem:[#allocation51_spill] sm:$0xff]  ;;  %v6343_v24 = vadd.f32 %v3744_v51, %v7221_v62  ;;  %v2899_v30 = vsel %vm498_vm2, %v6326_v52, 0.0  ;;  %v6353_v49 = vpop.permute.xlu1 %3198  ;;  %v7224_v51 = vld [vmem:[#allocation50_spill] sm:$0xff] }
 0x2fb   : > { %v6338_v15 = vsub.f32 %v7219_v8, %v6115_v58  ;;  %v3038_v27 = vadd.f32 %v3037_v55, %v2989_v45  ;;  %7223 = vst [vmem:[#allocation10_spill] sm:$0xff] %v6347_v50  ;;  %v6357_v45 = vsub.f32 %v7224_v51, %v6115_v58 }
 0x2fc   : > { %v3022_v23 = vadd.f32 %v3021_v4, %v3003_v10  ;;  %v2898_v38 = vadd.f32 %v2897_v36, %v2896_v18  ;;  %v2995_v10 = vmul.f32 %v6318_v40, %v6318_v40  ;;  %v2901_v36 = vsel %vm498_vm2, %v6343_v24, 0.0 }
 0x2fd   : > { %7220 = vst [vmem:[#allocation42_spill] sm:$0xff] %v6338_v15  ;;  %v3039_v4 = vadd.f32 %v3038_v27, %v2992_v34  ;;  %7225 = vst [vmem:[#allocation44_spill] sm:$0xff] %v6357_v45  ;;  %v2998_v55 = vmul.f32 %v6338_v15, %v6338_v15  ;;  %v7227_v34 = vld [vmem:[#allocation68_spill] sm:$0xff]  ;;  %v3001_v27 = vmul.f32 %v6347_v50, %v6347_v50 }
 0x2fe   : > { %v3023_v48 = vadd.f32 %v3022_v23, %v3006_v47  ;;  %v2900_v8 = vadd.f32 %v2899_v30, %v2898_v38  ;;  %v6363_v47 = vpop.permute.xlu0 %3194  ;;  %v6367_v38 = vsub.f32 %v7227_v34, %v6115_v58  ;;  %v6373_v3 = vpop.permute.xlu1 %3206 }
 0x2ff   : > { %v3040_v19 = vadd.f32 %v3039_v4, %v2995_v10  ;;  %7226 = vst [vmem:[#allocation3_spill] sm:$0xff] %v6363_v47  ;;  %v3004_v10 = vmul.f32 %v6357_v45, %v6357_v45 }
 0x300   : > { %v3024_v32 = vrot.slane %v3023_v48, 4  ;;  %v2902_v18 = vadd.f32 %v2901_v36, %v2900_v8 }
 0x301   : > { %v3041_v62 = vadd.f32 %v3040_v19, %v2998_v55 }
 0x302   : > { %v3025_v23 = vadd.f32 %v3024_v32, %v3023_v48  ;;  %v2903_v51 = vrot.slane %v2902_v18, 4  ;;  %v3007_v48 = vmul.f32 %v6367_v38, %v6367_v38  ;;  %v6377_v58 = vpop.permute.xlu0 %3202  ;;  %v6379_v45 = vpop.permute.xlu1 %3262 }
 0x303   : > { %v3042_v4 = vadd.f32 %v3041_v62, %v3001_v27 }
 0x304   : > { %v3026_v30 = vrot.slane %v3025_v23, 2  ;;  %v2904_v40 = vadd.f32 %v2903_v51, %v2902_v18 }
 0x305   : > { %v3043_v32 = vadd.f32 %v3042_v4, %v3004_v10 }
 0x306   : > { %v3027_v15 = vadd.f32 %v3026_v30, %v3025_v23  ;;  %v2905_v36 = vrot.slane %v2904_v40, 2  ;;  %v6381_v18 = vpop.permute.xlu0 %3258 }
 0x307   : > { %v3044_v34 = vadd.f32 %v3043_v32, %v3007_v48 }
 0x308   : > { %v3028_v8 = vrot.slane %v3027_v15, 1  ;;  %v2906_v19 = vadd.f32 %v2905_v36, %v2904_v40 }
 0x309   : > { %v3045_v47 = vrot.slane %v3044_v34, 4 }
 0x30a   : > { %v3029_v55 = vadd.f32 %v3028_v8, %v3027_v15  ;;  %v2907_v54 = vrot.slane %v2906_v19, 1 }
 0x30b   : > { %v3046_v23 = vadd.f32 %v3045_v47, %v3044_v34  ;;  %v6395_v47 = vpop.permute.xlu1 %3266 }
 0x30c   : > { %v3088_v50 = vmul.f32 0.0078125, %v3029_v55  ;;  %v2908_v62 = vadd.f32 %v2907_v54, %v2906_v19 }
 0x30d   : > { %v3047_v30 = vrot.slane %v3046_v23, 2 }
 0x30e   : > { %v3091_v27 = vadd.f32 1e-05, %v3088_v50  ;;  %v2912_v51 = vmul.f32 0.0078125, %v2908_v62 }
 0x30f   : > { %v3048_v10 = vadd.f32 %v3047_v30, %v3046_v23 }
 0x310   : > { %3848 = vrsqrt.f32 %v3091_v27  ;;  %v6384_v4 = vsub.f32 %v6067_v31, %v2912_v51  ;;  %v6387_v15 = vsub.f32 %v6060_v20, %v2912_v51  ;;  %v6390_v40 = vsub.f32 %v6082_v42, %v2912_v51  ;;  %v6406_v20 = vpop.permute.xlu0 %3270  ;;  %v6453_v27 = vpop.permute.xlu1 %3274 }
 0x311   : > { %v6393_v48 = vsub.f32 %v6107_v37, %v2912_v51  ;;  %v3049_v50 = vrot.slane %v3048_v10, 1  ;;  %v6398_v54 = vsub.f32 %v6123_v63, %v2912_v51  ;;  %v6401_v32 = vsub.f32 %v6183_v28, %v2912_v51 }
 0x312   : > { %7228 = vst [vmem:[#allocation43_spill] sm:$0xff] %v6384_v4  ;;  %7229 = vst [vmem:[#allocation45_spill] sm:$0xff] %v6387_v15  ;;  %v6404_v31 = vsub.f32 %v6120_v60, %v2912_v51  ;;  %v6409_v42 = vsub.f32 %v6158_v61, %v2912_v51  ;;  %v6412_v37 = vsub.f32 %v6231_v6, %v2912_v51 }
 0x313   : > { %7230 = vst [vmem:[#allocation34_spill] sm:$0xff] %v6390_v40  ;;  %7231 = vst [vmem:[#allocation6_spill] sm:$0xff] %v6393_v48  ;;  %v6415_v8 = vsub.f32 %v6242_v56, %v2912_v51  ;;  %v6418_v63 = vsub.f32 %v6264_v21, %v2912_v51  ;;  %v3050_v36 = vadd.f32 %v3049_v50, %v3048_v10 }
 0x314   : > { %7232 = vst [vmem:[#allocation31_spill] sm:$0xff] %v6398_v54  ;;  %7233 = vst [vmem:[#allocation48_spill] sm:$0xff] %v6401_v32  ;;  %v6421_v28 = vsub.f32 %v6286_v26, %v2912_v51  ;;  %v6424_v60 = vsub.f32 %v6299_v35, %v2912_v51  ;;  %v6427_v34 = vsub.f32 %v6302_v14, %v2912_v51  ;;  %v6461_v50 = vpop.permute.xlu0 %3278 }
 0x315   : > { %7234 = vst [vmem:[#allocation75_spill] sm:$0xff] %v6404_v31  ;;  %7235 = vst [vmem:[#allocation77_spill] sm:$0xff] %v6409_v42  ;;  %v6430_v61 = vsub.f32 %v6326_v52, %v2912_v51  ;;  %v6433_v6 = vsub.f32 %v6343_v24, %v2912_v51  ;;  %v2963_v56 = vmul.f32 %v6384_v4, %v6384_v4  ;;  %v3089_v26 = vmul.f32 0.0078125, %v3050_v36 }
 0x316   : > { %7236 = vst [vmem:[#allocation36_spill] sm:$0xff] %v6412_v37  ;;  %7237 = vst [vmem:[#allocation35_spill] sm:$0xff] %v6415_v8  ;;  %v2966_v21 = vmul.f32 %v6387_v15, %v6387_v15  ;;  %v2969_v35 = vmul.f32 %v6390_v40, %v6390_v40  ;;  %v2972_v14 = vmul.f32 %v6393_v48, %v6393_v48 }
 0x317   : > { %7238 = vst [vmem:[#allocation4_spill] sm:$0xff] %v6418_v63  ;;  %7239 = vst [vmem:[#allocation30_spill] sm:$0xff] %v6421_v28  ;;  %v2975_v52 = vmul.f32 %v6398_v54, %v6398_v54  ;;  %v2978_v24 = vmul.f32 %v6401_v32, %v6401_v32  ;;  %v2981_v55 = vmul.f32 %v6404_v31, %v6404_v31  ;;  %v3092_v62 = vadd.f32 1e-05, %v3089_v26  ;;  %v7246_v31 = vld [vmem:[#allocation69_spill] sm:$0xff] }
 0x318   : > { %7240 = vst [vmem:[#allocation37_spill] sm:$0xff] %v6424_v60  ;;  %7241 = vst [vmem:[#allocation55_spill] sm:$0xff] %v6427_v34  ;;  %v2984_v19 = vmul.f32 %v6409_v42, %v6409_v42  ;;  %v2987_v23 = vmul.f32 %v6412_v37, %v6412_v37  ;;  %v2990_v30 = vmul.f32 %v6415_v8, %v6415_v8  ;;  %v3051_v48 = vsel %vm498_vm2, %v2963_v56, 0.0  ;;  %v7247_v42 = vld [vmem:[#allocation12_spill] sm:$0xff] }
 0x319   : > { %7242 = vst [vmem:[#allocation32_spill] sm:$0xff] %v6430_v61  ;;  %7243 = vst [vmem:[#allocation28_spill] sm:$0xff] %v6433_v6  ;;  %v2993_v51 = vmul.f32 %v6418_v63, %v6418_v63  ;;  %v2996_v10 = vmul.f32 %v6421_v28, %v6421_v28  ;;  %v2999_v36 = vmul.f32 %v6424_v60, %v6424_v60  ;;  %3850 = vrsqrt.f32 %v3092_v62 }
 0x31a   : > { %v3002_v32 = vmul.f32 %v6427_v34, %v6427_v34  ;;  %v3005_v26 = vmul.f32 %v6430_v61, %v6430_v61  ;;  %v3008_v54 = vmul.f32 %v6433_v6, %v6433_v6  ;;  %v3052_v40 = vsel %vm498_vm2, %v2966_v21, 0.0  ;;  %v7245_v6 = vld [vmem:[#allocation21_spill] sm:$0xff] }
 0x31b   : > { %v3054_v4 = vsel %vm498_vm2, %v2969_v35, 0.0  ;;  %v3053_v15 = vadd.f32 %v3052_v40, %v3051_v48  ;;  %v3056_v63 = vsel %vm498_vm2, %v2972_v14, 0.0  ;;  %v3058_v60 = vsel %vm498_vm2, %v2975_v52, 0.0  ;;  %v6489_v14 = vpop.permute.xlu1 %3282  ;;  %v7244_v52 = vld [vmem:[#allocation16_spill] sm:$0xff] }
 0x31c   : > { %v3060_v28 = vsel %vm498_vm2, %v2978_v24, 0.0  ;;  %v3062_v61 = vsel %vm498_vm2, %v2981_v55, 0.0  ;;  %v3064_v8 = vsel %vm498_vm2, %v2984_v19, 0.0  ;;  %v6480_v62 = vsel %vm498_vm2, %v2987_v23, 0.0 }
 0x31d   : > { %v3849_v37 = vpop.eup %3848  ;;  %v6483_v56 = vsel %vm498_vm2, %v2990_v30, 0.0  ;;  %v3055_v23 = vadd.f32 %v3054_v4, %v3053_v15  ;;  %v6494_v30 = vpop.permute.xlu0 %3286  ;;  %v6512_v15 = vsel %vm498_vm2, %v2996_v10, 0.0 }
 0x31e   : > { %v3142_v21 = vmul.f32 %v3849_v37, %v6215_v1  ;;  %v3097_v40 = vmul.f32 %v3849_v37, %v6071_v7  ;;  %v3103_v48 = vmul.f32 %v3849_v37, %v6092_v12  ;;  %v3106_v35 = vmul.f32 %v3849_v37, %v6100_v33 }
 0x31f   : > { %v3100_v24 = vmul.f32 %v3849_v37, %v7244_v52  ;;  %v3112_v55 = vmul.f32 %v3849_v37, %v6129_v53  ;;  %v3109_v19 = vmul.f32 %v3849_v37, %v6111_v44  ;;  %v6502_v33 = vsel %vm498_vm2, %v2993_v51, 0.0  ;;  %v6533_v34 = vpop.permute.xlu1 %3290 }
 0x320   : > { %v3209_v1 = vmul.f32 %v7245_v6, %v3097_v40  ;;  %v3215_v7 = vmul.f32 %v7246_v31, %v3103_v48  ;;  %v6499_v12 = vmul.f32 %v6117_v22, %v3106_v35  ;;  %v3057_v4 = vadd.f32 %v3056_v63, %v3055_v23 }
 0x321   : > { %v3212_v52 = vmul.f32 %v6125_v46, %v3100_v24  ;;  %v6506_v53 = vmul.f32 %v7247_v42, %v3112_v55  ;;  %v6509_v44 = vmul.f32 %v6185_v41, %v3109_v19  ;;  %v6515_v40 = vsel %vm498_vm2, %v2999_v36, 0.0  ;;  %v7250_v19 = vld [vmem:[#allocation17_spill] sm:$0xff] }
 0x322   : > { %v6518_v48 = vsel %vm498_vm2, %v3002_v32, 0.0  ;;  %v6521_v51 = vsel %vm498_vm2, %v3005_v26, 0.0  ;;  %v3059_v35 = vadd.f32 %v3058_v60, %v3057_v4  ;;  %v6525_v24 = vsel %vm498_vm2, %v3008_v54, 0.0 }
 0x323   : > { %7248 = vst [vmem:[#allocation56_spill] sm:$0xff] %v6521_v51  ;;  %7249 = vst [vmem:[#allocation47_spill] sm:$0xff] %v6525_v24  ;;  %v3118_v55 = vmul.f32 %v3849_v37, %v6151_v2  ;;  %v3115_v63 = vmul.f32 %v3849_v37, %v6145_v17  ;;  %v3124_v10 = vmul.f32 %v3849_v37, %v6166_v13  ;;  %v6542_v17 = vpop.permute.xlu0 %3294  ;;  %v7257_v24 = vld [vmem:[#allocation2_spill] sm:$0xff] }
 0x324   : > { %v3121_v36 = vmul.f32 %v3849_v37, %v7250_v19  ;;  %v3130_v23 = vmul.f32 %v3849_v37, %v6195_v16  ;;  %v3127_v32 = vmul.f32 %v3849_v37, %v6189_v0  ;;  %v3061_v26 = vadd.f32 %v3060_v28, %v3059_v35 }
 0x325   : > { %v6536_v60 = vmul.f32 %v6233_v59, %v3118_v55  ;;  %v6539_v54 = vmul.f32 %v6244_v11, %v3115_v63  ;;  %v3136_v2 = vmul.f32 %v3849_v37, %v6203_v39  ;;  %v6545_v13 = vmul.f32 %v6276_v29, %v3124_v10 }
 0x326   : > { %v6548_v16 = vmul.f32 %v6288_v9, %v3121_v36  ;;  %v6551_v0 = vmul.f32 %v6322_v25, %v3130_v23  ;;  %v6554_v28 = vmul.f32 %v6332_v5, %v3127_v32  ;;  %v3063_v39 = vadd.f32 %v3062_v61, %v3061_v26  ;;  %v3851_v63 = vpop.eup %3850  ;;  %v7255_v32 = vld [vmem:[#allocation72_spill] sm:$0xff] }
 0x327   : > { %v6562_v4 = vmul.f32 %v6353_v49, %v3136_v2  ;;  %v3133_v35 = vmul.f32 %v3849_v37, %v6199_v57  ;;  %v6566_v55 = vmul.f32 %v6373_v3, %v3142_v21  ;;  %v3139_v10 = vmul.f32 %v3849_v37, %v6211_v43  ;;  %v7256_v2 = vld [vmem:[#allocation73_spill] sm:$0xff] }
 0x328   : > { %7251 = vst [vmem:[#allocation53_spill] sm:$0xff] %v6551_v0  ;;  %7252 = vst [vmem:[#allocation76_spill] sm:$0xff] %v6554_v28  ;;  %v3324_v19 = vadd.f32 %v6379_v45, %v3212_v52  ;;  %v3321_v36 = vadd.f32 %v6381_v18, %v3209_v1  ;;  %v3327_v61 = vadd.f32 %v6395_v47, %v3215_v7  ;;  %v7258_v21 = vld [vmem:[#allocation9_spill] sm:$0xff]  ;;  %v7259_v0 = vld [vmem:[#allocation74_spill] sm:$0xff]  ;;  %v6582_v1 = vpop.permute.xlu1 %3298 }
 0x329   : > { %7253 = vst [vmem:[#allocation27_spill] sm:$0xff] %v6562_v4  ;;  %7254 = vst [vmem:[#allocation22_spill] sm:$0xff] %v6566_v55  ;;  %v3143_v23 = vmul.f32 %v3851_v63, %v6367_v38  ;;  %v3098_v26 = vmul.f32 %v3851_v63, %v7255_v32  ;;  %v3104_v57 = vmul.f32 %v3851_v63, %v7256_v2  ;;  %v7260_v28 = vld [vmem:[#allocation46_spill] sm:$0xff]  ;;  %v7261_v32 = vld [vmem:[#allocation13_spill] sm:$0xff]  ;;  %v6588_v2 = vpop.permute.xlu0 %3302 }
 0x32a   : > { %v3107_v4 = vmul.f32 %v3851_v63, %v7257_v24  ;;  %v3101_v55 = vmul.f32 %v3851_v63, %v7258_v21  ;;  %v3113_v51 = vmul.f32 %v3851_v63, %v7259_v0  ;;  %v3110_v43 = vmul.f32 %v3851_v63, %v7260_v28  ;;  %3372 = vst [vmem:[%s6559_s17 + $0x18] sm:$0xff] %v3324_v19  ;;  %v7264_v21 = vld [vmem:[#allocation40_spill] sm:$0xff] }
 0x32b   : > { %v3065_v37 = vadd.f32 %v3064_v8, %v3063_v39  ;;  %3369 = vst [vmem:[%s6559_s17] sm:$0xff] %v3321_v36  ;;  %3375 = vst [vmem:[%s6559_s17 + $0x30] sm:$0xff] %v3327_v61  ;;  %v3210_v38 = vmul.f32 %v7245_v6, %v3098_v26  ;;  %v3216_v7 = vmul.f32 %v7246_v31, %v3104_v57  ;;  %v7262_v36 = vld [vmem:[#allocation41_spill] sm:$0xff]  ;;  %v7263_v26 = vld [vmem:[#allocation8_spill] sm:$0xff] }
 0x32c   : > { %v3219_v52 = vmul.f32 %v6117_v22, %v3107_v4  ;;  %v3119_v24 = vmul.f32 %v3851_v63, %v7261_v32  ;;  %v3213_v0 = vmul.f32 %v6125_v46, %v3101_v55  ;;  %v3225_v28 = vmul.f32 %v7247_v42, %v3113_v51  ;;  %v7265_v22 = vld [vmem:[#allocation39_spill] sm:$0xff]  ;;  %v7266_v6 = vld [vmem:[#allocation78_spill] sm:$0xff] }
 0x32d   : > { %v3222_v8 = vmul.f32 %v6185_v41, %v3110_v43  ;;  %v3067_v39 = vadd.f32 %v6480_v62, %v3065_v37  ;;  %v3116_v61 = vmul.f32 %v3851_v63, %v7262_v36  ;;  %v3125_v57 = vmul.f32 %v3851_v63, %v7263_v26  ;;  %v7267_v46 = vld [vmem:[#allocation10_spill] sm:$0xff] }
 0x32e   : > { %v3231_v19 = vmul.f32 %v6233_v59, %v3119_v24  ;;  %v3122_v4 = vmul.f32 %v3851_v63, %v7264_v21  ;;  %v3131_v31 = vmul.f32 %v3851_v63, %v7265_v22  ;;  %v3128_v55 = vmul.f32 %v3851_v63, %v7266_v6  ;;  %v7268_v24 = vld [vmem:[#allocation42_spill] sm:$0xff]  ;;  %v6610_v6 = vpop.permute.xlu1 %3306 }
 0x32f   : > { %v3069_v32 = vadd.f32 %v6483_v56, %v3067_v39  ;;  %v3137_v51 = vmul.f32 %v3851_v63, %v7267_v46  ;;  %v3228_v43 = vmul.f32 %v6244_v11, %v3116_v61  ;;  %v3237_v62 = vmul.f32 %v6276_v29, %v3125_v57  ;;  %v7269_v46 = vld [vmem:[#allocation3_spill] sm:$0xff] }
 0x330   : > { %v3234_v37 = vmul.f32 %v6288_v9, %v3122_v4  ;;  %v3134_v36 = vmul.f32 %v3851_v63, %v7268_v24  ;;  %v3243_v21 = vmul.f32 %v6322_v25, %v3131_v31  ;;  %v3240_v56 = vmul.f32 %v6332_v5, %v3128_v55  ;;  %v7270_v4 = vld [vmem:[#allocation44_spill] sm:$0xff] }
 0x331   : > { %v3071_v26 = vadd.f32 %v6502_v33, %v3069_v32  ;;  %v3249_v22 = vmul.f32 %v6353_v49, %v3137_v51  ;;  %v3245_v39 = vmul.f32 %v7269_v46, %v3133_v35  ;;  %v3255_v57 = vmul.f32 %v6373_v3, %v3143_v23  ;;  %v6616_v33 = vpop.permute.xlu0 %3310 }
 0x332   : > { %v3246_v61 = vmul.f32 %v7269_v46, %v3134_v36  ;;  %v3140_v24 = vmul.f32 %v3851_v63, %v7270_v4  ;;  %v3251_v32 = vmul.f32 %v6377_v58, %v3139_v10  ;;  %v3325_v55 = vadd.f32 %v6379_v45, %v3213_v0 }
 0x333   : > { %v3073_v31 = vadd.f32 %v6512_v15, %v3071_v26  ;;  %v3322_v51 = vadd.f32 %v6381_v18, %v3210_v38  ;;  %v3328_v36 = vadd.f32 %v6395_v47, %v3216_v7  ;;  %v3330_v63 = vadd.f32 %v6406_v20, %v6499_v12  ;;  %v7272_v26 = vld [vmem:[#allocation56_spill] sm:$0xff] }
 0x334   : > { %v3252_v35 = vmul.f32 %v6377_v58, %v3140_v24  ;;  %v3331_v23 = vadd.f32 %v6406_v20, %v3219_v52  ;;  %3373 = vst [vmem:[%s6559_s17 + $0x20] sm:$0xff] %v3325_v55  ;;  %v3333_v10 = vadd.f32 %v6453_v27, %v6509_v44  ;;  %v3334_v38 = vadd.f32 %v6453_v27, %v3222_v8  ;;  %v6652_v8 = vpop.permute.xlu1 %3314  ;;  %v7273_v24 = vld [vmem:[#allocation53_spill] sm:$0xff]  ;;  %v7274_v55 = vld [vmem:[#allocation27_spill] sm:$0xff] }
 0x335   : > { %v3075_v15 = vadd.f32 %v6515_v40, %v3073_v31  ;;  %3370 = vst [vmem:[%s6559_s17 + $0x8] sm:$0xff] %v3322_v51  ;;  %v3336_v7 = vadd.f32 %v6461_v50, %v6506_v53  ;;  %3376 = vst [vmem:[%s6559_s17 + $0x38] sm:$0xff] %v3328_v36  ;;  %v3337_v12 = vadd.f32 %v6461_v50, %v3225_v28 }
 0x336   : > { %3378 = vst [vmem:[%s6559_s17 + $0x48] sm:$0xff] %v3330_v63  ;;  %3379 = vst [vmem:[%s6559_s17 + $0x50] sm:$0xff] %v3331_v23  ;;  %v3339_v40 = vadd.f32 %v6489_v14, %v6539_v54  ;;  %v3340_v52 = vadd.f32 %v6489_v14, %v3228_v43  ;;  %v3342_v44 = vadd.f32 %v6494_v30, %v6536_v60 }
 0x337   : > { %v3077_v0 = vadd.f32 %v6518_v48, %v3075_v15  ;;  %3381 = vst [vmem:[%s6559_s17 + $0x60] sm:$0xff] %v3333_v10  ;;  %3382 = vst [vmem:[%s6559_s17 + $0x68] sm:$0xff] %v3334_v38  ;;  %v3343_v53 = vadd.f32 %v6494_v30, %v3231_v19  ;;  %v3345_v28 = vadd.f32 %v6533_v34, %v6548_v16  ;;  %v7271_v19 = vld [vmem:[#allocation76_spill] sm:$0xff]  ;;  %v7276_v15 = vld [vmem:[#allocation22_spill] sm:$0xff] }
 0x338   : > { %3384 = vst [vmem:[%s6559_s17 + $0x78] sm:$0xff] %v3336_v7  ;;  %v3346_v54 = vadd.f32 %v6533_v34, %v3234_v37  ;;  %3385 = vst [vmem:[%s6559_s17 + $0x80] sm:$0xff] %v3337_v12  ;;  %v3348_v48 = vadd.f32 %v6542_v17, %v6545_v13  ;;  %v3349_v60 = vadd.f32 %v6542_v17, %v3237_v62  ;;  %v6664_v37 = vpop.permute.xlu0 %3318 }
 0x339   : > { %3387 = vst [vmem:[%s6559_s17 + $0x90] sm:$0xff] %v3339_v40  ;;  %3388 = vst [vmem:[%s6559_s17 + $0x98] sm:$0xff] %v3340_v52  ;;  %v3351_v16 = vadd.f32 %v6582_v1, %v7271_v19  ;;  %v3352_v43 = vadd.f32 %v6582_v1, %v3240_v56  ;;  %v3079_v4 = vadd.f32 %v7272_v26, %v3077_v0  ;;  %v7277_v0 = vld [vmem:[#allocation55_spill] sm:$0xff]  ;;  %v7282_v26 = vld [vmem:[#allocation30_spill] sm:$0xff] }
 0x33a   : > { %3390 = vst [vmem:[%s6559_s17 + $0xa8] sm:$0xff] %v3342_v44  ;;  %3391 = vst [vmem:[%s6559_s17 + $0xb0] sm:$0xff] %v3343_v53  ;;  %v3354_v13 = vadd.f32 %v6588_v2, %v7273_v24  ;;  %v3355_v62 = vadd.f32 %v6588_v2, %v3243_v21  ;;  %v3357_v31 = vadd.f32 %v6610_v6, %v3245_v39  ;;  %v7275_v39 = vld [vmem:[#allocation47_spill] sm:$0xff]  ;;  %v7283_v24 = vld [vmem:[#allocation4_spill] sm:$0xff] }
 0x33b   : > { %3393 = vst [vmem:[%s6559_s17 + $0xc0] sm:$0xff] %v3345_v28  ;;  %3394 = vst [vmem:[%s6559_s17 + $0xc8] sm:$0xff] %v3346_v54  ;;  %v3358_v56 = vadd.f32 %v6610_v6, %v3246_v61  ;;  %v3360_v51 = vadd.f32 %v6616_v33, %v7274_v55  ;;  %v3361_v36 = vadd.f32 %v6616_v33, %v3249_v22  ;;  %v7279_v54 = vld [vmem:[#allocation75_spill] sm:$0xff] }
 0x33c   : > { %3396 = vst [vmem:[%s6559_s17 + $0xd8] sm:$0xff] %v3348_v48  ;;  %3397 = vst [vmem:[%s6559_s17 + $0xe0] sm:$0xff] %v3349_v60  ;;  %v3363_v21 = vadd.f32 %v6652_v8, %v3251_v32  ;;  %v3081_v63 = vadd.f32 %v7275_v39, %v3079_v4  ;;  %v3364_v23 = vadd.f32 %v6652_v8, %v3252_v35  ;;  %v7280_v60 = vld [vmem:[#allocation35_spill] sm:$0xff] }
 0x33d   : > { %3399 = vst [vmem:[%s6559_s17 + $0xf0] sm:$0xff] %v3351_v16  ;;  %3400 = vst [vmem:[%s6559_s17 + $0xf8] sm:$0xff] %v3352_v43  ;;  %v3366_v61 = vadd.f32 %v6664_v37, %v7276_v15  ;;  %v3367_v10 = vadd.f32 %v6664_v37, %v3255_v57  ;;  %v7278_v57 = vld [vmem:[#allocation77_spill] sm:$0xff]  ;;  %v7281_v16 = vld [vmem:[#allocation36_spill] sm:$0xff] }
 0x33e   : > { %3402 = vst [vmem:[%s6559_s17 + $0x108] sm:$0xff] %v3354_v13  ;;  %3403 = vst [vmem:[%s6559_s17 + $0x110] sm:$0xff] %v3355_v62  ;;  %v3082_v22 = vrot.slane %v3081_v63, 4  ;;  %v7284_v62 = vld [vmem:[#allocation37_spill] sm:$0xff]  ;;  %v7285_v15 = vld [vmem:[#allocation28_spill] sm:$0xff] }
 0x33f   : > { %3405 = vst [vmem:[%s6559_s17 + $0x120] sm:$0xff] %v3357_v31  ;;  %3406 = vst [vmem:[%s6559_s17 + $0x128] sm:$0xff] %v3358_v56 }
 0x340   : > { %3408 = vst [vmem:[%s6559_s17 + $0x138] sm:$0xff] %v3360_v51  ;;  %3409 = vst [vmem:[%s6559_s17 + $0x140] sm:$0xff] %v3361_v36  ;;  %v3083_v32 = vadd.f32 %v3082_v22, %v3081_v63 }
 0x341   : > { %3411 = vst [vmem:[%s6559_s17 + $0x150] sm:$0xff] %v3363_v21  ;;  %3412 = vst [vmem:[%s6559_s17 + $0x158] sm:$0xff] %v3364_v23 }
 0x342   : > { %3414 = vst [vmem:[%s6559_s17 + $0x168] sm:$0xff] %v3366_v61  ;;  %3415 = vst [vmem:[%s6559_s17 + $0x170] sm:$0xff] %v3367_v10  ;;  %v3084_v38 = vrot.slane %v3083_v32, 2  ;;  %v7286_v10 = vld [vmem:[#allocation32_spill] sm:$0xff] }
 0x344   : > { %v3085_v7 = vadd.f32 %v3084_v38, %v3083_v32  ;;  %v7287_v32 = vld [vmem:[#allocation45_spill] sm:$0xff]  ;;  %v7288_v38 = vld [vmem:[#allocation43_spill] sm:$0xff] }
 0x346   : > { %v3086_v12 = vrot.slane %v3085_v7, 1 }
 0x348   : > { %v3087_v40 = vadd.f32 %v3086_v12, %v3085_v7  ;;  %v7289_v7 = vld [vmem:[#allocation34_spill] sm:$0xff] }
 0x349   : > { %v7290_v12 = vld [vmem:[#allocation6_spill] sm:$0xff] }
 0x34a   : > { %v3090_v52 = vmul.f32 0.0078125, %v3087_v40  ;;  %v7291_v40 = vld [vmem:[#allocation31_spill] sm:$0xff] }
 0x34c   : > { %v3093_v35 = vadd.f32 1e-05, %v3090_v52  ;;  %v7292_v52 = vld [vmem:[#allocation48_spill] sm:$0xff] }
 0x34e   : > { %3852 = vrsqrt.f32 %v3093_v35  ;;  %v7293_v35 = vld [vmem:[#allocation71_spill] sm:$0xff] }
 0x35b   : > { %v3853_v44 = vpop.eup %3852 }
 0x35c   : > { %v3138_v53 = vmul.f32 %v3853_v44, %v7277_v0  ;;  %v3120_v28 = vmul.f32 %v3853_v44, %v7278_v57  ;;  %v3117_v48 = vmul.f32 %v3853_v44, %v7279_v54  ;;  %v3126_v19 = vmul.f32 %v3853_v44, %v7280_v60 }
 0x35d   : > { %v3123_v43 = vmul.f32 %v3853_v44, %v7281_v16  ;;  %v3132_v4 = vmul.f32 %v3853_v44, %v7282_v26  ;;  %v3129_v13 = vmul.f32 %v3853_v44, %v7283_v24  ;;  %v3135_v31 = vmul.f32 %v3853_v44, %v7284_v62 }
 0x35e   : > { %v3232_v56 = vmul.f32 %v6233_v59, %v3120_v28  ;;  %v3229_v55 = vmul.f32 %v6244_v11, %v3117_v48  ;;  %v3238_v51 = vmul.f32 %v6276_v29, %v3126_v19  ;;  %v3250_v36 = vmul.f32 %v6353_v49, %v3138_v53  ;;  %v7294_v53 = vld [vmem:[#allocation21_spill] sm:$0xff]  ;;  %v7296_v48 = vld [vmem:[#allocation70_spill] sm:$0xff] }
 0x35f   : > { %v3235_v21 = vmul.f32 %v6288_v9, %v3123_v43  ;;  %v3244_v39 = vmul.f32 %v6322_v25, %v3132_v4  ;;  %v3241_v63 = vmul.f32 %v6332_v5, %v3129_v13  ;;  %v3247_v23 = vmul.f32 %v7269_v46, %v3135_v31  ;;  %v7295_v28 = vld [vmem:[#allocation69_spill] sm:$0xff] }
 0x360   : > { %v3144_v61 = vmul.f32 %v3853_v44, %v7285_v15  ;;  %v3141_v22 = vmul.f32 %v3853_v44, %v7286_v10  ;;  %v3102_v59 = vmul.f32 %v3853_v44, %v7287_v32  ;;  %v3099_v11 = vmul.f32 %v3853_v44, %v7288_v38 }
 0x361   : > { %v3105_v29 = vmul.f32 %v3853_v44, %v7289_v7  ;;  %v3108_v49 = vmul.f32 %v3853_v44, %v7290_v12  ;;  %v3111_v9 = vmul.f32 %v3853_v44, %v7291_v40  ;;  %v3114_v25 = vmul.f32 %v3853_v44, %v7292_v52 }
 0x362   : > { %v3256_v5 = vmul.f32 %v6373_v3, %v3144_v61  ;;  %v3253_v46 = vmul.f32 %v6377_v58, %v3141_v22  ;;  %v3214_v0 = vmul.f32 %v7293_v35, %v3102_v59  ;;  %v3211_v57 = vmul.f32 %v7294_v53, %v3099_v11 }
 0x363   : > { %v3217_v54 = vmul.f32 %v7295_v28, %v3105_v29  ;;  %v3220_v60 = vmul.f32 %v7296_v48, %v3108_v49  ;;  %v3223_v19 = vmul.f32 %v6185_v41, %v3111_v9  ;;  %v3226_v44 = vmul.f32 %v7247_v42, %v3114_v25 }
 0x364   : > { %v3326_v3 = vadd.f32 %v6379_v45, %v3214_v0  ;;  %v3323_v58 = vadd.f32 %v6381_v18, %v3211_v57  ;;  %v3341_v16 = vadd.f32 %v6489_v14, %v3229_v55  ;;  %v3344_v43 = vadd.f32 %v6494_v30, %v3232_v56 }
 0x365   : > { %v3329_v26 = vadd.f32 %v6395_v47, %v3217_v54  ;;  %v3332_v4 = vadd.f32 %v6406_v20, %v3220_v60  ;;  %v3335_v41 = vadd.f32 %v6453_v27, %v3223_v19  ;;  %v3338_v42 = vadd.f32 %v6461_v50, %v3226_v44 }
 0x366   : > { %3374 = vst.msk [vmem:[%s6559_s17 + $0x28] sm:$0xff] %vm498_vm2, %v3326_v3  ;;  %3371 = vst.msk [vmem:[%s6559_s17 + $0x10] sm:$0xff] %vm498_vm2, %v3323_v58  ;;  %v3347_v45 = vadd.f32 %v6533_v34, %v3235_v21  ;;  %v3350_v18 = vadd.f32 %v6542_v17, %v3238_v51  ;;  %v3353_v47 = vadd.f32 %v6582_v1, %v3241_v63 }
 0x367   : > { %3389 = vst.msk [vmem:[%s6559_s17 + $0xa0] sm:$0xff] %vm498_vm2, %v3341_v16  ;;  %3392 = vst.msk [vmem:[%s6559_s17 + $0xb8] sm:$0xff] %vm498_vm2, %v3344_v43  ;;  %v3356_v20 = vadd.f32 %v6588_v2, %v3244_v39  ;;  %v3359_v34 = vadd.f32 %v6610_v6, %v3247_v23  ;;  %v3362_v27 = vadd.f32 %v6616_v33, %v3250_v36 }
 0x368   : > { %3377 = vst.msk [vmem:[%s6559_s17 + $0x40] sm:$0xff] %vm498_vm2, %v3329_v26  ;;  %3380 = vst.msk [vmem:[%s6559_s17 + $0x58] sm:$0xff] %vm498_vm2, %v3332_v4  ;;  %v3365_v50 = vadd.f32 %v6652_v8, %v3253_v46  ;;  %v3368_v14 = vadd.f32 %v6664_v37, %v3256_v5 }
 0x369   : > { %3383 = vst.msk [vmem:[%s6559_s17 + $0x70] sm:$0xff] %vm498_vm2, %v3335_v41  ;;  %3386 = vst.msk [vmem:[%s6559_s17 + $0x88] sm:$0xff] %vm498_vm2, %v3338_v42 }
 0x36a   : > { %3395 = vst.msk [vmem:[%s6559_s17 + $0xd0] sm:$0xff] %vm498_vm2, %v3347_v45  ;;  %3398 = vst.msk [vmem:[%s6559_s17 + $0xe8] sm:$0xff] %vm498_vm2, %v3350_v18 }
 0x36b   : > { %3401 = vst.msk [vmem:[%s6559_s17 + $0x100] sm:$0xff] %vm498_vm2, %v3353_v47  ;;  %3404 = vst.msk [vmem:[%s6559_s17 + $0x118] sm:$0xff] %vm498_vm2, %v3356_v20 }
 0x36c   : > { %3407 = vst.msk [vmem:[%s6559_s17 + $0x130] sm:$0xff] %vm498_vm2, %v3359_v34  ;;  %3410 = vst.msk [vmem:[%s6559_s17 + $0x148] sm:$0xff] %vm498_vm2, %v3362_v27 }
 0x36d   : > { %3413 = vst.msk [vmem:[%s6559_s17 + $0x160] sm:$0xff] %vm498_vm2, %v3365_v50  ;;  %3416 = vst.msk [vmem:[%s6559_s17 + $0x178] sm:$0xff] %vm498_vm2, %v3368_v14 }
 0x36e PF: > { %s17_s26 = sadd.s32 1, %s3892_s26   ;;  %s7297_s24 = smov %s3888_s25 }
 0x36f   : > { %p14_p5 = scmp.ge.s32.totalorder %s17_s26, 4   ;;  %s7298_s25 = smov %s7300_s27 }
 0x371   :  { %16 = sbr.rel (!%p14_p5) target bundleno = 2 (0x2), region = 78 }

</bundles_post_ra>
